<compile_context>
chip_gen: v7x
topology: tpu7x:2x2x1
jax: 0.10.0
libtpu: 0.0.40
codegen_flags: <defaults>
</compile_context>

<pallas_src>
import math
import functools

import numpy as np
import jax
import jax.numpy as jnp
from jax import lax
from jax.experimental import pallas as pl
from jax.experimental.pallas import tpu as pltpu


def _ceil_div(a, b):
    return -(-a // b)


def _round_up(a, b):
    return _ceil_div(a, b) * b


# ----------------------------------------------------------------------------
# Pallas kernel: one grid step == one (batch block, time block).  LSTM
# recurrent state (h, c) for both layers lives in VMEM scratch and persists
# across the (sequential) time-block grid axis.
#
#   x_ref    : (Bblk, Tb, D)      batch-first input block (f32)
#   wih0_ref : (D, 4H)            W_ih_l0^T      (weight dtype)
#   whh0_ref : (H, 4H)            W_hh_l0^T      (weight dtype)
#   b0_ref   : (1, 4H)            b_ih_l0 + b_hh_l0 (f32)
#   wih1_ref : (H, 4H)            W_ih_l1^T      (weight dtype)
#   whh1_ref : (H, 4H)            W_hh_l1^T      (weight dtype)
#   b1_ref   : (1, 4H)            b_ih_l1 + b_hh_l1 (f32)
#   y_ref    : (Bblk, Tb, H)      top-layer hidden states (batch-first, f32)
#   g0_scr   : (Bblk, Tb, 4H)     staged layer-0 input projection (f32)
#   h0,c0,h1,c1 : (Bblk, H)       persistent recurrent state (f32)
# ----------------------------------------------------------------------------
def _lstm2_kernel(x_ref, wih0_ref, whh0_ref, b0_ref, wih1_ref, whh1_ref,
                  b1_ref, y_ref, g0_scr, h0, c0, h1, c1):
    Bblk, Tb, H = y_ref.shape
    D = x_ref.shape[2]
    wdt = wih0_ref.dtype  # f32 by default; bf16 on v6e/v7x at production H

    # Reset recurrent state at the start of every batch block's time sweep.
    @pl.when(pl.program_id(1) == 0)
    def _init():
        h0[...] = jnp.zeros_like(h0)
        c0[...] = jnp.zeros_like(c0)
        h1[...] = jnp.zeros_like(h1)
        c1[...] = jnp.zeros_like(c1)

    # Hoisted layer-0 input projection for the whole time block: one
    # (Bblk*Tb, D) x (D, 4H) MXU matmul + bias, staged in VMEM scratch so the
    # per-step working set in vregs stays flat as Tb grows.  The reshapes are
    # tile-aligned (Tb is a multiple of 8).
    x2 = x_ref[...].astype(wdt).reshape(Bblk * Tb, D)
    g0 = jnp.dot(x2, wih0_ref[...], preferred_element_type=jnp.float32)
    g0_scr[...] = (g0 + b0_ref[...]).reshape(Bblk, Tb, 4 * H)

    # Hoist constant operand loads out of the unrolled loop.
    whh0 = whh0_ref[...]
    wih1 = wih1_ref[...]
    whh1 = whh1_ref[...]
    b1 = b1_ref[...]

    def gate_math(gates, c):
        # PyTorch gate order i | f | g | o.  Gate math stays f32.
        i = jax.nn.sigmoid(gates[:, 0 * H:1 * H])
        f = jax.nn.sigmoid(gates[:, 1 * H:2 * H])
        g = jnp.tanh(gates[:, 2 * H:3 * H])
        o = jax.nn.sigmoid(gates[:, 3 * H:4 * H])
        c_new = f * c + i * g
        h_new = o * jnp.tanh(c_new)
        return h_new, c_new

    # Recurrent state held in values across the (static, bounded) unroll.
    h0_v, c0_v = h0[...], c0[...]
    h1_v, c1_v = h1[...], c1[...]

    for t in range(Tb):  # static unroll; Tb is a small compile-time constant
        # Layer 0: only the recurrent matmul remains on the serial path.
        gates0 = g0_scr[:, t, :] + jnp.dot(
            h0_v.astype(wdt), whh0, preferred_element_type=jnp.float32)
        h0_v, c0_v = gate_math(gates0, c0_v)

        # Layer 1: two independent MXU dots (no per-step concatenate).
        gates1 = (jnp.dot(h0_v.astype(wdt), wih1,
                          preferred_element_type=jnp.float32)
                  + jnp.dot(h1_v.astype(wdt), whh1,
                            preferred_element_type=jnp.float32)
                  + b1)
        h1_v, c1_v = gate_math(gates1, c1_v)

        # Batch-first store: one row per batch element at time index t.
        y_ref[:, t, :] = h1_v.astype(y_ref.dtype)

    # Persist recurrent state across time blocks (grid iterations).
    h0[...] = h0_v
    c0[...] = c0_v
    h1[...] = h1_v
    c1[...] = c1_v


# ----------------------------------------------------------------------------
# Block-size / device heuristics.
# ----------------------------------------------------------------------------
def _choose_time_block(T, Bblk, *, target_rows=256, max_unroll=32):
    """Static per-grid-step unroll length along time.

    Tb is a multiple of 8 (so in-kernel reshapes are sublane-tile aligned and
    the BlockSpec divisibility rule holds), sized so the hoisted projection
    feeds ~target_rows rows to the MXU, and capped by max_unroll to bound the
    static unroll (guards the old prime-T fallback blow-up)."""
    tb = _round_up(_ceil_div(target_rows, max(Bblk, 1)), 8)
    tb = min(tb, max_unroll, _round_up(T, 8))
    return max(tb, 8)


def _prefer_bf16_weights(hidden_size):
    """bf16 weights (MXU-native, half the VMEM/HBM bytes) for production
    sizes on v6e/v7x; f32 at small H so we match the f32 reference tightly."""
    if hidden_size < 512:
        return False
    try:
        kind = jax.devices()[0].device_kind.lower()
    except Exception:
        return False
    return ("v6" in kind) or ("v7" in kind)


def _default_num_batch_blocks(batch):
    """2 on v7x-class chips (2 TensorCores/chip) when the batch is big enough
    to shard across cores; 1 on single-core chips (v5e/v6e) / tiny batches."""
    if batch < 16:
        return 1
    try:
        kind = jax.devices()[0].device_kind.lower()
    except Exception:
        return 1
    return 2 if "v7" in kind else 1


# ----------------------------------------------------------------------------
# Wrapper: parameter plumbing + pallas_call (batch-first in, batch-first out).
# ----------------------------------------------------------------------------
@functools.partial(jax.jit, static_argnames=("hidden_size", "weights_in_bf16",
                                             "num_batch_blocks"))
def encoder_forward_pallas(x_btd, params, *, hidden_size,
                           weights_in_bf16=False, num_batch_blocks=1):
    """x_btd: (B, T, input_size) float32 -> (B, T, hidden_size) float32."""
    B, T, D = x_btd.shape
    H = hidden_size
    nb = max(1, int(num_batch_blocks))

    wdt = jnp.bfloat16 if weights_in_bf16 else jnp.float32

    # ---- blocking: batch padded to 8-sublane blocks, time to Tb blocks ----
    Bblk = _round_up(_ceil_div(B, nb), 8)
    B_pad = Bblk * nb
    Tb = _choose_time_block(T, Bblk)
    T_pad = _round_up(T, Tb)
    grid = (nb, T_pad // Tb)

    x_f32 = x_btd.astype(jnp.float32)
    if (B_pad, T_pad) != (B, T):
        # Zero padding: padded batch rows are independent; padded trailing
        # timesteps only extend the recurrence past T and are sliced off.
        x_f32 = jnp.pad(x_f32, ((0, B_pad - B), (0, T_pad - T), (0, 0)))

    # ---- weights: pre-transpose for row-major x @ W^T, fold biases --------
    wih0_t = params["weight_ih_l0"].T.astype(wdt)                  # (D, 4H)
    whh0_t = params["weight_hh_l0"].T.astype(wdt)                  # (H, 4H)
    wih1_t = params["weight_ih_l1"].T.astype(wdt)                  # (H, 4H)
    whh1_t = params["weight_hh_l1"].T.astype(wdt)                  # (H, 4H)
    b0 = (params["bias_ih_l0"] + params["bias_hh_l0"]).astype(
        jnp.float32).reshape(1, 4 * H)
    b1 = (params["bias_ih_l1"] + params["bias_hh_l1"]).astype(
        jnp.float32).reshape(1, 4 * H)

    # Constant operands: index never changes -> single pipeline buffer.
    def const_spec(shape):
        return pl.BlockSpec(shape, lambda b, t: (0,) * len(shape),
                            pipeline_mode=pl.Buffered(1))

    # ---- explicit VMEM budget from (tile-padded) block sizes --------------
    def tile_bytes(shape, itemsize):
        s = list(shape)
        s[-1] = _round_up(s[-1], 128)
        if len(s) >= 2:
            s[-2] = _round_up(s[-2], 8)
        n = 1
        for d in s:
            n *= d
        return n * itemsize

    wb = np.dtype(wdt).itemsize
    fb = np.dtype(jnp.float32).itemsize
    vmem_est = (
        2 * tile_bytes((Bblk, Tb, D), fb)            # x block, double-buffered
        + 2 * tile_bytes((Bblk, Tb, H), fb)          # y block, double-buffered
        + tile_bytes((D, 4 * H), wb)                 # weights, single-buffered
        + 3 * tile_bytes((H, 4 * H), wb)
        + 2 * tile_bytes((1, 4 * H), fb)             # biases
        + tile_bytes((Bblk, Tb, 4 * H), fb)          # g0 scratch
        + 4 * tile_bytes((Bblk, H), fb))             # h/c scratch
    vmem_limit = int(min(max(2 * vmem_est + (2 << 20), 16 << 20), 64 << 20))

    y_full = pl.pallas_call(
        _lstm2_kernel,
        out_shape=jax.ShapeDtypeStruct((B_pad, T_pad, H), jnp.float32),
        grid_spec=pltpu.PrefetchScalarGridSpec(
            num_scalar_prefetch=0,
            grid=grid,
            in_specs=[
                pl.BlockSpec((Bblk, Tb, D), lambda b, t: (b, t, 0)),  # x
                const_spec((D, 4 * H)),                               # W_ih0^T
                const_spec((H, 4 * H)),                               # W_hh0^T
                const_spec((1, 4 * H)),                               # b0
                const_spec((H, 4 * H)),                               # W_ih1^T
                const_spec((H, 4 * H)),                               # W_hh1^T
                const_spec((1, 4 * H)),                               # b1
            ],
            out_specs=pl.BlockSpec((Bblk, Tb, H), lambda b, t: (b, t, 0)),
            scratch_shapes=[
                pltpu.VMEM((Bblk, Tb, 4 * H), jnp.float32),  # staged g0
                pltpu.VMEM((Bblk, H), jnp.float32),          # h layer0
                pltpu.VMEM((Bblk, H), jnp.float32),          # c layer0
                pltpu.VMEM((Bblk, H), jnp.float32),          # h layer1
                pltpu.VMEM((Bblk, H), jnp.float32),          # c layer1
            ],
        ),
        compiler_params=pltpu.CompilerParams(
            # batch blocks independent (megacore-shardable); time is a
            # recurrence -> sequential.
            dimension_semantics=("parallel", "arbitrary"),
            vmem_limit_bytes=vmem_limit,
        ),
    )(x_f32, wih0_t, whh0_t, b0, wih1_t, whh1_t, b1)

    if (B_pad, T_pad) != (B, T):
        y_full = y_full[:B, :T, :]
    return y_full  # already batch-first (B, T, H): no post-kernel transpose


# ----------------------------------------------------------------------------
# Deterministic parameter init (same shapes / gate order as nn.LSTM, 2 layers).
# ----------------------------------------------------------------------------
def init_lstm_params(key, input_size, hidden_size, num_layers=2):
    k = 1.0 / math.sqrt(hidden_size)
    params = {}
    for layer in range(num_layers):
        in_dim = input_size if layer == 0 else hidden_size
        key, k1, k2, k3, k4 = jax.random.split(key, 5)
        params[f"weight_ih_l{layer}"] = jax.random.uniform(
            k1, (4 * hidden_size, in_dim), jnp.float32, -k, k)
        params[f"weight_hh_l{layer}"] = jax.random.uniform(
            k2, (4 * hidden_size, hidden_size), jnp.float32, -k, k)
        params[f"bias_ih_l{layer}"] = jax.random.uniform(
            k3, (4 * hidden_size,), jnp.float32, -k, k)
        params[f"bias_hh_l{layer}"] = jax.random.uniform(
            k4, (4 * hidden_size,), jnp.float32, -k, k)
    return params


# ----------------------------------------------------------------------------
# Pure-JAX reference (lax.scan) to verify the kernel reproduces nn.LSTM math.
# ----------------------------------------------------------------------------
def encoder_forward_ref(x_btd, params, hidden_size):
    B, T, D = x_btd.shape
    H = hidden_size
    seq = jnp.transpose(x_btd, (1, 0, 2))  # (T, B, D)

    def layer(seq_in, l):
        wih = params[f"weight_ih_l{l}"]
        whh = params[f"weight_hh_l{l}"]
        b = params[f"bias_ih_l{l}"] + params[f"bias_hh_l{l}"]

        def step(carry, x_t):
            h, c = carry
            gates = x_t @ wih.T + h @ whh.T + b
            i = jax.nn.sigmoid(gates[:, 0 * H:1 * H])
            f = jax.nn.sigmoid(gates[:, 1 * H:2 * H])
            g = jnp.tanh(gates[:, 2 * H:3 * H])
            o = jax.nn.sigmoid(gates[:, 3 * H:4 * H])
            c = f * c + i * g
            h = o * jnp.tanh(c)
            return (h, c), h

        init = (jnp.zeros((B, H), jnp.float32), jnp.zeros((B, H), jnp.float32))
        _, ys = lax.scan(step, init, seq_in)
        return ys

    out = layer(layer(seq, 0), 1)
    return jnp.transpose(out, (1, 0, 2))


if __name__ == "__main__":
    # Small shapes consistent with the module: batch=2, seq=8, input=16, hidden=32.
    B, T, INPUT_SIZE, HIDDEN_SIZE = 2, 8, 16, 32

    key = jax.random.PRNGKey(0)
    key, xkey = jax.random.split(key)
    x = jax.random.normal(xkey, (B, T, INPUT_SIZE), dtype=jnp.float32)
    params = init_lstm_params(key, INPUT_SIZE, HIDDEN_SIZE, num_layers=2)

    y = encoder_forward_pallas(
        x, params, hidden_size=HIDDEN_SIZE,
        weights_in_bf16=_prefer_bf16_weights(HIDDEN_SIZE),   # False at H=32
        num_batch_blocks=_default_num_batch_blocks(B))       # 1 at B=2
    jax.block_until_ready(y)

    y_ref = encoder_forward_ref(x, params, HIDDEN_SIZE)
    assert y.shape == (B, T, HIDDEN_SIZE)
    assert jnp.allclose(y, y_ref, atol=1e-5, rtol=1e-5), "mismatch vs JAX reference"

    print("KERNEL_OK")
</pallas_src>

<mosaic_0001>
module attributes {stable_mosaic.version = 11 : i64} {
  func.func @_lstm2_kernel(%arg0: i32, %arg1: i32, %arg2: memref<8x8x16xf32, #tpu.memory_space<vmem>>, %arg3: memref<16x128xf32, #tpu.memory_space<vmem>>, %arg4: memref<32x128xf32, #tpu.memory_space<vmem>>, %arg5: memref<1x128xf32, #tpu.memory_space<vmem>>, %arg6: memref<32x128xf32, #tpu.memory_space<vmem>>, %arg7: memref<32x128xf32, #tpu.memory_space<vmem>>, %arg8: memref<1x128xf32, #tpu.memory_space<vmem>>, %arg9: memref<8x8x32xf32, #tpu.memory_space<vmem>>, %arg10: memref<8x8x128xf32, #tpu.memory_space<vmem>>, %arg11: memref<8x32xf32, #tpu.memory_space<vmem>>, %arg12: memref<8x32xf32, #tpu.memory_space<vmem>>, %arg13: memref<8x32xf32, #tpu.memory_space<vmem>>, %arg14: memref<8x32xf32, #tpu.memory_space<vmem>>) attributes {dimension_semantics = [#tpu.dimension_semantics<parallel>, #tpu.dimension_semantics<arbitrary>], iteration_bounds = array<i64: 1, 1>, scalar_prefetch = 0 : i64, scratch_operands = 5 : i64, tpu.core_type = #tpu.core_type<tc>, window_params = [{transform_indices = @transform_0, window_bounds = array<i64: 8, 8, 16>}, {pipeline_mode = #tpu.pipeline_mode<synchronous>, transform_indices = @transform_1, window_bounds = array<i64: 16, 128>}, {pipeline_mode = #tpu.pipeline_mode<synchronous>, transform_indices = @transform_2, window_bounds = array<i64: 32, 128>}, {pipeline_mode = #tpu.pipeline_mode<synchronous>, transform_indices = @transform_3, window_bounds = array<i64: 1, 128>}, {pipeline_mode = #tpu.pipeline_mode<synchronous>, transform_indices = @transform_4, window_bounds = array<i64: 32, 128>}, {pipeline_mode = #tpu.pipeline_mode<synchronous>, transform_indices = @transform_5, window_bounds = array<i64: 32, 128>}, {pipeline_mode = #tpu.pipeline_mode<synchronous>, transform_indices = @transform_6, window_bounds = array<i64: 1, 128>}, {transform_indices = @transform_7, window_bounds = array<i64: 8, 8, 32>}]} {
    %c0_i32 = arith.constant 0 : i32
    %0 = arith.cmpi eq, %arg1, %c0_i32 : i32
    %1 = arith.extui %0 : i1 to i32
    %c0_i32_0 = arith.constant 0 : i32
    %2 = arith.cmpi ne, %1, %c0_i32_0 : i32
    scf.if %2 {
      %cst_147 = arith.constant 0.000000e+00 : f32
      %520 = vector.broadcast %cst_147 : f32 to vector<8x32xf32>
      %c0_148 = arith.constant 0 : index
      %c0_149 = arith.constant 0 : index
      %521 = vector.load %arg11[%c0_148, %c0_149] : memref<8x32xf32, #tpu.memory_space<vmem>>, vector<8x32xf32>
      tpu.vector_store %arg11[%c0_148, %c0_149], %520 {strides = array<i32>} : memref<8x32xf32, #tpu.memory_space<vmem>>, vector<8x32xf32>,
      %cst_150 = arith.constant 0.000000e+00 : f32
      %522 = vector.broadcast %cst_150 : f32 to vector<8x32xf32>
      %c0_151 = arith.constant 0 : index
      %c0_152 = arith.constant 0 : index
      %523 = vector.load %arg12[%c0_151, %c0_152] : memref<8x32xf32, #tpu.memory_space<vmem>>, vector<8x32xf32>
      tpu.vector_store %arg12[%c0_151, %c0_152], %522 {strides = array<i32>} : memref<8x32xf32, #tpu.memory_space<vmem>>, vector<8x32xf32>,
      %cst_153 = arith.constant 0.000000e+00 : f32
      %524 = vector.broadcast %cst_153 : f32 to vector<8x32xf32>
      %c0_154 = arith.constant 0 : index
      %c0_155 = arith.constant 0 : index
      %525 = vector.load %arg13[%c0_154, %c0_155] : memref<8x32xf32, #tpu.memory_space<vmem>>, vector<8x32xf32>
      tpu.vector_store %arg13[%c0_154, %c0_155], %524 {strides = array<i32>} : memref<8x32xf32, #tpu.memory_space<vmem>>, vector<8x32xf32>,
      %cst_156 = arith.constant 0.000000e+00 : f32
      %526 = vector.broadcast %cst_156 : f32 to vector<8x32xf32>
      %c0_157 = arith.constant 0 : index
      %c0_158 = arith.constant 0 : index
      %527 = vector.load %arg14[%c0_157, %c0_158] : memref<8x32xf32, #tpu.memory_space<vmem>>, vector<8x32xf32>
      tpu.vector_store %arg14[%c0_157, %c0_158], %526 {strides = array<i32>} : memref<8x32xf32, #tpu.memory_space<vmem>>, vector<8x32xf32>,
    } else {
    }
    %c0 = arith.constant 0 : index
    %c0_1 = arith.constant 0 : index
    %c0_2 = arith.constant 0 : index
    %3 = vector.load %arg2[%c0, %c0_1, %c0_2] : memref<8x8x16xf32, #tpu.memory_space<vmem>>, vector<8x8x16xf32>
    %4 = vector.shape_cast %3 : vector<8x8x16xf32> to vector<64x16xf32>
    %c0_3 = arith.constant 0 : index
    %c0_4 = arith.constant 0 : index
    %5 = vector.load %arg3[%c0_3, %c0_4] : memref<16x128xf32, #tpu.memory_space<vmem>>, vector<16x128xf32>
    %cst = arith.constant dense<0.000000e+00> : vector<64x128xf32>
    %6 = tpu.matmul %4, %5, %cst {dimension_numbers = #tpu.dot_dimension_numbers<[1], [0], [0], [1], [0, 0, 1, 1], [], []>} : vector<64x16xf32>, vector<16x128xf32>, vector<64x128xf32> -> vector<64x128xf32>
    %c0_5 = arith.constant 0 : index
    %c0_6 = arith.constant 0 : index
    %7 = vector.load %arg5[%c0_5, %c0_6] : memref<1x128xf32, #tpu.memory_space<vmem>>, vector<1x128xf32>
    %8 = vector.broadcast %7 : vector<1x128xf32> to vector<64x128xf32>
    %9 = arith.addf %6, %8 : vector<64x128xf32>
    %10 = vector.shape_cast %9 : vector<64x128xf32> to vector<8x8x128xf32>
    %c0_7 = arith.constant 0 : index
    %c0_8 = arith.constant 0 : index
    %c0_9 = arith.constant 0 : index
    %11 = vector.load %arg10[%c0_7, %c0_8, %c0_9] : memref<8x8x128xf32, #tpu.memory_space<vmem>>, vector<8x8x128xf32>
    tpu.vector_store %arg10[%c0_7, %c0_8, %c0_9], %10 {strides = array<i32>} : memref<8x8x128xf32, #tpu.memory_space<vmem>>, vector<8x8x128xf32>,
    %c0_10 = arith.constant 0 : index
    %c0_11 = arith.constant 0 : index
    %12 = vector.load %arg4[%c0_10, %c0_11] : memref<32x128xf32, #tpu.memory_space<vmem>>, vector<32x128xf32>
    %c0_12 = arith.constant 0 : index
    %c0_13 = arith.constant 0 : index
    %13 = vector.load %arg6[%c0_12, %c0_13] : memref<32x128xf32, #tpu.memory_space<vmem>>, vector<32x128xf32>
    %c0_14 = arith.constant 0 : index
    %c0_15 = arith.constant 0 : index
    %14 = vector.load %arg7[%c0_14, %c0_15] : memref<32x128xf32, #tpu.memory_space<vmem>>, vector<32x128xf32>
    %c0_16 = arith.constant 0 : index
    %c0_17 = arith.constant 0 : index
    %15 = vector.load %arg8[%c0_16, %c0_17] : memref<1x128xf32, #tpu.memory_space<vmem>>, vector<1x128xf32>
    %c0_18 = arith.constant 0 : index
    %c0_19 = arith.constant 0 : index
    %16 = vector.load %arg11[%c0_18, %c0_19] : memref<8x32xf32, #tpu.memory_space<vmem>>, vector<8x32xf32>
    %c0_20 = arith.constant 0 : index
    %c0_21 = arith.constant 0 : index
    %17 = vector.load %arg12[%c0_20, %c0_21] : memref<8x32xf32, #tpu.memory_space<vmem>>, vector<8x32xf32>
    %c0_22 = arith.constant 0 : index
    %c0_23 = arith.constant 0 : index
    %18 = vector.load %arg13[%c0_22, %c0_23] : memref<8x32xf32, #tpu.memory_space<vmem>>, vector<8x32xf32>
    %c0_24 = arith.constant 0 : index
    %c0_25 = arith.constant 0 : index
    %19 = vector.load %arg14[%c0_24, %c0_25] : memref<8x32xf32, #tpu.memory_space<vmem>>, vector<8x32xf32>
    %c0_26 = arith.constant 0 : index
    %c0_27 = arith.constant 0 : index
    %c0_28 = arith.constant 0 : index
    %20 = vector.load %arg10[%c0_26, %c0_27, %c0_28] : memref<8x8x128xf32, #tpu.memory_space<vmem>>, vector<8x1x128xf32>
    %21 = vector.shape_cast %20 : vector<8x1x128xf32> to vector<8x128xf32>
    %cst_29 = arith.constant dense<0.000000e+00> : vector<8x128xf32>
    %22 = tpu.matmul %16, %12, %cst_29 {dimension_numbers = #tpu.dot_dimension_numbers<[1], [0], [0], [1], [0, 0, 1, 1], [], []>} : vector<8x32xf32>, vector<32x128xf32>, vector<8x128xf32> -> vector<8x128xf32>
    %23 = arith.addf %21, %22 : vector<8x128xf32>
    %24 = vector.extract_strided_slice %23 {offsets = [0, 0], sizes = [8, 32], strides = [1, 1]} : vector<8x128xf32> to vector<8x32xf32>
    %25 = arith.negf %24 : vector<8x32xf32>
    %26 = math.exp %25 : vector<8x32xf32>
    %cst_30 = arith.constant 1.000000e+00 : f32
    %27 = vector.broadcast %cst_30 : f32 to vector<8x32xf32>
    %28 = arith.addf %27, %26 : vector<8x32xf32>
    %29 = arith.divf %27, %28 : vector<8x32xf32>
    %30 = vector.extract_strided_slice %23 {offsets = [0, 32], sizes = [8, 32], strides = [1, 1]} : vector<8x128xf32> to vector<8x32xf32>
    %31 = arith.negf %30 : vector<8x32xf32>
    %32 = math.exp %31 : vector<8x32xf32>
    %cst_31 = arith.constant 1.000000e+00 : f32
    %33 = vector.broadcast %cst_31 : f32 to vector<8x32xf32>
    %34 = arith.addf %33, %32 : vector<8x32xf32>
    %35 = arith.divf %33, %34 : vector<8x32xf32>
    %36 = vector.extract_strided_slice %23 {offsets = [0, 64], sizes = [8, 32], strides = [1, 1]} : vector<8x128xf32> to vector<8x32xf32>
    %37 = math.tanh %36 : vector<8x32xf32>
    %38 = vector.extract_strided_slice %23 {offsets = [0, 96], sizes = [8, 32], strides = [1, 1]} : vector<8x128xf32> to vector<8x32xf32>
    %39 = arith.negf %38 : vector<8x32xf32>
    %40 = math.exp %39 : vector<8x32xf32>
    %cst_32 = arith.constant 1.000000e+00 : f32
    %41 = vector.broadcast %cst_32 : f32 to vector<8x32xf32>
    %42 = arith.addf %41, %40 : vector<8x32xf32>
    %43 = arith.divf %41, %42 : vector<8x32xf32>
    %44 = arith.mulf %35, %17 : vector<8x32xf32>
    %45 = arith.mulf %29, %37 : vector<8x32xf32>
    %46 = arith.addf %44, %45 : vector<8x32xf32>
    %47 = math.tanh %46 : vector<8x32xf32>
    %48 = arith.mulf %43, %47 : vector<8x32xf32>
    %cst_33 = arith.constant dense<0.000000e+00> : vector<8x128xf32>
    %49 = tpu.matmul %48, %13, %cst_33 {dimension_numbers = #tpu.dot_dimension_numbers<[1], [0], [0], [1], [0, 0, 1, 1], [], []>} : vector<8x32xf32>, vector<32x128xf32>, vector<8x128xf32> -> vector<8x128xf32>
    %cst_34 = arith.constant dense<0.000000e+00> : vector<8x128xf32>
    %50 = tpu.matmul %18, %14, %cst_34 {dimension_numbers = #tpu.dot_dimension_numbers<[1], [0], [0], [1], [0, 0, 1, 1], [], []>} : vector<8x32xf32>, vector<32x128xf32>, vector<8x128xf32> -> vector<8x128xf32>
    %51 = arith.addf %49, %50 : vector<8x128xf32>
    %52 = vector.broadcast %15 : vector<1x128xf32> to vector<8x128xf32>
    %53 = arith.addf %51, %52 : vector<8x128xf32>
    %54 = vector.extract_strided_slice %53 {offsets = [0, 0], sizes = [8, 32], strides = [1, 1]} : vector<8x128xf32> to vector<8x32xf32>
    %55 = arith.negf %54 : vector<8x32xf32>
    %56 = math.exp %55 : vector<8x32xf32>
    %cst_35 = arith.constant 1.000000e+00 : f32
    %57 = vector.broadcast %cst_35 : f32 to vector<8x32xf32>
    %58 = arith.addf %57, %56 : vector<8x32xf32>
    %59 = arith.divf %57, %58 : vector<8x32xf32>
    %60 = vector.extract_strided_slice %53 {offsets = [0, 32], sizes = [8, 32], strides = [1, 1]} : vector<8x128xf32> to vector<8x32xf32>
    %61 = arith.negf %60 : vector<8x32xf32>
    %62 = math.exp %61 : vector<8x32xf32>
    %cst_36 = arith.constant 1.000000e+00 : f32
    %63 = vector.broadcast %cst_36 : f32 to vector<8x32xf32>
    %64 = arith.addf %63, %62 : vector<8x32xf32>
    %65 = arith.divf %63, %64 : vector<8x32xf32>
    %66 = vector.extract_strided_slice %53 {offsets = [0, 64], sizes = [8, 32], strides = [1, 1]} : vector<8x128xf32> to vector<8x32xf32>
    %67 = math.tanh %66 : vector<8x32xf32>
    %68 = vector.extract_strided_slice %53 {offsets = [0, 96], sizes = [8, 32], strides = [1, 1]} : vector<8x128xf32> to vector<8x32xf32>
    %69 = arith.negf %68 : vector<8x32xf32>
    %70 = math.exp %69 : vector<8x32xf32>
    %cst_37 = arith.constant 1.000000e+00 : f32
    %71 = vector.broadcast %cst_37 : f32 to vector<8x32xf32>
    %72 = arith.addf %71, %70 : vector<8x32xf32>
    %73 = arith.divf %71, %72 : vector<8x32xf32>
    %74 = arith.mulf %65, %19 : vector<8x32xf32>
    %75 = arith.mulf %59, %67 : vector<8x32xf32>
    %76 = arith.addf %74, %75 : vector<8x32xf32>
    %77 = math.tanh %76 : vector<8x32xf32>
    %78 = arith.mulf %73, %77 : vector<8x32xf32>
    %c0_38 = arith.constant 0 : index
    %c0_39 = arith.constant 0 : index
    %c0_40 = arith.constant 0 : index
    %79 = vector.load %arg9[%c0_38, %c0_39, %c0_40] : memref<8x8x32xf32, #tpu.memory_space<vmem>>, vector<8x1x32xf32>
    %80 = vector.shape_cast %79 : vector<8x1x32xf32> to vector<8x32xf32>
    %81 = vector.shape_cast %78 : vector<8x32xf32> to vector<8x1x32xf32>
    tpu.vector_store %arg9[%c0_38, %c0_39, %c0_40], %81 {strides = array<i32>} : memref<8x8x32xf32, #tpu.memory_space<vmem>>, vector<8x1x32xf32>,
    %c0_41 = arith.constant 0 : index
    %c1 = arith.constant 1 : index
    %c0_42 = arith.constant 0 : index
    %82 = vector.load %arg10[%c0_41, %c1, %c0_42] : memref<8x8x128xf32, #tpu.memory_space<vmem>>, vector<8x1x128xf32>
    %83 = vector.shape_cast %82 : vector<8x1x128xf32> to vector<8x128xf32>
    %cst_43 = arith.constant dense<0.000000e+00> : vector<8x128xf32>
    %84 = tpu.matmul %48, %12, %cst_43 {dimension_numbers = #tpu.dot_dimension_numbers<[1], [0], [0], [1], [0, 0, 1, 1], [], []>} : vector<8x32xf32>, vector<32x128xf32>, vector<8x128xf32> -> vector<8x128xf32>
    %85 = arith.addf %83, %84 : vector<8x128xf32>
    %86 = vector.extract_strided_slice %85 {offsets = [0, 0], sizes = [8, 32], strides = [1, 1]} : vector<8x128xf32> to vector<8x32xf32>
    %87 = arith.negf %86 : vector<8x32xf32>
    %88 = math.exp %87 : vector<8x32xf32>
    %cst_44 = arith.constant 1.000000e+00 : f32
    %89 = vector.broadcast %cst_44 : f32 to vector<8x32xf32>
    %90 = arith.addf %89, %88 : vector<8x32xf32>
    %91 = arith.divf %89, %90 : vector<8x32xf32>
    %92 = vector.extract_strided_slice %85 {offsets = [0, 32], sizes = [8, 32], strides = [1, 1]} : vector<8x128xf32> to vector<8x32xf32>
    %93 = arith.negf %92 : vector<8x32xf32>
    %94 = math.exp %93 : vector<8x32xf32>
    %cst_45 = arith.constant 1.000000e+00 : f32
    %95 = vector.broadcast %cst_45 : f32 to vector<8x32xf32>
    %96 = arith.addf %95, %94 : vector<8x32xf32>
    %97 = arith.divf %95, %96 : vector<8x32xf32>
    %98 = vector.extract_strided_slice %85 {offsets = [0, 64], sizes = [8, 32], strides = [1, 1]} : vector<8x128xf32> to vector<8x32xf32>
    %99 = math.tanh %98 : vector<8x32xf32>
    %100 = vector.extract_strided_slice %85 {offsets = [0, 96], sizes = [8, 32], strides = [1, 1]} : vector<8x128xf32> to vector<8x32xf32>
    %101 = arith.negf %100 : vector<8x32xf32>
    %102 = math.exp %101 : vector<8x32xf32>
    %cst_46 = arith.constant 1.000000e+00 : f32
    %103 = vector.broadcast %cst_46 : f32 to vector<8x32xf32>
    %104 = arith.addf %103, %102 : vector<8x32xf32>
    %105 = arith.divf %103, %104 : vector<8x32xf32>
    %106 = arith.mulf %97, %46 : vector<8x32xf32>
    %107 = arith.mulf %91, %99 : vector<8x32xf32>
    %108 = arith.addf %106, %107 : vector<8x32xf32>
    %109 = math.tanh %108 : vector<8x32xf32>
    %110 = arith.mulf %105, %109 : vector<8x32xf32>
    %cst_47 = arith.constant dense<0.000000e+00> : vector<8x128xf32>
    %111 = tpu.matmul %110, %13, %cst_47 {dimension_numbers = #tpu.dot_dimension_numbers<[1], [0], [0], [1], [0, 0, 1, 1], [], []>} : vector<8x32xf32>, vector<32x128xf32>, vector<8x128xf32> -> vector<8x128xf32>
    %cst_48 = arith.constant dense<0.000000e+00> : vector<8x128xf32>
    %112 = tpu.matmul %78, %14, %cst_48 {dimension_numbers = #tpu.dot_dimension_numbers<[1], [0], [0], [1], [0, 0, 1, 1], [], []>} : vector<8x32xf32>, vector<32x128xf32>, vector<8x128xf32> -> vector<8x128xf32>
    %113 = arith.addf %111, %112 : vector<8x128xf32>
    %114 = vector.broadcast %15 : vector<1x128xf32> to vector<8x128xf32>
    %115 = arith.addf %113, %114 : vector<8x128xf32>
    %116 = vector.extract_strided_slice %115 {offsets = [0, 0], sizes = [8, 32], strides = [1, 1]} : vector<8x128xf32> to vector<8x32xf32>
    %117 = arith.negf %116 : vector<8x32xf32>
    %118 = math.exp %117 : vector<8x32xf32>
    %cst_49 = arith.constant 1.000000e+00 : f32
    %119 = vector.broadcast %cst_49 : f32 to vector<8x32xf32>
    %120 = arith.addf %119, %118 : vector<8x32xf32>
    %121 = arith.divf %119, %120 : vector<8x32xf32>
    %122 = vector.extract_strided_slice %115 {offsets = [0, 32], sizes = [8, 32], strides = [1, 1]} : vector<8x128xf32> to vector<8x32xf32>
    %123 = arith.negf %122 : vector<8x32xf32>
    %124 = math.exp %123 : vector<8x32xf32>
    %cst_50 = arith.constant 1.000000e+00 : f32
    %125 = vector.broadcast %cst_50 : f32 to vector<8x32xf32>
    %126 = arith.addf %125, %124 : vector<8x32xf32>
    %127 = arith.divf %125, %126 : vector<8x32xf32>
    %128 = vector.extract_strided_slice %115 {offsets = [0, 64], sizes = [8, 32], strides = [1, 1]} : vector<8x128xf32> to vector<8x32xf32>
    %129 = math.tanh %128 : vector<8x32xf32>
    %130 = vector.extract_strided_slice %115 {offsets = [0, 96], sizes = [8, 32], strides = [1, 1]} : vector<8x128xf32> to vector<8x32xf32>
    %131 = arith.negf %130 : vector<8x32xf32>
    %132 = math.exp %131 : vector<8x32xf32>
    %cst_51 = arith.constant 1.000000e+00 : f32
    %133 = vector.broadcast %cst_51 : f32 to vector<8x32xf32>
    %134 = arith.addf %133, %132 : vector<8x32xf32>
    %135 = arith.divf %133, %134 : vector<8x32xf32>
    %136 = arith.mulf %127, %76 : vector<8x32xf32>
    %137 = arith.mulf %121, %129 : vector<8x32xf32>
    %138 = arith.addf %136, %137 : vector<8x32xf32>
    %139 = math.tanh %138 : vector<8x32xf32>
    %140 = arith.mulf %135, %139 : vector<8x32xf32>
    %c0_52 = arith.constant 0 : index
    %c1_53 = arith.constant 1 : index
    %c0_54 = arith.constant 0 : index
    %141 = vector.load %arg9[%c0_52, %c1_53, %c0_54] : memref<8x8x32xf32, #tpu.memory_space<vmem>>, vector<8x1x32xf32>
    %142 = vector.shape_cast %141 : vector<8x1x32xf32> to vector<8x32xf32>
    %143 = vector.shape_cast %140 : vector<8x32xf32> to vector<8x1x32xf32>
    tpu.vector_store %arg9[%c0_52, %c1_53, %c0_54], %143 {strides = array<i32>} : memref<8x8x32xf32, #tpu.memory_space<vmem>>, vector<8x1x32xf32>,
    %c0_55 = arith.constant 0 : index
    %c2 = arith.constant 2 : index
    %c0_56 = arith.constant 0 : index
    %144 = vector.load %arg10[%c0_55, %c2, %c0_56] : memref<8x8x128xf32, #tpu.memory_space<vmem>>, vector<8x1x128xf32>
    %145 = vector.shape_cast %144 : vector<8x1x128xf32> to vector<8x128xf32>
    %cst_57 = arith.constant dense<0.000000e+00> : vector<8x128xf32>
    %146 = tpu.matmul %110, %12, %cst_57 {dimension_numbers = #tpu.dot_dimension_numbers<[1], [0], [0], [1], [0, 0, 1, 1], [], []>} : vector<8x32xf32>, vector<32x128xf32>, vector<8x128xf32> -> vector<8x128xf32>
    %147 = arith.addf %145, %146 : vector<8x128xf32>
    %148 = vector.extract_strided_slice %147 {offsets = [0, 0], sizes = [8, 32], strides = [1, 1]} : vector<8x128xf32> to vector<8x32xf32>
    %149 = arith.negf %148 : vector<8x32xf32>
    %150 = math.exp %149 : vector<8x32xf32>
    %cst_58 = arith.constant 1.000000e+00 : f32
    %151 = vector.broadcast %cst_58 : f32 to vector<8x32xf32>
    %152 = arith.addf %151, %150 : vector<8x32xf32>
    %153 = arith.divf %151, %152 : vector<8x32xf32>
    %154 = vector.extract_strided_slice %147 {offsets = [0, 32], sizes = [8, 32], strides = [1, 1]} : vector<8x128xf32> to vector<8x32xf32>
    %155 = arith.negf %154 : vector<8x32xf32>
    %156 = math.exp %155 : vector<8x32xf32>
    %cst_59 = arith.constant 1.000000e+00 : f32
    %157 = vector.broadcast %cst_59 : f32 to vector<8x32xf32>
    %158 = arith.addf %157, %156 : vector<8x32xf32>
    %159 = arith.divf %157, %158 : vector<8x32xf32>
    %160 = vector.extract_strided_slice %147 {offsets = [0, 64], sizes = [8, 32], strides = [1, 1]} : vector<8x128xf32> to vector<8x32xf32>
    %161 = math.tanh %160 : vector<8x32xf32>
    %162 = vector.extract_strided_slice %147 {offsets = [0, 96], sizes = [8, 32], strides = [1, 1]} : vector<8x128xf32> to vector<8x32xf32>
    %163 = arith.negf %162 : vector<8x32xf32>
    %164 = math.exp %163 : vector<8x32xf32>
    %cst_60 = arith.constant 1.000000e+00 : f32
    %165 = vector.broadcast %cst_60 : f32 to vector<8x32xf32>
    %166 = arith.addf %165, %164 : vector<8x32xf32>
    %167 = arith.divf %165, %166 : vector<8x32xf32>
    %168 = arith.mulf %159, %108 : vector<8x32xf32>
    %169 = arith.mulf %153, %161 : vector<8x32xf32>
    %170 = arith.addf %168, %169 : vector<8x32xf32>
    %171 = math.tanh %170 : vector<8x32xf32>
    %172 = arith.mulf %167, %171 : vector<8x32xf32>
    %cst_61 = arith.constant dense<0.000000e+00> : vector<8x128xf32>
    %173 = tpu.matmul %172, %13, %cst_61 {dimension_numbers = #tpu.dot_dimension_numbers<[1], [0], [0], [1], [0, 0, 1, 1], [], []>} : vector<8x32xf32>, vector<32x128xf32>, vector<8x128xf32> -> vector<8x128xf32>
    %cst_62 = arith.constant dense<0.000000e+00> : vector<8x128xf32>
    %174 = tpu.matmul %140, %14, %cst_62 {dimension_numbers = #tpu.dot_dimension_numbers<[1], [0], [0], [1], [0, 0, 1, 1], [], []>} : vector<8x32xf32>, vector<32x128xf32>, vector<8x128xf32> -> vector<8x128xf32>
    %175 = arith.addf %173, %174 : vector<8x128xf32>
    %176 = vector.broadcast %15 : vector<1x128xf32> to vector<8x128xf32>
    %177 = arith.addf %175, %176 : vector<8x128xf32>
    %178 = vector.extract_strided_slice %177 {offsets = [0, 0], sizes = [8, 32], strides = [1, 1]} : vector<8x128xf32> to vector<8x32xf32>
    %179 = arith.negf %178 : vector<8x32xf32>
    %180 = math.exp %179 : vector<8x32xf32>
    %cst_63 = arith.constant 1.000000e+00 : f32
    %181 = vector.broadcast %cst_63 : f32 to vector<8x32xf32>
    %182 = arith.addf %181, %180 : vector<8x32xf32>
    %183 = arith.divf %181, %182 : vector<8x32xf32>
    %184 = vector.extract_strided_slice %177 {offsets = [0, 32], sizes = [8, 32], strides = [1, 1]} : vector<8x128xf32> to vector<8x32xf32>
    %185 = arith.negf %184 : vector<8x32xf32>
    %186 = math.exp %185 : vector<8x32xf32>
    %cst_64 = arith.constant 1.000000e+00 : f32
    %187 = vector.broadcast %cst_64 : f32 to vector<8x32xf32>
    %188 = arith.addf %187, %186 : vector<8x32xf32>
    %189 = arith.divf %187, %188 : vector<8x32xf32>
    %190 = vector.extract_strided_slice %177 {offsets = [0, 64], sizes = [8, 32], strides = [1, 1]} : vector<8x128xf32> to vector<8x32xf32>
    %191 = math.tanh %190 : vector<8x32xf32>
    %192 = vector.extract_strided_slice %177 {offsets = [0, 96], sizes = [8, 32], strides = [1, 1]} : vector<8x128xf32> to vector<8x32xf32>
    %193 = arith.negf %192 : vector<8x32xf32>
    %194 = math.exp %193 : vector<8x32xf32>
    %cst_65 = arith.constant 1.000000e+00 : f32
    %195 = vector.broadcast %cst_65 : f32 to vector<8x32xf32>
    %196 = arith.addf %195, %194 : vector<8x32xf32>
    %197 = arith.divf %195, %196 : vector<8x32xf32>
    %198 = arith.mulf %189, %138 : vector<8x32xf32>
    %199 = arith.mulf %183, %191 : vector<8x32xf32>
    %200 = arith.addf %198, %199 : vector<8x32xf32>
    %201 = math.tanh %200 : vector<8x32xf32>
    %202 = arith.mulf %197, %201 : vector<8x32xf32>
    %c0_66 = arith.constant 0 : index
    %c2_67 = arith.constant 2 : index
    %c0_68 = arith.constant 0 : index
    %203 = vector.load %arg9[%c0_66, %c2_67, %c0_68] : memref<8x8x32xf32, #tpu.memory_space<vmem>>, vector<8x1x32xf32>
    %204 = vector.shape_cast %203 : vector<8x1x32xf32> to vector<8x32xf32>
    %205 = vector.shape_cast %202 : vector<8x32xf32> to vector<8x1x32xf32>
    tpu.vector_store %arg9[%c0_66, %c2_67, %c0_68], %205 {strides = array<i32>} : memref<8x8x32xf32, #tpu.memory_space<vmem>>, vector<8x1x32xf32>,
    %c0_69 = arith.constant 0 : index
    %c3 = arith.constant 3 : index
    %c0_70 = arith.constant 0 : index
    %206 = vector.load %arg10[%c0_69, %c3, %c0_70] : memref<8x8x128xf32, #tpu.memory_space<vmem>>, vector<8x1x128xf32>
    %207 = vector.shape_cast %206 : vector<8x1x128xf32> to vector<8x128xf32>
    %cst_71 = arith.constant dense<0.000000e+00> : vector<8x128xf32>
    %208 = tpu.matmul %172, %12, %cst_71 {dimension_numbers = #tpu.dot_dimension_numbers<[1], [0], [0], [1], [0, 0, 1, 1], [], []>} : vector<8x32xf32>, vector<32x128xf32>, vector<8x128xf32> -> vector<8x128xf32>
    %209 = arith.addf %207, %208 : vector<8x128xf32>
    %210 = vector.extract_strided_slice %209 {offsets = [0, 0], sizes = [8, 32], strides = [1, 1]} : vector<8x128xf32> to vector<8x32xf32>
    %211 = arith.negf %210 : vector<8x32xf32>
    %212 = math.exp %211 : vector<8x32xf32>
    %cst_72 = arith.constant 1.000000e+00 : f32
    %213 = vector.broadcast %cst_72 : f32 to vector<8x32xf32>
    %214 = arith.addf %213, %212 : vector<8x32xf32>
    %215 = arith.divf %213, %214 : vector<8x32xf32>
    %216 = vector.extract_strided_slice %209 {offsets = [0, 32], sizes = [8, 32], strides = [1, 1]} : vector<8x128xf32> to vector<8x32xf32>
    %217 = arith.negf %216 : vector<8x32xf32>
    %218 = math.exp %217 : vector<8x32xf32>
    %cst_73 = arith.constant 1.000000e+00 : f32
    %219 = vector.broadcast %cst_73 : f32 to vector<8x32xf32>
    %220 = arith.addf %219, %218 : vector<8x32xf32>
    %221 = arith.divf %219, %220 : vector<8x32xf32>
    %222 = vector.extract_strided_slice %209 {offsets = [0, 64], sizes = [8, 32], strides = [1, 1]} : vector<8x128xf32> to vector<8x32xf32>
    %223 = math.tanh %222 : vector<8x32xf32>
    %224 = vector.extract_strided_slice %209 {offsets = [0, 96], sizes = [8, 32], strides = [1, 1]} : vector<8x128xf32> to vector<8x32xf32>
    %225 = arith.negf %224 : vector<8x32xf32>
    %226 = math.exp %225 : vector<8x32xf32>
    %cst_74 = arith.constant 1.000000e+00 : f32
    %227 = vector.broadcast %cst_74 : f32 to vector<8x32xf32>
    %228 = arith.addf %227, %226 : vector<8x32xf32>
    %229 = arith.divf %227, %228 : vector<8x32xf32>
    %230 = arith.mulf %221, %170 : vector<8x32xf32>
    %231 = arith.mulf %215, %223 : vector<8x32xf32>
    %232 = arith.addf %230, %231 : vector<8x32xf32>
    %233 = math.tanh %232 : vector<8x32xf32>
    %234 = arith.mulf %229, %233 : vector<8x32xf32>
    %cst_75 = arith.constant dense<0.000000e+00> : vector<8x128xf32>
    %235 = tpu.matmul %234, %13, %cst_75 {dimension_numbers = #tpu.dot_dimension_numbers<[1], [0], [0], [1], [0, 0, 1, 1], [], []>} : vector<8x32xf32>, vector<32x128xf32>, vector<8x128xf32> -> vector<8x128xf32>
    %cst_76 = arith.constant dense<0.000000e+00> : vector<8x128xf32>
    %236 = tpu.matmul %202, %14, %cst_76 {dimension_numbers = #tpu.dot_dimension_numbers<[1], [0], [0], [1], [0, 0, 1, 1], [], []>} : vector<8x32xf32>, vector<32x128xf32>, vector<8x128xf32> -> vector<8x128xf32>
    %237 = arith.addf %235, %236 : vector<8x128xf32>
    %238 = vector.broadcast %15 : vector<1x128xf32> to vector<8x128xf32>
    %239 = arith.addf %237, %238 : vector<8x128xf32>
    %240 = vector.extract_strided_slice %239 {offsets = [0, 0], sizes = [8, 32], strides = [1, 1]} : vector<8x128xf32> to vector<8x32xf32>
    %241 = arith.negf %240 : vector<8x32xf32>
    %242 = math.exp %241 : vector<8x32xf32>
    %cst_77 = arith.constant 1.000000e+00 : f32
    %243 = vector.broadcast %cst_77 : f32 to vector<8x32xf32>
    %244 = arith.addf %243, %242 : vector<8x32xf32>
    %245 = arith.divf %243, %244 : vector<8x32xf32>
    %246 = vector.extract_strided_slice %239 {offsets = [0, 32], sizes = [8, 32], strides = [1, 1]} : vector<8x128xf32> to vector<8x32xf32>
    %247 = arith.negf %246 : vector<8x32xf32>
    %248 = math.exp %247 : vector<8x32xf32>
    %cst_78 = arith.constant 1.000000e+00 : f32
    %249 = vector.broadcast %cst_78 : f32 to vector<8x32xf32>
    %250 = arith.addf %249, %248 : vector<8x32xf32>
    %251 = arith.divf %249, %250 : vector<8x32xf32>
    %252 = vector.extract_strided_slice %239 {offsets = [0, 64], sizes = [8, 32], strides = [1, 1]} : vector<8x128xf32> to vector<8x32xf32>
    %253 = math.tanh %252 : vector<8x32xf32>
    %254 = vector.extract_strided_slice %239 {offsets = [0, 96], sizes = [8, 32], strides = [1, 1]} : vector<8x128xf32> to vector<8x32xf32>
    %255 = arith.negf %254 : vector<8x32xf32>
    %256 = math.exp %255 : vector<8x32xf32>
    %cst_79 = arith.constant 1.000000e+00 : f32
    %257 = vector.broadcast %cst_79 : f32 to vector<8x32xf32>
    %258 = arith.addf %257, %256 : vector<8x32xf32>
    %259 = arith.divf %257, %258 : vector<8x32xf32>
    %260 = arith.mulf %251, %200 : vector<8x32xf32>
    %261 = arith.mulf %245, %253 : vector<8x32xf32>
    %262 = arith.addf %260, %261 : vector<8x32xf32>
    %263 = math.tanh %262 : vector<8x32xf32>
    %264 = arith.mulf %259, %263 : vector<8x32xf32>
    %c0_80 = arith.constant 0 : index
    %c3_81 = arith.constant 3 : index
    %c0_82 = arith.constant 0 : index
    %265 = vector.load %arg9[%c0_80, %c3_81, %c0_82] : memref<8x8x32xf32, #tpu.memory_space<vmem>>, vector<8x1x32xf32>
    %266 = vector.shape_cast %265 : vector<8x1x32xf32> to vector<8x32xf32>
    %267 = vector.shape_cast %264 : vector<8x32xf32> to vector<8x1x32xf32>
    tpu.vector_store %arg9[%c0_80, %c3_81, %c0_82], %267 {strides = array<i32>} : memref<8x8x32xf32, #tpu.memory_space<vmem>>, vector<8x1x32xf32>,
    %c0_83 = arith.constant 0 : index
    %c4 = arith.constant 4 : index
    %c0_84 = arith.constant 0 : index
    %268 = vector.load %arg10[%c0_83, %c4, %c0_84] : memref<8x8x128xf32, #tpu.memory_space<vmem>>, vector<8x1x128xf32>
    %269 = vector.shape_cast %268 : vector<8x1x128xf32> to vector<8x128xf32>
    %cst_85 = arith.constant dense<0.000000e+00> : vector<8x128xf32>
    %270 = tpu.matmul %234, %12, %cst_85 {dimension_numbers = #tpu.dot_dimension_numbers<[1], [0], [0], [1], [0, 0, 1, 1], [], []>} : vector<8x32xf32>, vector<32x128xf32>, vector<8x128xf32> -> vector<8x128xf32>
    %271 = arith.addf %269, %270 : vector<8x128xf32>
    %272 = vector.extract_strided_slice %271 {offsets = [0, 0], sizes = [8, 32], strides = [1, 1]} : vector<8x128xf32> to vector<8x32xf32>
    %273 = arith.negf %272 : vector<8x32xf32>
    %274 = math.exp %273 : vector<8x32xf32>
    %cst_86 = arith.constant 1.000000e+00 : f32
    %275 = vector.broadcast %cst_86 : f32 to vector<8x32xf32>
    %276 = arith.addf %275, %274 : vector<8x32xf32>
    %277 = arith.divf %275, %276 : vector<8x32xf32>
    %278 = vector.extract_strided_slice %271 {offsets = [0, 32], sizes = [8, 32], strides = [1, 1]} : vector<8x128xf32> to vector<8x32xf32>
    %279 = arith.negf %278 : vector<8x32xf32>
    %280 = math.exp %279 : vector<8x32xf32>
    %cst_87 = arith.constant 1.000000e+00 : f32
    %281 = vector.broadcast %cst_87 : f32 to vector<8x32xf32>
    %282 = arith.addf %281, %280 : vector<8x32xf32>
    %283 = arith.divf %281, %282 : vector<8x32xf32>
    %284 = vector.extract_strided_slice %271 {offsets = [0, 64], sizes = [8, 32], strides = [1, 1]} : vector<8x128xf32> to vector<8x32xf32>
    %285 = math.tanh %284 : vector<8x32xf32>
    %286 = vector.extract_strided_slice %271 {offsets = [0, 96], sizes = [8, 32], strides = [1, 1]} : vector<8x128xf32> to vector<8x32xf32>
    %287 = arith.negf %286 : vector<8x32xf32>
    %288 = math.exp %287 : vector<8x32xf32>
    %cst_88 = arith.constant 1.000000e+00 : f32
    %289 = vector.broadcast %cst_88 : f32 to vector<8x32xf32>
    %290 = arith.addf %289, %288 : vector<8x32xf32>
    %291 = arith.divf %289, %290 : vector<8x32xf32>
    %292 = arith.mulf %283, %232 : vector<8x32xf32>
    %293 = arith.mulf %277, %285 : vector<8x32xf32>
    %294 = arith.addf %292, %293 : vector<8x32xf32>
    %295 = math.tanh %294 : vector<8x32xf32>
    %296 = arith.mulf %291, %295 : vector<8x32xf32>
    %cst_89 = arith.constant dense<0.000000e+00> : vector<8x128xf32>
    %297 = tpu.matmul %296, %13, %cst_89 {dimension_numbers = #tpu.dot_dimension_numbers<[1], [0], [0], [1], [0, 0, 1, 1], [], []>} : vector<8x32xf32>, vector<32x128xf32>, vector<8x128xf32> -> vector<8x128xf32>
    %cst_90 = arith.constant dense<0.000000e+00> : vector<8x128xf32>
    %298 = tpu.matmul %264, %14, %cst_90 {dimension_numbers = #tpu.dot_dimension_numbers<[1], [0], [0], [1], [0, 0, 1, 1], [], []>} : vector<8x32xf32>, vector<32x128xf32>, vector<8x128xf32> -> vector<8x128xf32>
    %299 = arith.addf %297, %298 : vector<8x128xf32>
    %300 = vector.broadcast %15 : vector<1x128xf32> to vector<8x128xf32>
    %301 = arith.addf %299, %300 : vector<8x128xf32>
    %302 = vector.extract_strided_slice %301 {offsets = [0, 0], sizes = [8, 32], strides = [1, 1]} : vector<8x128xf32> to vector<8x32xf32>
    %303 = arith.negf %302 : vector<8x32xf32>
    %304 = math.exp %303 : vector<8x32xf32>
    %cst_91 = arith.constant 1.000000e+00 : f32
    %305 = vector.broadcast %cst_91 : f32 to vector<8x32xf32>
    %306 = arith.addf %305, %304 : vector<8x32xf32>
    %307 = arith.divf %305, %306 : vector<8x32xf32>
    %308 = vector.extract_strided_slice %301 {offsets = [0, 32], sizes = [8, 32], strides = [1, 1]} : vector<8x128xf32> to vector<8x32xf32>
    %309 = arith.negf %308 : vector<8x32xf32>
    %310 = math.exp %309 : vector<8x32xf32>
    %cst_92 = arith.constant 1.000000e+00 : f32
    %311 = vector.broadcast %cst_92 : f32 to vector<8x32xf32>
    %312 = arith.addf %311, %310 : vector<8x32xf32>
    %313 = arith.divf %311, %312 : vector<8x32xf32>
    %314 = vector.extract_strided_slice %301 {offsets = [0, 64], sizes = [8, 32], strides = [1, 1]} : vector<8x128xf32> to vector<8x32xf32>
    %315 = math.tanh %314 : vector<8x32xf32>
    %316 = vector.extract_strided_slice %301 {offsets = [0, 96], sizes = [8, 32], strides = [1, 1]} : vector<8x128xf32> to vector<8x32xf32>
    %317 = arith.negf %316 : vector<8x32xf32>
    %318 = math.exp %317 : vector<8x32xf32>
    %cst_93 = arith.constant 1.000000e+00 : f32
    %319 = vector.broadcast %cst_93 : f32 to vector<8x32xf32>
    %320 = arith.addf %319, %318 : vector<8x32xf32>
    %321 = arith.divf %319, %320 : vector<8x32xf32>
    %322 = arith.mulf %313, %262 : vector<8x32xf32>
    %323 = arith.mulf %307, %315 : vector<8x32xf32>
    %324 = arith.addf %322, %323 : vector<8x32xf32>
    %325 = math.tanh %324 : vector<8x32xf32>
    %326 = arith.mulf %321, %325 : vector<8x32xf32>
    %c0_94 = arith.constant 0 : index
    %c4_95 = arith.constant 4 : index
    %c0_96 = arith.constant 0 : index
    %327 = vector.load %arg9[%c0_94, %c4_95, %c0_96] : memref<8x8x32xf32, #tpu.memory_space<vmem>>, vector<8x1x32xf32>
    %328 = vector.shape_cast %327 : vector<8x1x32xf32> to vector<8x32xf32>
    %329 = vector.shape_cast %326 : vector<8x32xf32> to vector<8x1x32xf32>
    tpu.vector_store %arg9[%c0_94, %c4_95, %c0_96], %329 {strides = array<i32>} : memref<8x8x32xf32, #tpu.memory_space<vmem>>, vector<8x1x32xf32>,
    %c0_97 = arith.constant 0 : index
    %c5 = arith.constant 5 : index
    %c0_98 = arith.constant 0 : index
    %330 = vector.load %arg10[%c0_97, %c5, %c0_98] : memref<8x8x128xf32, #tpu.memory_space<vmem>>, vector<8x1x128xf32>
    %331 = vector.shape_cast %330 : vector<8x1x128xf32> to vector<8x128xf32>
    %cst_99 = arith.constant dense<0.000000e+00> : vector<8x128xf32>
    %332 = tpu.matmul %296, %12, %cst_99 {dimension_numbers = #tpu.dot_dimension_numbers<[1], [0], [0], [1], [0, 0, 1, 1], [], []>} : vector<8x32xf32>, vector<32x128xf32>, vector<8x128xf32> -> vector<8x128xf32>
    %333 = arith.addf %331, %332 : vector<8x128xf32>
    %334 = vector.extract_strided_slice %333 {offsets = [0, 0], sizes = [8, 32], strides = [1, 1]} : vector<8x128xf32> to vector<8x32xf32>
    %335 = arith.negf %334 : vector<8x32xf32>
    %336 = math.exp %335 : vector<8x32xf32>
    %cst_100 = arith.constant 1.000000e+00 : f32
    %337 = vector.broadcast %cst_100 : f32 to vector<8x32xf32>
    %338 = arith.addf %337, %336 : vector<8x32xf32>
    %339 = arith.divf %337, %338 : vector<8x32xf32>
    %340 = vector.extract_strided_slice %333 {offsets = [0, 32], sizes = [8, 32], strides = [1, 1]} : vector<8x128xf32> to vector<8x32xf32>
    %341 = arith.negf %340 : vector<8x32xf32>
    %342 = math.exp %341 : vector<8x32xf32>
    %cst_101 = arith.constant 1.000000e+00 : f32
    %343 = vector.broadcast %cst_101 : f32 to vector<8x32xf32>
    %344 = arith.addf %343, %342 : vector<8x32xf32>
    %345 = arith.divf %343, %344 : vector<8x32xf32>
    %346 = vector.extract_strided_slice %333 {offsets = [0, 64], sizes = [8, 32], strides = [1, 1]} : vector<8x128xf32> to vector<8x32xf32>
    %347 = math.tanh %346 : vector<8x32xf32>
    %348 = vector.extract_strided_slice %333 {offsets = [0, 96], sizes = [8, 32], strides = [1, 1]} : vector<8x128xf32> to vector<8x32xf32>
    %349 = arith.negf %348 : vector<8x32xf32>
    %350 = math.exp %349 : vector<8x32xf32>
    %cst_102 = arith.constant 1.000000e+00 : f32
    %351 = vector.broadcast %cst_102 : f32 to vector<8x32xf32>
    %352 = arith.addf %351, %350 : vector<8x32xf32>
    %353 = arith.divf %351, %352 : vector<8x32xf32>
    %354 = arith.mulf %345, %294 : vector<8x32xf32>
    %355 = arith.mulf %339, %347 : vector<8x32xf32>
    %356 = arith.addf %354, %355 : vector<8x32xf32>
    %357 = math.tanh %356 : vector<8x32xf32>
    %358 = arith.mulf %353, %357 : vector<8x32xf32>
    %cst_103 = arith.constant dense<0.000000e+00> : vector<8x128xf32>
    %359 = tpu.matmul %358, %13, %cst_103 {dimension_numbers = #tpu.dot_dimension_numbers<[1], [0], [0], [1], [0, 0, 1, 1], [], []>} : vector<8x32xf32>, vector<32x128xf32>, vector<8x128xf32> -> vector<8x128xf32>
    %cst_104 = arith.constant dense<0.000000e+00> : vector<8x128xf32>
    %360 = tpu.matmul %326, %14, %cst_104 {dimension_numbers = #tpu.dot_dimension_numbers<[1], [0], [0], [1], [0, 0, 1, 1], [], []>} : vector<8x32xf32>, vector<32x128xf32>, vector<8x128xf32> -> vector<8x128xf32>
    %361 = arith.addf %359, %360 : vector<8x128xf32>
    %362 = vector.broadcast %15 : vector<1x128xf32> to vector<8x128xf32>
    %363 = arith.addf %361, %362 : vector<8x128xf32>
    %364 = vector.extract_strided_slice %363 {offsets = [0, 0], sizes = [8, 32], strides = [1, 1]} : vector<8x128xf32> to vector<8x32xf32>
    %365 = arith.negf %364 : vector<8x32xf32>
    %366 = math.exp %365 : vector<8x32xf32>
    %cst_105 = arith.constant 1.000000e+00 : f32
    %367 = vector.broadcast %cst_105 : f32 to vector<8x32xf32>
    %368 = arith.addf %367, %366 : vector<8x32xf32>
    %369 = arith.divf %367, %368 : vector<8x32xf32>
    %370 = vector.extract_strided_slice %363 {offsets = [0, 32], sizes = [8, 32], strides = [1, 1]} : vector<8x128xf32> to vector<8x32xf32>
    %371 = arith.negf %370 : vector<8x32xf32>
    %372 = math.exp %371 : vector<8x32xf32>
    %cst_106 = arith.constant 1.000000e+00 : f32
    %373 = vector.broadcast %cst_106 : f32 to vector<8x32xf32>
    %374 = arith.addf %373, %372 : vector<8x32xf32>
    %375 = arith.divf %373, %374 : vector<8x32xf32>
    %376 = vector.extract_strided_slice %363 {offsets = [0, 64], sizes = [8, 32], strides = [1, 1]} : vector<8x128xf32> to vector<8x32xf32>
    %377 = math.tanh %376 : vector<8x32xf32>
    %378 = vector.extract_strided_slice %363 {offsets = [0, 96], sizes = [8, 32], strides = [1, 1]} : vector<8x128xf32> to vector<8x32xf32>
    %379 = arith.negf %378 : vector<8x32xf32>
    %380 = math.exp %379 : vector<8x32xf32>
    %cst_107 = arith.constant 1.000000e+00 : f32
    %381 = vector.broadcast %cst_107 : f32 to vector<8x32xf32>
    %382 = arith.addf %381, %380 : vector<8x32xf32>
    %383 = arith.divf %381, %382 : vector<8x32xf32>
    %384 = arith.mulf %375, %324 : vector<8x32xf32>
    %385 = arith.mulf %369, %377 : vector<8x32xf32>
    %386 = arith.addf %384, %385 : vector<8x32xf32>
    %387 = math.tanh %386 : vector<8x32xf32>
    %388 = arith.mulf %383, %387 : vector<8x32xf32>
    %c0_108 = arith.constant 0 : index
    %c5_109 = arith.constant 5 : index
    %c0_110 = arith.constant 0 : index
    %389 = vector.load %arg9[%c0_108, %c5_109, %c0_110] : memref<8x8x32xf32, #tpu.memory_space<vmem>>, vector<8x1x32xf32>
    %390 = vector.shape_cast %389 : vector<8x1x32xf32> to vector<8x32xf32>
    %391 = vector.shape_cast %388 : vector<8x32xf32> to vector<8x1x32xf32>
    tpu.vector_store %arg9[%c0_108, %c5_109, %c0_110], %391 {strides = array<i32>} : memref<8x8x32xf32, #tpu.memory_space<vmem>>, vector<8x1x32xf32>,
    %c0_111 = arith.constant 0 : index
    %c6 = arith.constant 6 : index
    %c0_112 = arith.constant 0 : index
    %392 = vector.load %arg10[%c0_111, %c6, %c0_112] : memref<8x8x128xf32, #tpu.memory_space<vmem>>, vector<8x1x128xf32>
    %393 = vector.shape_cast %392 : vector<8x1x128xf32> to vector<8x128xf32>
    %cst_113 = arith.constant dense<0.000000e+00> : vector<8x128xf32>
    %394 = tpu.matmul %358, %12, %cst_113 {dimension_numbers = #tpu.dot_dimension_numbers<[1], [0], [0], [1], [0, 0, 1, 1], [], []>} : vector<8x32xf32>, vector<32x128xf32>, vector<8x128xf32> -> vector<8x128xf32>
    %395 = arith.addf %393, %394 : vector<8x128xf32>
    %396 = vector.extract_strided_slice %395 {offsets = [0, 0], sizes = [8, 32], strides = [1, 1]} : vector<8x128xf32> to vector<8x32xf32>
    %397 = arith.negf %396 : vector<8x32xf32>
    %398 = math.exp %397 : vector<8x32xf32>
    %cst_114 = arith.constant 1.000000e+00 : f32
    %399 = vector.broadcast %cst_114 : f32 to vector<8x32xf32>
    %400 = arith.addf %399, %398 : vector<8x32xf32>
    %401 = arith.divf %399, %400 : vector<8x32xf32>
    %402 = vector.extract_strided_slice %395 {offsets = [0, 32], sizes = [8, 32], strides = [1, 1]} : vector<8x128xf32> to vector<8x32xf32>
    %403 = arith.negf %402 : vector<8x32xf32>
    %404 = math.exp %403 : vector<8x32xf32>
    %cst_115 = arith.constant 1.000000e+00 : f32
    %405 = vector.broadcast %cst_115 : f32 to vector<8x32xf32>
    %406 = arith.addf %405, %404 : vector<8x32xf32>
    %407 = arith.divf %405, %406 : vector<8x32xf32>
    %408 = vector.extract_strided_slice %395 {offsets = [0, 64], sizes = [8, 32], strides = [1, 1]} : vector<8x128xf32> to vector<8x32xf32>
    %409 = math.tanh %408 : vector<8x32xf32>
    %410 = vector.extract_strided_slice %395 {offsets = [0, 96], sizes = [8, 32], strides = [1, 1]} : vector<8x128xf32> to vector<8x32xf32>
    %411 = arith.negf %410 : vector<8x32xf32>
    %412 = math.exp %411 : vector<8x32xf32>
    %cst_116 = arith.constant 1.000000e+00 : f32
    %413 = vector.broadcast %cst_116 : f32 to vector<8x32xf32>
    %414 = arith.addf %413, %412 : vector<8x32xf32>
    %415 = arith.divf %413, %414 : vector<8x32xf32>
    %416 = arith.mulf %407, %356 : vector<8x32xf32>
    %417 = arith.mulf %401, %409 : vector<8x32xf32>
    %418 = arith.addf %416, %417 : vector<8x32xf32>
    %419 = math.tanh %418 : vector<8x32xf32>
    %420 = arith.mulf %415, %419 : vector<8x32xf32>
    %cst_117 = arith.constant dense<0.000000e+00> : vector<8x128xf32>
    %421 = tpu.matmul %420, %13, %cst_117 {dimension_numbers = #tpu.dot_dimension_numbers<[1], [0], [0], [1], [0, 0, 1, 1], [], []>} : vector<8x32xf32>, vector<32x128xf32>, vector<8x128xf32> -> vector<8x128xf32>
    %cst_118 = arith.constant dense<0.000000e+00> : vector<8x128xf32>
    %422 = tpu.matmul %388, %14, %cst_118 {dimension_numbers = #tpu.dot_dimension_numbers<[1], [0], [0], [1], [0, 0, 1, 1], [], []>} : vector<8x32xf32>, vector<32x128xf32>, vector<8x128xf32> -> vector<8x128xf32>
    %423 = arith.addf %421, %422 : vector<8x128xf32>
    %424 = vector.broadcast %15 : vector<1x128xf32> to vector<8x128xf32>
    %425 = arith.addf %423, %424 : vector<8x128xf32>
    %426 = vector.extract_strided_slice %425 {offsets = [0, 0], sizes = [8, 32], strides = [1, 1]} : vector<8x128xf32> to vector<8x32xf32>
    %427 = arith.negf %426 : vector<8x32xf32>
    %428 = math.exp %427 : vector<8x32xf32>
    %cst_119 = arith.constant 1.000000e+00 : f32
    %429 = vector.broadcast %cst_119 : f32 to vector<8x32xf32>
    %430 = arith.addf %429, %428 : vector<8x32xf32>
    %431 = arith.divf %429, %430 : vector<8x32xf32>
    %432 = vector.extract_strided_slice %425 {offsets = [0, 32], sizes = [8, 32], strides = [1, 1]} : vector<8x128xf32> to vector<8x32xf32>
    %433 = arith.negf %432 : vector<8x32xf32>
    %434 = math.exp %433 : vector<8x32xf32>
    %cst_120 = arith.constant 1.000000e+00 : f32
    %435 = vector.broadcast %cst_120 : f32 to vector<8x32xf32>
    %436 = arith.addf %435, %434 : vector<8x32xf32>
    %437 = arith.divf %435, %436 : vector<8x32xf32>
    %438 = vector.extract_strided_slice %425 {offsets = [0, 64], sizes = [8, 32], strides = [1, 1]} : vector<8x128xf32> to vector<8x32xf32>
    %439 = math.tanh %438 : vector<8x32xf32>
    %440 = vector.extract_strided_slice %425 {offsets = [0, 96], sizes = [8, 32], strides = [1, 1]} : vector<8x128xf32> to vector<8x32xf32>
    %441 = arith.negf %440 : vector<8x32xf32>
    %442 = math.exp %441 : vector<8x32xf32>
    %cst_121 = arith.constant 1.000000e+00 : f32
    %443 = vector.broadcast %cst_121 : f32 to vector<8x32xf32>
    %444 = arith.addf %443, %442 : vector<8x32xf32>
    %445 = arith.divf %443, %444 : vector<8x32xf32>
    %446 = arith.mulf %437, %386 : vector<8x32xf32>
    %447 = arith.mulf %431, %439 : vector<8x32xf32>
    %448 = arith.addf %446, %447 : vector<8x32xf32>
    %449 = math.tanh %448 : vector<8x32xf32>
    %450 = arith.mulf %445, %449 : vector<8x32xf32>
    %c0_122 = arith.constant 0 : index
    %c6_123 = arith.constant 6 : index
    %c0_124 = arith.constant 0 : index
    %451 = vector.load %arg9[%c0_122, %c6_123, %c0_124] : memref<8x8x32xf32, #tpu.memory_space<vmem>>, vector<8x1x32xf32>
    %452 = vector.shape_cast %451 : vector<8x1x32xf32> to vector<8x32xf32>
    %453 = vector.shape_cast %450 : vector<8x32xf32> to vector<8x1x32xf32>
    tpu.vector_store %arg9[%c0_122, %c6_123, %c0_124], %453 {strides = array<i32>} : memref<8x8x32xf32, #tpu.memory_space<vmem>>, vector<8x1x32xf32>,
    %c0_125 = arith.constant 0 : index
    %c7 = arith.constant 7 : index
    %c0_126 = arith.constant 0 : index
    %454 = vector.load %arg10[%c0_125, %c7, %c0_126] : memref<8x8x128xf32, #tpu.memory_space<vmem>>, vector<8x1x128xf32>
    %455 = vector.shape_cast %454 : vector<8x1x128xf32> to vector<8x128xf32>
    %cst_127 = arith.constant dense<0.000000e+00> : vector<8x128xf32>
    %456 = tpu.matmul %420, %12, %cst_127 {dimension_numbers = #tpu.dot_dimension_numbers<[1], [0], [0], [1], [0, 0, 1, 1], [], []>} : vector<8x32xf32>, vector<32x128xf32>, vector<8x128xf32> -> vector<8x128xf32>
    %457 = arith.addf %455, %456 : vector<8x128xf32>
    %458 = vector.extract_strided_slice %457 {offsets = [0, 0], sizes = [8, 32], strides = [1, 1]} : vector<8x128xf32> to vector<8x32xf32>
    %459 = arith.negf %458 : vector<8x32xf32>
    %460 = math.exp %459 : vector<8x32xf32>
    %cst_128 = arith.constant 1.000000e+00 : f32
    %461 = vector.broadcast %cst_128 : f32 to vector<8x32xf32>
    %462 = arith.addf %461, %460 : vector<8x32xf32>
    %463 = arith.divf %461, %462 : vector<8x32xf32>
    %464 = vector.extract_strided_slice %457 {offsets = [0, 32], sizes = [8, 32], strides = [1, 1]} : vector<8x128xf32> to vector<8x32xf32>
    %465 = arith.negf %464 : vector<8x32xf32>
    %466 = math.exp %465 : vector<8x32xf32>
    %cst_129 = arith.constant 1.000000e+00 : f32
    %467 = vector.broadcast %cst_129 : f32 to vector<8x32xf32>
    %468 = arith.addf %467, %466 : vector<8x32xf32>
    %469 = arith.divf %467, %468 : vector<8x32xf32>
    %470 = vector.extract_strided_slice %457 {offsets = [0, 64], sizes = [8, 32], strides = [1, 1]} : vector<8x128xf32> to vector<8x32xf32>
    %471 = math.tanh %470 : vector<8x32xf32>
    %472 = vector.extract_strided_slice %457 {offsets = [0, 96], sizes = [8, 32], strides = [1, 1]} : vector<8x128xf32> to vector<8x32xf32>
    %473 = arith.negf %472 : vector<8x32xf32>
    %474 = math.exp %473 : vector<8x32xf32>
    %cst_130 = arith.constant 1.000000e+00 : f32
    %475 = vector.broadcast %cst_130 : f32 to vector<8x32xf32>
    %476 = arith.addf %475, %474 : vector<8x32xf32>
    %477 = arith.divf %475, %476 : vector<8x32xf32>
    %478 = arith.mulf %469, %418 : vector<8x32xf32>
    %479 = arith.mulf %463, %471 : vector<8x32xf32>
    %480 = arith.addf %478, %479 : vector<8x32xf32>
    %481 = math.tanh %480 : vector<8x32xf32>
    %482 = arith.mulf %477, %481 : vector<8x32xf32>
    %cst_131 = arith.constant dense<0.000000e+00> : vector<8x128xf32>
    %483 = tpu.matmul %482, %13, %cst_131 {dimension_numbers = #tpu.dot_dimension_numbers<[1], [0], [0], [1], [0, 0, 1, 1], [], []>} : vector<8x32xf32>, vector<32x128xf32>, vector<8x128xf32> -> vector<8x128xf32>
    %cst_132 = arith.constant dense<0.000000e+00> : vector<8x128xf32>
    %484 = tpu.matmul %450, %14, %cst_132 {dimension_numbers = #tpu.dot_dimension_numbers<[1], [0], [0], [1], [0, 0, 1, 1], [], []>} : vector<8x32xf32>, vector<32x128xf32>, vector<8x128xf32> -> vector<8x128xf32>
    %485 = arith.addf %483, %484 : vector<8x128xf32>
    %486 = vector.broadcast %15 : vector<1x128xf32> to vector<8x128xf32>
    %487 = arith.addf %485, %486 : vector<8x128xf32>
    %488 = vector.extract_strided_slice %487 {offsets = [0, 0], sizes = [8, 32], strides = [1, 1]} : vector<8x128xf32> to vector<8x32xf32>
    %489 = arith.negf %488 : vector<8x32xf32>
    %490 = math.exp %489 : vector<8x32xf32>
    %cst_133 = arith.constant 1.000000e+00 : f32
    %491 = vector.broadcast %cst_133 : f32 to vector<8x32xf32>
    %492 = arith.addf %491, %490 : vector<8x32xf32>
    %493 = arith.divf %491, %492 : vector<8x32xf32>
    %494 = vector.extract_strided_slice %487 {offsets = [0, 32], sizes = [8, 32], strides = [1, 1]} : vector<8x128xf32> to vector<8x32xf32>
    %495 = arith.negf %494 : vector<8x32xf32>
    %496 = math.exp %495 : vector<8x32xf32>
    %cst_134 = arith.constant 1.000000e+00 : f32
    %497 = vector.broadcast %cst_134 : f32 to vector<8x32xf32>
    %498 = arith.addf %497, %496 : vector<8x32xf32>
    %499 = arith.divf %497, %498 : vector<8x32xf32>
    %500 = vector.extract_strided_slice %487 {offsets = [0, 64], sizes = [8, 32], strides = [1, 1]} : vector<8x128xf32> to vector<8x32xf32>
    %501 = math.tanh %500 : vector<8x32xf32>
    %502 = vector.extract_strided_slice %487 {offsets = [0, 96], sizes = [8, 32], strides = [1, 1]} : vector<8x128xf32> to vector<8x32xf32>
    %503 = arith.negf %502 : vector<8x32xf32>
    %504 = math.exp %503 : vector<8x32xf32>
    %cst_135 = arith.constant 1.000000e+00 : f32
    %505 = vector.broadcast %cst_135 : f32 to vector<8x32xf32>
    %506 = arith.addf %505, %504 : vector<8x32xf32>
    %507 = arith.divf %505, %506 : vector<8x32xf32>
    %508 = arith.mulf %499, %448 : vector<8x32xf32>
    %509 = arith.mulf %493, %501 : vector<8x32xf32>
    %510 = arith.addf %508, %509 : vector<8x32xf32>
    %511 = math.tanh %510 : vector<8x32xf32>
    %512 = arith.mulf %507, %511 : vector<8x32xf32>
    %c0_136 = arith.constant 0 : index
    %c7_137 = arith.constant 7 : index
    %c0_138 = arith.constant 0 : index
    %513 = vector.load %arg9[%c0_136, %c7_137, %c0_138] : memref<8x8x32xf32, #tpu.memory_space<vmem>>, vector<8x1x32xf32>
    %514 = vector.shape_cast %513 : vector<8x1x32xf32> to vector<8x32xf32>
    %515 = vector.shape_cast %512 : vector<8x32xf32> to vector<8x1x32xf32>
    tpu.vector_store %arg9[%c0_136, %c7_137, %c0_138], %515 {strides = array<i32>} : memref<8x8x32xf32, #tpu.memory_space<vmem>>, vector<8x1x32xf32>,
    %c0_139 = arith.constant 0 : index
    %c0_140 = arith.constant 0 : index
    %516 = vector.load %arg11[%c0_139, %c0_140] : memref<8x32xf32, #tpu.memory_space<vmem>>, vector<8x32xf32>
    tpu.vector_store %arg11[%c0_139, %c0_140], %482 {strides = array<i32>} : memref<8x32xf32, #tpu.memory_space<vmem>>, vector<8x32xf32>,
    %c0_141 = arith.constant 0 : index
    %c0_142 = arith.constant 0 : index
    %517 = vector.load %arg12[%c0_141, %c0_142] : memref<8x32xf32, #tpu.memory_space<vmem>>, vector<8x32xf32>
    tpu.vector_store %arg12[%c0_141, %c0_142], %480 {strides = array<i32>} : memref<8x32xf32, #tpu.memory_space<vmem>>, vector<8x32xf32>,
    %c0_143 = arith.constant 0 : index
    %c0_144 = arith.constant 0 : index
    %518 = vector.load %arg13[%c0_143, %c0_144] : memref<8x32xf32, #tpu.memory_space<vmem>>, vector<8x32xf32>
    tpu.vector_store %arg13[%c0_143, %c0_144], %512 {strides = array<i32>} : memref<8x32xf32, #tpu.memory_space<vmem>>, vector<8x32xf32>,
    %c0_145 = arith.constant 0 : index
    %c0_146 = arith.constant 0 : index
    %519 = vector.load %arg14[%c0_145, %c0_146] : memref<8x32xf32, #tpu.memory_space<vmem>>, vector<8x32xf32>
    tpu.vector_store %arg14[%c0_145, %c0_146], %510 {strides = array<i32>} : memref<8x32xf32, #tpu.memory_space<vmem>>, vector<8x32xf32>,
    return
  }
  func.func @transform_0(%arg0: i32, %arg1: i32) -> (i32, i32, i32) {
    %c0_i32 = arith.constant 0 : i32
    %c0_i32_0 = arith.constant 0 : i32
    return %arg0, %arg1, %c0_i32 : i32, i32, i32
  }
  func.func @transform_1(%arg0: i32, %arg1: i32) -> (i32, i32) {
    %c0_i32 = arith.constant 0 : i32
    %c0_i32_0 = arith.constant 0 : i32
    %c0_i32_1 = arith.constant 0 : i32
    return %c0_i32, %c0_i32_0 : i32, i32
  }
  func.func @transform_2(%arg0: i32, %arg1: i32) -> (i32, i32) {
    %c0_i32 = arith.constant 0 : i32
    %c0_i32_0 = arith.constant 0 : i32
    %c0_i32_1 = arith.constant 0 : i32
    return %c0_i32, %c0_i32_0 : i32, i32
  }
  func.func @transform_3(%arg0: i32, %arg1: i32) -> (i32, i32) {
    %c0_i32 = arith.constant 0 : i32
    %c0_i32_0 = arith.constant 0 : i32
    %c0_i32_1 = arith.constant 0 : i32
    return %c0_i32, %c0_i32_0 : i32, i32
  }
  func.func @transform_4(%arg0: i32, %arg1: i32) -> (i32, i32) {
    %c0_i32 = arith.constant 0 : i32
    %c0_i32_0 = arith.constant 0 : i32
    %c0_i32_1 = arith.constant 0 : i32
    return %c0_i32, %c0_i32_0 : i32, i32
  }
  func.func @transform_5(%arg0: i32, %arg1: i32) -> (i32, i32) {
    %c0_i32 = arith.constant 0 : i32
    %c0_i32_0 = arith.constant 0 : i32
    %c0_i32_1 = arith.constant 0 : i32
    return %c0_i32, %c0_i32_0 : i32, i32
  }
  func.func @transform_6(%arg0: i32, %arg1: i32) -> (i32, i32) {
    %c0_i32 = arith.constant 0 : i32
    %c0_i32_0 = arith.constant 0 : i32
    %c0_i32_1 = arith.constant 0 : i32
    return %c0_i32, %c0_i32_0 : i32, i32
  }
  func.func @transform_7(%arg0: i32, %arg1: i32) -> (i32, i32, i32) {
    %c0_i32 = arith.constant 0 : i32
    %c0_i32_0 = arith.constant 0 : i32
    return %arg0, %arg1, %c0_i32 : i32, i32, i32
  }
}

</mosaic_0001>

<bundles_post_ra>
// kernel: encoder_forward_pallas.1
= control target key start
LH: loop header
LB: loop body
LE: loop exit
PB: predicated region body
PF: predicated region fallthrough
CT: control target
= control target key end

     0   :  { %vm52_vm0 = vcmask 130048   ;;  %v6374_v3 = vmov 0.0|0.0   ;;  %vm6375_vm1 = vmmov 0   ;;  %v6376_v4 = vmov 0.0   ;;  %s6380_s26 = smov 96   ;;  %s8198_s1 = inlined_call_operand.vmem [shape: f32[16,128], index: 1, kind: input, shape index: {}]   ;;  %s8199_s0 = inlined_call_operand.vmem [shape: f32[8,8,16], index: 0, kind: input, shape index: {}]   ;;  %s8200_s2 = inlined_call_operand.vmem [shape: f32[32,128], index: 2, kind: input, shape index: {}]   ;;  %s8201_s3 = inlined_call_operand.vmem [shape: f32[1,128], index: 3, kind: input, shape index: {}]   ;;  %s8202_s5 = inlined_call_operand.vmem [shape: f32[32,128], index: 5, kind: input, shape index: {}]   ;;  %s8203_s4 = inlined_call_operand.vmem [shape: f32[32,128], index: 4, kind: input, shape index: {}]   ;;  %s8204_s6 = inlined_call_operand.vmem [shape: f32[1,128], index: 6, kind: input, shape index: {}]   ;;  %s8205_s7 = inlined_call_operand.vmem [shape: f32[8,8,32], index: 7, kind: output, shape index: {}]  }
   0x1   :  { %v43_v0 = vld [vmem:[%s8198_s1] sm:$0xff]  ;;  %v44_v1 = vld [vmem:[%s8198_s1 + $0x8] sm:$0xff]  ;;  %5645 = vmatprep.subr.bf16.mxu1 %v6374_v3  ;;  %5385 = vmatprep.mubr.msk.f32.mxu1 %vm6375_vm1, %v6376_v4  ;;  %vm30_vm2 = vcmask 261120   ;;  %v192_v9 = vld [vmem:[%s8200_s2 + $0x10] sm:$0xff]  ;;  %vm619_vm3 = vcmask 1041409   ;;  %vm622_vm4 = vcmask 1042434  }
   0x2   :  { %v35_v2 = vld [vmem:[%s8199_s0] sm:$0xff]  ;;  %v5641_v5 = vpack.c.bf16 %v44_v1, %v43_v0  ;;  %v191_v7 = vld [vmem:[%s8200_s2 + $0x8] sm:$0xff]  ;;  %31 = vst.msk [vmem:[#allocation3] sm:$0xff] %vm30_vm2, %v6376_v4  ;;  %32 = vst.msk [vmem:[#allocation4] sm:$0xff] %vm30_vm2, %v6376_v4  ;;  %vm625_vm5 = vcmask 1043459   ;;  %vm628_vm6 = vcmask 1044484  }
   0x3   :  { %5365 = vmatprep.mubr.msk.f32.mxu0 %vm52_vm0, %v35_v2  ;;  %v190_v6 = vld [vmem:[%s8200_s2] sm:$0xff]  ;;  %33 = vst.msk [vmem:[#allocation5] sm:$0xff] %vm30_vm2, %v6376_v4  ;;  %34 = vst.msk [vmem:[#allocation6] sm:$0xff] %vm30_vm2, %v6376_v4  ;;  %v193_v10 = vld [vmem:[%s8200_s2 + $0x18] sm:$0xff]  ;;  %vm631_vm7 = vcmask 1045509   ;;  %vm634_vm8 = vcmask 1046534  }
   0x4   :  { %v6448_v8 = vpack.c.bf16 %v191_v7, %v190_v6  ;;  %5642 = vmatprep.subr.bf16.mxu0 %v5641_v5  ;;  %v36_v11 = vld [vmem:[%s8199_s0 + $0x8] sm:$0xff]  ;;  %v6460_v12 = vpack.c.bf16 %v193_v10, %v192_v9  ;;  %v37_v13 = vld [vmem:[%s8199_s0 + $0x10] sm:$0xff]  ;;  %v38_v14 = vld [vmem:[%s8199_s0 + $0x18] sm:$0xff]  ;;  %vm637_vm9 = vcmask 1047559   ;;  %vm854_vm10 = vcmask 253952  }
   0x5   :  { %5644 = vmatpush3.bf16.msra.mxu0 %v5641_v5  ;;  %v39_v16 = vld [vmem:[%s8199_s0 + $0x20] sm:$0xff]  ;;  %v40_v17 = vld [vmem:[%s8199_s0 + $0x28] sm:$0xff]  ;;  %v41_v18 = vld [vmem:[%s8199_s0 + $0x30] sm:$0xff] }
   0x6   :  { %5647 = vmatpush3.bf16.msra.mxu1 %v6448_v8  ;;  %5657 = vmatprep.subr.bf16.mxu0 %v6374_v3  ;;  %v42_v19 = vld [vmem:[%s8199_s0 + $0x38] sm:$0xff]  ;;  %v5125_v20 = vld [vmem:[%s8201_s3] ss:$0 sm:$0xff]  ;;  %s6377_s0 = smov 64   ;;  %s6378_s3 = smov 32  }
   0x7   :  { %5648 = vmatprep.subr.bf16.mxu1 %v6374_v3 }
   0x8   :  { %5366 = vmatmul.mubr.msk.f32.vlgmr.msra.gmra.mrb[0].mxu0 %vm52_vm0, %v36_v11 }
   0x9   :  { %5368 = vmatprep.mubr.msk.f32.mxu0 %vm52_vm0, %v37_v13  ;;  %v203_v15 = vld [vmem:[#allocation3] sm:$0xff]  ;;  %v204_v6 = vld [vmem:[#allocation4] sm:$0xff] }
   0xa   :  { %5650 = vmatpush3.bf16.msra.mxu1 %v6460_v12  ;;  %v370_v10 = vrot.slane %v204_v6, 1  ;;  %v371_v11 = vrot.slane %v204_v6, 2  ;;  %v372_v13 = vrot.slane %v204_v6, 3 }
   0xb   :  { %5651 = vmatprep.subr.bf16.mxu1 %v6374_v3 }
   0xc   :  { %5369 = vmatmul.mubr.msk.f32.gmra.mrb[2].mxu0 %vm52_vm0, %v38_v14  ;;  %v375_v14 = vrot.slane %v204_v6, 6 }
   0xd   :  { %5386 = vmatmul.mubr.msk.f32.vlgmr.msra.gmra.mrb[0].mxu1 %vm30_vm2, %v203_v15  ;;  %5371 = vmatprep.mubr.msk.f32.mxu0 %vm52_vm0, %v39_v16  ;;  %v373_v15 = vrot.slane %v204_v6, 4  ;;  %v376_v16 = vrot.slane %v204_v6, 7 }
   0xe   :  { %5396 = vmatprep.mubr.msk.f32.mxu1 %vm6375_vm1, %v6376_v4 }
  0x10   :  { %5372 = vmatmul.mubr.msk.f32.gmra.mrb[4].mxu0 %vm52_vm0, %v40_v17  ;;  %v374_v17 = vrot.slane %v204_v6, 5 }
  0x11   :  { %5374 = vmatprep.mubr.msk.f32.mxu0 %vm52_vm0, %v41_v18 }
  0x14   :  { %5375 = vmatmul.mubr.msk.f32.gmra.mrb[6].mxu0 %vm52_vm0, %v42_v19 }
  0x15   :  { %5407 = vmatprep.mubr.msk.f32.mxu0 %vm6375_vm1, %v6376_v4 }
  0xdb   :  { %v5367_v21 = vpop.f32.mrb[0].mxu0 }
  0xdc   :  { %v149_v22 = vadd.f32 %v5367_v21, %v5125_v20  ;;  %v143_v23 = vpop.f32.mrb[1].mxu0 }
  0xdd   :  { %v144_v24 = vadd.f32 %v5125_v20, %v143_v23 }
  0xde   :  { %183 = vst [vmem:[#allocation2 + $0x8] sm:$0xff] %v149_v22 }
  0xdf   :  { %182 = vst [vmem:[#allocation2] sm:$0xff] %v144_v24  ;;  %v5370_v25 = vpop.f32.mrb[2].mxu0 }
  0xe0   :  { %v285_v26 = vpop.f32.mrb[0].mxu1  ;;  %v159_v27 = vadd.f32 %v5370_v25, %v5125_v20  ;;  %v153_v28 = vpop.f32.mrb[3].mxu0 }
  0xe1   :  { %v5387_v29 = vpop.f32.mrb[1].mxu1  ;;  %v154_v30 = vadd.f32 %v5125_v20, %v153_v28  ;;  %v290_v31 = vrot.slane %v285_v26, 1  ;;  %v292_v41 = vrot.slane %v285_v26, 3  ;;  %v291_v45 = vrot.slane %v285_v26, 2 }
  0xe2   :  { %185 = vst [vmem:[#allocation2 + $0x18] sm:$0xff] %v159_v27  ;;  %v294_v50 = vrot.slane %v285_v26, 5  ;;  %v293_v52 = vrot.slane %v285_v26, 4  ;;  %v296_v56 = vrot.slane %v285_v26, 7  ;;  %v295_v57 = vrot.slane %v285_v26, 6 }
  0xe3   :  { %184 = vst [vmem:[#allocation2 + $0x10] sm:$0xff] %v154_v30  ;;  %v5373_v32 = vpop.f32.mrb[4].mxu0 }
  0xe4   :  { %v169_v33 = vadd.f32 %v5373_v32, %v5125_v20  ;;  %v163_v34 = vpop.f32.mrb[5].mxu0 }
  0xe5   :  { %v164_v35 = vadd.f32 %v5125_v20, %v163_v34  ;;  %v208_v36 = vld [vmem:[#allocation2 + $0x8] sm:$0x1] }
  0xe6   :  { %187 = vst [vmem:[#allocation2 + $0x28] sm:$0xff] %v169_v33  ;;  %v6499_v37 = vadd.f32 %v290_v31, %v208_v36  ;;  %v207_v38 = vld [vmem:[#allocation2] sm:$0x1] }
  0xe7   :  { %186 = vst [vmem:[#allocation2 + $0x20] sm:$0xff] %v164_v35  ;;  %v5376_v39 = vpop.f32.mrb[6].mxu0  ;;  %v6501_v40 = vadd.f32 %v285_v26, %v207_v38 }
  0xe8   :  { %v179_v42 = vadd.f32 %v5376_v39, %v5125_v20  ;;  %v173_v43 = vpop.f32.mrb[7].mxu0  ;;  %5796 = vtanh.f32 %v6499_v37  ;;  %v5136_v18 = vmul.f32 -1.442695, %v6499_v37 }
  0xe9   :  { %v210_v44 = vld [vmem:[#allocation2 + $0x18] sm:$0x1]  ;;  %v174_v46 = vadd.f32 %v5125_v20, %v173_v43  ;;  %5798 = vtanh.f32 %v6501_v40  ;;  %v5135_v19 = vmul.f32 -1.442695, %v6501_v40 }
  0xea   :  { %v209_v47 = vld [vmem:[#allocation2 + $0x10] sm:$0x1]  ;;  %v308_v48 = vadd.f32 %v292_v41, %v210_v44  ;;  %189 = vst [vmem:[#allocation2 + $0x38] sm:$0xff] %v179_v42 }
  0xeb   :  { %v307_v49 = vadd.f32 %v291_v45, %v209_v47  ;;  %188 = vst [vmem:[#allocation2 + $0x30] sm:$0xff] %v174_v46 }
  0xec   :  { %5800 = vtanh.f32 %v308_v48  ;;  %v5138_v20 = vmul.f32 -1.442695, %v308_v48 }
  0xed   :  { %v212_v51 = vld [vmem:[#allocation2 + $0x28] sm:$0x1]  ;;  %5802 = vtanh.f32 %v307_v49  ;;  %v5137_v21 = vmul.f32 -1.442695, %v307_v49 }
  0xee   :  { %v310_v53 = vadd.f32 %v294_v50, %v212_v51  ;;  %v211_v54 = vld [vmem:[#allocation2 + $0x20] sm:$0x1] }
  0xef   :  { %v309_v55 = vadd.f32 %v293_v52, %v211_v54 }
  0xf0   :  { %5804 = vtanh.f32 %v310_v53  ;;  %v5140_v22 = vmul.f32 -1.442695, %v310_v53 }
  0xf1   :  { %5806 = vtanh.f32 %v309_v55  ;;  %v214_v58 = vld [vmem:[#allocation2 + $0x38] sm:$0x1]  ;;  %v5139_v23 = vmul.f32 -1.442695, %v309_v55 }
  0xf2   :  { %v5797_v59 = vpop.eup %5796  ;;  %v213_v60 = vld [vmem:[#allocation2 + $0x30] sm:$0x1]  ;;  %v312_v61 = vadd.f32 %v296_v56, %v214_v58 }
  0xf3   :  { %v5799_v62 = vpop.eup %5798  ;;  %419 = vrot.lane.b32.xlu0 %v5797_v59, %s6377_s0  ;;  %v311_v63 = vadd.f32 %v295_v57, %v213_v60 }
  0xf4   :  { %417 = vrot.lane.b32.xlu1 %v5799_v62, %s6377_s0  ;;  %5808 = vtanh.f32 %v312_v61  ;;  %v5142_v26 = vmul.f32 -1.442695, %v312_v61 }
  0xf5   :  { %5810 = vtanh.f32 %v311_v63  ;;  %v5141_v24 = vmul.f32 -1.442695, %v311_v63 }
  0xf6   :  { %v5801_v0 = vpop.eup %5800  ;;  %5812 = vpow2.f32 %v5136_v18 }
  0xf7   :  { %v5803_v1 = vpop.eup %5802  ;;  %5814 = vpow2.f32 %v5135_v19 }
  0xf8   :  { %421 = vrot.lane.b32.xlu0 %v5803_v1, %s6377_s0  ;;  %423 = vrot.lane.b32.xlu1 %v5801_v0, %s6377_s0  ;;  %5816 = vpow2.f32 %v5138_v20 }
  0xf9   :  { %5818 = vpow2.f32 %v5137_v21 }
  0xfa   :  { %v5805_v2 = vpop.eup %5804  ;;  %5820 = vpow2.f32 %v5140_v22 }
  0xfb   :  { %v5807_v5 = vpop.eup %5806  ;;  %5822 = vpow2.f32 %v5139_v23 }
  0xfc   :  { %425 = vrot.lane.b32.xlu0 %v5807_v5, %s6377_s0  ;;  %427 = vrot.lane.b32.xlu1 %v5805_v2, %s6377_s0  ;;  %5824 = vpow2.f32 %v5141_v24 }
  0xfd   :  { %5826 = vpow2.f32 %v5142_v26 }
  0xfe   :  { %v5809_v7 = vpop.eup %5808 }
  0xff   :  { %v5811_v9 = vpop.eup %5810 }
 0x100   :  { %429 = vrot.lane.b32.xlu0 %v5811_v9, %s6377_s0  ;;  %431 = vrot.lane.b32.xlu1 %v5809_v7, %s6377_s0  ;;  %v5813_v25 = vpop.eup %5812 }
 0x101   :  { %v338_v27 = vadd.f32 1.0, %v5813_v25  ;;  %v5815_v28 = vpop.eup %5814 }
 0x102   :  { %v5817_v29 = vpop.eup %5816  ;;  %v337_v30 = vadd.f32 1.0, %v5815_v28 }
 0x103   :  { %5828 = vrcp.f32 %v338_v27  ;;  %v5819_v31 = vpop.eup %5818  ;;  %v340_v32 = vadd.f32 1.0, %v5817_v29 }
 0x104   :  { %379 = vrot.lane.b32.xlu0 %v370_v10, %s6378_s3  ;;  %381 = vrot.lane.b32.xlu1 %v371_v11, %s6378_s3  ;;  %v5821_v33 = vpop.eup %5820  ;;  %5830 = vrcp.f32 %v337_v30  ;;  %v339_v34 = vadd.f32 1.0, %v5819_v31 }
 0x105   :  { %v5823_v35 = vpop.eup %5822  ;;  %5832 = vrcp.f32 %v340_v32  ;;  %v342_v36 = vadd.f32 1.0, %v5821_v33 }
 0x106   :  { %v5825_v37 = vpop.eup %5824  ;;  %5834 = vrcp.f32 %v339_v34  ;;  %v341_v38 = vadd.f32 1.0, %v5823_v35 }
 0x107   :  { %v5827_v39 = vpop.eup %5826  ;;  %5836 = vrcp.f32 %v342_v36  ;;  %v343_v40 = vadd.f32 1.0, %v5825_v37 }
 0x108   :  { %377 = vrot.lane.b32.xlu0 %v204_v6, %s6378_s3  ;;  %383 = vrot.lane.b32.xlu1 %v372_v13, %s6378_s3  ;;  %5838 = vrcp.f32 %v341_v38  ;;  %v344_v45 = vadd.f32 1.0, %v5827_v39 }
 0x109   :  { %5840 = vrcp.f32 %v343_v40 }
 0x10a   :  { %5842 = vrcp.f32 %v344_v45  ;;  %v199_v45 = vld [vmem:[%s8202_s5 + $0x8] sm:$0xff] }
 0x10c   :  { %389 = vrot.lane.b32.xlu0 %v375_v14, %s6378_s3  ;;  %385 = vrot.lane.b32.xlu1 %v373_v15, %s6378_s3 }
 0x10d   :  { %v6523_v41 = vpop.eup %5828 }
 0x10e   :  { %v6527_v46 = vpop.eup %5830 }
 0x10f   :  { %v6529_v47 = vpop.eup %5832 }
 0x110   :  { %391 = vrot.lane.b32.xlu0 %v376_v16, %s6378_s3  ;;  %387 = vrot.lane.b32.xlu1 %v374_v17, %s6378_s3  ;;  %v6534_v52 = vpop.eup %5834 }
 0x111   :  { %v6537_v53 = vpop.eup %5836 }
 0x112   :  { %v6542_v58 = vpop.eup %5838 }
 0x113   :  { %v6545_v59 = vpop.eup %5840 }
 0x114   :  { %v6551_v0 = vpop.eup %5842 }
 0x165   :  { %v420_v42 = vpop.permute.xlu0 %419 }
 0x166   :  { %v442_v43 = vmul.f32 %v6523_v41, %v420_v42  ;;  %v418_v44 = vpop.permute.xlu1 %417 }
 0x167   :  { %v441_v48 = vmul.f32 %v6527_v46, %v418_v44  ;;  %v198_v44 = vld [vmem:[%s8202_s5] sm:$0xff] }
 0x168   :  { %459 = vrot.lane.b32.xlu0 %v442_v43, %s6378_s3 }
 0x16a   :  { %v422_v49 = vpop.permute.xlu0 %421  ;;  %v424_v50 = vpop.permute.xlu1 %423 }
 0x16b   :  { %v444_v51 = vmul.f32 %v6529_v47, %v424_v50  ;;  %v443_v54 = vmul.f32 %v6534_v52, %v422_v49  ;;  %v6600_v50 = vpack.c.bf16 %v199_v45, %v198_v44 }
 0x16c   :  { %457 = vrot.lane.b32.xlu0 %v441_v48, %s6378_s3  ;;  %v194_v48 = vld [vmem:[%s8203_s4] sm:$0xff] }
 0x16d   :  { %463 = vrot.lane.b32.xlu1 %v444_v51, %s6378_s3  ;;  %v195_v51 = vld [vmem:[%s8203_s4 + $0x8] sm:$0xff]  ;;  %5653 = vmatpush3.bf16.msra.mxu1 %v6600_v50 }
 0x16e   :  { %v426_v55 = vpop.permute.xlu0 %425  ;;  %v428_v56 = vpop.permute.xlu1 %427  ;;  %5654 = vmatprep.subr.bf16.mxu1 %v6374_v3 }
 0x16f   :  { %v446_v57 = vmul.f32 %v6537_v53, %v428_v56  ;;  %v445_v61 = vmul.f32 %v6542_v58, %v426_v55  ;;  %v201_v55 = vld [vmem:[%s8202_s5 + $0x18] sm:$0xff]  ;;  %v6613_v56 = vpack.c.bf16 %v195_v51, %v194_v48  ;;  %v863_v48 = vld [vmem:[#allocation2 + $0x1] sm:$0x1] }
 0x170   :  { %461 = vrot.lane.b32.xlu0 %v443_v54, %s6378_s3  ;;  %v200_v54 = vld [vmem:[%s8202_s5 + $0x10] sm:$0xff] }
 0x171   :  { %467 = vrot.lane.b32.xlu1 %v446_v57, %s6378_s3  ;;  %v196_v57 = vld [vmem:[%s8203_s4 + $0x10] sm:$0xff]  ;;  %5659 = vmatpush3.bf16.msra.mxu0 %v6613_v56 }
 0x172   :  { %v430_v60 = vpop.permute.xlu0 %429  ;;  %v432_v63 = vpop.permute.xlu1 %431  ;;  %5660 = vmatprep.subr.bf16.mxu0 %v6374_v3 }
 0x173   :  { %v447_v62 = vmul.f32 %v6545_v59, %v430_v60  ;;  %v448_v1 = vmul.f32 %v6551_v0, %v432_v63  ;;  %v197_v60 = vld [vmem:[%s8203_s4 + $0x18] sm:$0xff] }
 0x174   :  { %v6626_v63 = vpack.c.bf16 %v197_v60, %v196_v57  ;;  %v865_v57 = vld [vmem:[#allocation2 + $0x11] sm:$0x1] }
 0x175   :  { %465 = vrot.lane.b32.xlu1 %v445_v61, %s6378_s3  ;;  %469 = vrot.lane.b32.xlu0 %v447_v62, %s6378_s3  ;;  %v6622_v61 = vpack.c.bf16 %v201_v55, %v200_v54  ;;  %v864_v55 = vld [vmem:[#allocation2 + $0x9] sm:$0x1] }
 0x176   :  { %v380_v2 = vpop.permute.xlu0 %379  ;;  %v382_v5 = vpop.permute.xlu1 %381  ;;  %5662 = vmatpush3.bf16.msra.mxu0 %v6626_v63 }
 0x177   :  { %v402_v13 = vmul.f32 %v6523_v41, %v380_v2  ;;  %v403_v23 = vmul.f32 %v6534_v52, %v382_v5  ;;  %5656 = vmatpush3.bf16.msra.mxu1 %v6622_v61  ;;  %v205_v2 = vld [vmem:[#allocation5] sm:$0xff]  ;;  %5669 = vmatprep.subr.bf16.mxu0 %v6374_v3 }
 0x178   :  { %5663 = vmatprep.subr.bf16.mxu1 %v6374_v3 }
 0x179   :  { %471 = vrot.lane.b32.xlu1 %v448_v1, %s6378_s3 }
 0x17a   :  { %v378_v6 = vpop.permute.xlu0 %377  ;;  %v384_v7 = vpop.permute.xlu1 %383  ;;  %5397 = vmatmul.mubr.msk.f32.vlgmr.msra.gmra.mrb[2].mxu1 %vm30_vm2, %v205_v2 }
 0x17b   :  { %v401_v17 = vmul.f32 %v6527_v46, %v378_v6  ;;  %v404_v18 = vmul.f32 %v6529_v47, %v384_v7  ;;  %5665 = vmatpush3.bf16.msra.mxu1 %v6448_v8  ;;  %5418 = vmatprep.mubr.msk.f32.mxu1 %vm6375_vm1, %v6376_v4 }
 0x17c   :  { %5666 = vmatprep.subr.bf16.mxu1 %v6374_v3 }
 0x17e   :  { %v390_v9 = vpop.permute.xlu0 %389  ;;  %v386_v10 = vpop.permute.xlu1 %385 }
 0x17f   :  { %v405_v29 = vmul.f32 %v6542_v58, %v386_v10  ;;  %v407_v31 = vmul.f32 %v6545_v59, %v390_v9  ;;  %5668 = vmatpush3.bf16.msra.mxu1 %v6460_v12 }
 0x180   :  { %5675 = vmatprep.subr.bf16.mxu1 %v6374_v3 }
 0x182   :  { %v392_v11 = vpop.permute.xlu0 %391  ;;  %v388_v15 = vpop.permute.xlu1 %387 }
 0x183   :  { %v406_v25 = vmul.f32 %v6537_v53, %v388_v15  ;;  %v408_v36 = vmul.f32 %v6551_v0, %v392_v11 }
 0x1da   :  { %v460_v14 = vpop.permute.xlu0 %459 }
 0x1db   :  { %v6556_v16 = vadd.f32 %v460_v14, %v402_v13 }
 0x1dd   :  { %5844 = vtanh.f32 %v6556_v16 }
 0x1de   :  { %v458_v19 = vpop.permute.xlu0 %457 }
 0x1df   :  { %v6561_v20 = vadd.f32 %v458_v19, %v401_v17  ;;  %v464_v21 = vpop.permute.xlu1 %463 }
 0x1e0   :  { %v6563_v22 = vadd.f32 %v464_v21, %v404_v18 }
 0x1e1   :  { %5846 = vtanh.f32 %v6561_v20 }
 0x1e2   :  { %5848 = vtanh.f32 %v6563_v22  ;;  %v462_v24 = vpop.permute.xlu0 %461 }
 0x1e3   :  { %v6569_v26 = vadd.f32 %v462_v24, %v403_v23  ;;  %v468_v27 = vpop.permute.xlu1 %467 }
 0x1e4   :  { %v6572_v28 = vadd.f32 %v468_v27, %v406_v25 }
 0x1e5   :  { %5850 = vtanh.f32 %v6569_v26 }
 0x1e6   :  { %5852 = vtanh.f32 %v6572_v28 }
 0x1e7   :  { %v5845_v30 = vpop.eup %5844  ;;  %v466_v32 = vpop.permute.xlu1 %465 }
 0x1e8   :  { %v470_v33 = vpop.permute.xlu0 %469  ;;  %v6576_v34 = vadd.f32 %v466_v32, %v405_v29  ;;  %507 = vrot.lane.b32.xlu0 %v5845_v30, %s6377_s0 }
 0x1e9   :  { %v6580_v35 = vadd.f32 %v470_v33, %v407_v31 }
 0x1ea   :  { %5854 = vtanh.f32 %v6576_v34 }
 0x1eb   :  { %v5847_v37 = vpop.eup %5846  ;;  %v472_v38 = vpop.permute.xlu1 %471  ;;  %5856 = vtanh.f32 %v6580_v35 }
 0x1ec   :  { %v5849_v39 = vpop.eup %5848  ;;  %v6584_v40 = vadd.f32 %v472_v38, %v408_v36  ;;  %505 = vrot.lane.b32.xlu0 %v5847_v37, %s6377_s0 }
 0x1ed   :  { %511 = vrot.lane.b32.xlu1 %v5849_v39, %s6377_s0 }
 0x1ee   :  { %5858 = vtanh.f32 %v6584_v40 }
 0x1ef   :  { %v5851_v42 = vpop.eup %5850 }
 0x1f0   :  { %v5853_v43 = vpop.eup %5852 }
 0x1f1   :  { %509 = vrot.lane.b32.xlu1 %v5851_v42, %s6377_s0 }
 0x1f4   :  { %v5855_v49 = vpop.eup %5854 }
 0x1f5   :  { %515 = vrot.lane.b32.xlu1 %v5853_v43, %s6377_s0  ;;  %513 = vrot.lane.b32.xlu0 %v5855_v49, %s6377_s0  ;;  %v5857_v62 = vpop.eup %5856 }
 0x1f8   :  { %v5859_v1 = vpop.eup %5858 }
 0x1f9   :  { %519 = vrot.lane.b32.xlu1 %v5859_v1, %s6377_s0  ;;  %517 = vrot.lane.b32.xlu0 %v5857_v62, %s6377_s0  ;;  %v6675_v62 = vld [vmem:[%s8204_s6] ss:$0 sm:$0xff] }
 0x24d   :  { %v606_v38 = vpop.f32.mrb[2].mxu1 }
 0x24e   :  { %v5398_v39 = vpop.f32.mrb[3].mxu1 }
 0x25a   :  { %v508_v5 = vpop.permute.xlu0 %507 }
 0x25b   :  { %v530_v9 = vmul.f32 %v6523_v41, %v508_v5 }
 0x25d   :  { %v618_v14 = vrot.slane %v530_v9, 7 }
 0x25e   :  { %v506_v7 = vpop.permute.xlu0 %505 }
 0x25f   :  { %v512_v6 = vpop.permute.xlu1 %511  ;;  %v529_v10 = vmul.f32 %v6527_v46, %v506_v7  ;;  %v867_v7 = vld [vmem:[#allocation2 + $0x21] sm:$0x1] }
 0x260   :  { %v532_v15 = vmul.f32 %v6529_v47, %v512_v6 }
 0x261   :  { %v620_v18 = vsel %vm619_vm3, %v618_v14, %v529_v10  ;;  %v869_v14 = vld [vmem:[#allocation2 + $0x31] sm:$0x1] }
 0x262   :  { %v624_v46 = vrot.slane %v532_v15, 5 }
 0x263   :  { %v510_v11 = vpop.permute.xlu1 %509 }
 0x264   :  { %v531_v13 = vmul.f32 %v6534_v52, %v510_v11 }
 0x266   :  { %v621_v17 = vrot.slane %v531_v13, 6  ;;  %v866_v13 = vld [vmem:[#allocation2 + $0x19] sm:$0x1] }
 0x267   :  { %v516_v19 = vpop.permute.xlu1 %515  ;;  %v514_v21 = vpop.permute.xlu0 %513 }
 0x268   :  { %v623_v23 = vsel %vm622_vm4, %v621_v17, %v620_v18  ;;  %v534_v24 = vmul.f32 %v6537_v53, %v516_v19  ;;  %v533_v41 = vmul.f32 %v6542_v58, %v514_v21  ;;  %v868_v19 = vld [vmem:[#allocation2 + $0x29] sm:$0x1] }
 0x269   :  { %v626_v27 = vsel %vm625_vm5, %v624_v46, %v623_v23  ;;  %v870_v46 = vld [vmem:[#allocation2 + $0x39] sm:$0x1] }
 0x26a   :  { %v627_v25 = vrot.slane %v533_v41, 4  ;;  %v630_v52 = vrot.slane %v534_v24, 3 }
 0x26b   :  { %v520_v47 = vpop.permute.xlu1 %519  ;;  %v518_v29 = vpop.permute.xlu0 %517 }
 0x26c   :  { %v629_v30 = vsel %vm628_vm6, %v627_v25, %v626_v27  ;;  %v536_v31 = vmul.f32 %v6551_v0, %v520_v47  ;;  %v535_v32 = vmul.f32 %v6545_v59, %v518_v29 }
 0x26d   :  { %v632_v58 = vsel %vm631_vm7, %v630_v52, %v629_v30  ;;  %v206_v30 = vld [vmem:[#allocation6] sm:$0xff] }
 0x26e   :  { %v636_v53 = vrot.slane %v536_v31, 1  ;;  %v633_v33 = vrot.slane %v535_v32, 2 }
 0x270   :  { %v635_v36 = vsel %vm634_vm8, %v633_v33, %v632_v58 }
 0x271   :  { %v638_v37 = vsel %vm637_vm9, %v636_v53, %v635_v36 }
 0x272   :  { %639 = vrot.lane.b32.xlu0 %v638_v37, %s6378_s3 }
 0x2e4   :  { %v640_v42 = vpop.permute.xlu0 %639 }
 0x2e5   :  { %5408 = vmatmul.mubr.msk.f32.vlgmr.msra.gmra.mrb[8].mxu0 %vm30_vm2, %v640_v42  ;;  %5419 = vmatmul.mubr.msk.f32.vlgmr.msra.gmra.mrb[4].mxu1 %vm30_vm2, %v640_v42 }
 0x2e6   :  { %5671 = vmatpush3.bf16.msra.mxu0 %v6600_v50  ;;  %5429 = vmatprep.mubr.msk.f32.mxu0 %vm6375_vm1, %v6376_v4 }
 0x2e7   :  { %5672 = vmatprep.subr.bf16.mxu0 %v6374_v3  ;;  %5677 = vmatpush3.bf16.msra.mxu1 %v6613_v56 }
 0x2e8   :  { %5678 = vmatprep.subr.bf16.mxu1 %v6374_v3  ;;  %5440 = vmatprep.mubr.msk.f32.mxu1 %vm6375_vm1, %v6376_v4 }
 0x2ea   :  { %5674 = vmatpush3.bf16.msra.mxu0 %v6622_v61 }
 0x2eb   :  { %5681 = vmatprep.subr.bf16.mxu0 %v6374_v3  ;;  %5680 = vmatpush3.bf16.msra.mxu1 %v6626_v63 }
 0x2ec   :  { %5687 = vmatprep.subr.bf16.mxu1 %v6374_v3 }
 0x3b8   :  { %v709_v59 = vpop.f32.mrb[8].mxu0  ;;  %v937_v0 = vpop.f32.mrb[4].mxu1 }
 0x3b9   :  { %v710_v43 = vadd.f32 %v709_v59, %v606_v38  ;;  %v5409_v44 = vpop.f32.mrb[9].mxu0  ;;  %v5420_v45 = vpop.f32.mrb[5].mxu1  ;;  %v957_v49 = vadd.f32 %v937_v0, %v863_v48  ;;  %v942_v51 = vrot.slane %v937_v0, 1  ;;  %v943_v54 = vrot.slane %v937_v0, 2 }
 0x3ba   :  { %v945_v1 = vrot.slane %v937_v0, 4  ;;  %v944_v9 = vrot.slane %v937_v0, 3  ;;  %v947_v10 = vrot.slane %v937_v0, 6  ;;  %v946_v15 = vrot.slane %v937_v0, 5 }
 0x3bb   :  { %5860 = vtanh.f32 %v957_v49  ;;  %v958_v60 = vadd.f32 %v942_v51, %v864_v55  ;;  %v959_v2 = vadd.f32 %v943_v54, %v865_v57  ;;  %v719_v6 = vadd.f32 %v6675_v62, %v710_v43 }
 0x3bc   :  { %v961_v11 = vadd.f32 %v945_v1, %v867_v7  ;;  %v960_v17 = vadd.f32 %v944_v9, %v866_v13  ;;  %v963_v18 = vadd.f32 %v947_v10, %v869_v14  ;;  %v948_v21 = vrot.slane %v937_v0, 7 }
 0x3bd   :  { %5862 = vtanh.f32 %v958_v60  ;;  %v962_v23 = vadd.f32 %v946_v15, %v868_v19  ;;  %v5148_v53 = vmul.f32 -1.442695, %v957_v49  ;;  %v5149_v33 = vmul.f32 -1.442695, %v958_v60 }
 0x3be   :  { %5864 = vtanh.f32 %v959_v2  ;;  %v964_v25 = vadd.f32 %v948_v21, %v870_v46  ;;  %v5150_v58 = vmul.f32 -1.442695, %v959_v2  ;;  %v5146_v37 = vmul.f32 -1.442695, %v719_v6 }
 0x3bf   :  { %5866 = vtanh.f32 %v719_v6  ;;  %v5152_v38 = vmul.f32 -1.442695, %v961_v11  ;;  %v5151_v42 = vmul.f32 -1.442695, %v960_v17  ;;  %v5154_v59 = vmul.f32 -1.442695, %v963_v18 }
 0x3c0   :  { %5868 = vtanh.f32 %v961_v11  ;;  %v5153_v0 = vmul.f32 -1.442695, %v962_v23  ;;  %v5155_v45 = vmul.f32 -1.442695, %v964_v25 }
 0x3c1   :  { %5870 = vtanh.f32 %v960_v17 }
 0x3c2   :  { %5872 = vtanh.f32 %v963_v18 }
 0x3c3   :  { %5874 = vtanh.f32 %v962_v23 }
 0x3c4   :  { %5876 = vtanh.f32 %v964_v25 }
 0x3c5   :  { %v5861_v5 = vpop.eup %5860  ;;  %5878 = vpow2.f32 %v5148_v53 }
 0x3c6   :  { %1037 = vrot.lane.b32.xlu0 %v5861_v5, %s6377_s0  ;;  %5880 = vpow2.f32 %v5149_v33 }
 0x3c7   :  { %v5863_v24 = vpop.eup %5862  ;;  %5882 = vpow2.f32 %v5150_v58 }
 0x3c8   :  { %v5865_v41 = vpop.eup %5864  ;;  %1039 = vrot.lane.b32.xlu1 %v5863_v24, %s6377_s0  ;;  %5884 = vpow2.f32 %v5146_v37 }
 0x3c9   :  { %v5867_v52 = vpop.eup %5866  ;;  %5886 = vpow2.f32 %v5152_v38 }
 0x3ca   :  { %1041 = vrot.lane.b32.xlu0 %v5865_v41, %s6377_s0  ;;  %v5869_v27 = vpop.eup %5868 }
 0x3cb   :  { %v5871_v47 = vpop.eup %5870 }
 0x3cc   :  { %733 = vrot.lane.b32.xlu1 %v5867_v52, %s6377_s0  ;;  %v5873_v29 = vpop.eup %5872 }
 0x3cd   :  { %v5875_v31 = vpop.eup %5874 }
 0x3ce   :  { %1045 = vrot.lane.b32.xlu0 %v5869_v27, %s6377_s0  ;;  %v5877_v32 = vpop.eup %5876 }
 0x3cf   :  { %v5879_v36 = vpop.eup %5878 }
 0x3d0   :  { %1043 = vrot.lane.b32.xlu1 %v5871_v47, %s6377_s0  ;;  %v989_v39 = vadd.f32 1.0, %v5879_v36  ;;  %v5881_v43 = vpop.eup %5880 }
 0x3d1   :  { %v5883_v44 = vpop.eup %5882  ;;  %v990_v48 = vadd.f32 1.0, %v5881_v43 }
 0x3d2   :  { %1049 = vrot.lane.b32.xlu0 %v5873_v29, %s6377_s0  ;;  %5888 = vrcp.f32 %v989_v39  ;;  %v5885_v49 = vpop.eup %5884  ;;  %v991_v51 = vadd.f32 1.0, %v5883_v44 }
 0x3d3   :  { %5890 = vpow2.f32 %v5151_v42  ;;  %v5887_v54 = vpop.eup %5886  ;;  %v723_v57 = vadd.f32 1.0, %v5885_v49 }
 0x3d4   :  { %1047 = vrot.lane.b32.xlu1 %v5875_v31, %s6377_s0  ;;  %5892 = vpow2.f32 %v5154_v59  ;;  %v993_v5 = vadd.f32 1.0, %v5887_v54 }
 0x3d5   :  { %5894 = vpow2.f32 %v5153_v0 }
 0x3d6   :  { %728 = vrot.lane.b32.xlu0 %v206_v30, %s6378_s3  ;;  %5896 = vpow2.f32 %v5155_v45 }
 0x3d7   :  { %5898 = vrcp.f32 %v990_v48 }
 0x3d8   :  { %1051 = vrot.lane.b32.xlu1 %v5877_v32, %s6377_s0  ;;  %5900 = vrcp.f32 %v991_v51 }
 0x3d9   :  { %5902 = vrcp.f32 %v723_v57 }
 0x3da   :  { %5904 = vrcp.f32 %v993_v5 }
 0x3dc   :  { %v6688_v55 = vpop.eup %5888 }
 0x3dd   :  { %v5891_v1 = vpop.eup %5890  ;;  %v1021_v59 = vmul.f32 %v6688_v55, %v6561_v20 }
 0x3de   :  { %v5893_v6 = vpop.eup %5892  ;;  %v992_v7 = vadd.f32 1.0, %v5891_v1 }
 0x3df   :  { %v5895_v9 = vpop.eup %5894  ;;  %v995_v10 = vadd.f32 1.0, %v5893_v6 }
 0x3e0   :  { %5906 = vrcp.f32 %v992_v7  ;;  %v994_v11 = vadd.f32 1.0, %v5895_v9  ;;  %v5897_v13 = vpop.eup %5896 }
 0x3e1   :  { %5908 = vrcp.f32 %v995_v10  ;;  %v6692_v14 = vpop.eup %5898  ;;  %v996_v23 = vadd.f32 1.0, %v5897_v13 }
 0x3e2   :  { %v6694_v17 = vpop.eup %5900  ;;  %5910 = vrcp.f32 %v994_v11  ;;  %v1022_v44 = vmul.f32 %v6692_v14, %v6556_v16 }
 0x3e3   :  { %v6699_v24 = vpop.eup %5902  ;;  %5912 = vrcp.f32 %v996_v23  ;;  %v1023_v48 = vmul.f32 %v6694_v17, %v6569_v26 }
 0x3e4   :  { %v6702_v46 = vpop.eup %5904 }
 0x3e5   :  { %v1025_v16 = vmul.f32 %v6702_v46, %v6576_v34 }
 0x3ea   :  { %v6707_v47 = vpop.eup %5906 }
 0x3eb   :  { %v6710_v30 = vpop.eup %5908  ;;  %v1024_v5 = vmul.f32 %v6707_v47, %v6563_v22 }
 0x3ec   :  { %v6715_v33 = vpop.eup %5910  ;;  %v1027_v7 = vmul.f32 %v6710_v30, %v6580_v35 }
 0x3ed   :  { %v6720_v37 = vpop.eup %5912  ;;  %v1026_v11 = vmul.f32 %v6715_v33, %v6572_v28 }
 0x3ee   :  { %v1028_v35 = vmul.f32 %v6720_v37, %v6584_v40 }
 0x438   :  { %v1038_v60 = vpop.permute.xlu0 %1037 }
 0x439   :  { %v1061_v2 = vmul.f32 %v6688_v55, %v1038_v60 }
 0x43a   :  { %v1040_v15 = vpop.permute.xlu1 %1039 }
 0x43b   :  { %1077 = vrot.lane.b32.xlu0 %v1061_v2, %s6378_s3  ;;  %v1062_v18 = vmul.f32 %v6692_v14, %v1040_v15 }
 0x43c   :  { %v1042_v19 = vpop.permute.xlu0 %1041 }
 0x43d   :  { %v1063_v21 = vmul.f32 %v6694_v17, %v1042_v19  ;;  %1079 = vrot.lane.b32.xlu1 %v1062_v18, %s6378_s3 }
 0x43e   :  { %v734_v41 = vpop.permute.xlu1 %733 }
 0x43f   :  { %1081 = vrot.lane.b32.xlu0 %v1063_v21, %s6378_s3  ;;  %v736_v25 = vmul.f32 %v6699_v24, %v734_v41 }
 0x440   :  { %v1046_v52 = vpop.permute.xlu0 %1045 }
 0x441   :  { %v1065_v27 = vmul.f32 %v6702_v46, %v1046_v52  ;;  %738 = vrot.lane.b32.xlu1 %v736_v25, %s6378_s3 }
 0x442   :  { %v1044_v29 = vpop.permute.xlu1 %1043 }
 0x443   :  { %1085 = vrot.lane.b32.xlu0 %v1065_v27, %s6378_s3  ;;  %v1064_v31 = vmul.f32 %v6707_v47, %v1044_v29 }
 0x444   :  { %v1050_v32 = vpop.permute.xlu0 %1049 }
 0x445   :  { %v1067_v53 = vmul.f32 %v6710_v30, %v1050_v32  ;;  %1083 = vrot.lane.b32.xlu1 %v1064_v31, %s6378_s3 }
 0x446   :  { %v1048_v58 = vpop.permute.xlu1 %1047 }
 0x447   :  { %1089 = vrot.lane.b32.xlu0 %v1067_v53, %s6378_s3  ;;  %v1066_v36 = vmul.f32 %v6715_v33, %v1048_v58 }
 0x448   :  { %v729_v42 = vpop.permute.xlu0 %728 }
 0x449   :  { %1087 = vrot.lane.b32.xlu1 %v1066_v36, %s6378_s3  ;;  %v731_v20 = vmul.f32 %v6699_v24, %v729_v42 }
 0x44a   :  { %v1052_v38 = vpop.permute.xlu1 %1051 }
 0x44b   :  { %v1068_v39 = vmul.f32 %v6720_v37, %v1052_v38 }
 0x44d   :  { %1091 = vrot.lane.b32.xlu1 %v1068_v39, %s6378_s3 }
 0x4ad   :  { %v1078_v0 = vpop.permute.xlu0 %1077 }
 0x4ae   :  { %v6726_v43 = vadd.f32 %v1078_v0, %v1021_v59 }
 0x4af   :  { %v1080_v45 = vpop.permute.xlu1 %1079 }
 0x4b0   :  { %5914 = vtanh.f32 %v6726_v43  ;;  %v6733_v49 = vadd.f32 %v1080_v45, %v1022_v44 }
 0x4b1   :  { %v1082_v51 = vpop.permute.xlu0 %1081 }
 0x4b2   :  { %v6735_v54 = vadd.f32 %v1082_v51, %v1023_v48  ;;  %5916 = vtanh.f32 %v6733_v49 }
 0x4b3   :  { %v739_v60 = vpop.permute.xlu1 %738 }
 0x4b4   :  { %5918 = vtanh.f32 %v6735_v54  ;;  %v6743_v1 = vadd.f32 %v739_v60, %v731_v20 }
 0x4b5   :  { %v1086_v26 = vpop.permute.xlu0 %1085 }
 0x4b6   :  { %v6745_v2 = vadd.f32 %v1086_v26, %v1025_v16  ;;  %5920 = vtanh.f32 %v6743_v1 }
 0x4b7   :  { %v1084_v6 = vpop.permute.xlu1 %1083 }
 0x4b8   :  { %5922 = vtanh.f32 %v6745_v2  ;;  %v6753_v9 = vadd.f32 %v1084_v6, %v1024_v5 }
 0x4b9   :  { %v1090_v34 = vpop.permute.xlu0 %1089 }
 0x4ba   :  { %v5915_v57 = vpop.eup %5914  ;;  %v6755_v10 = vadd.f32 %v1090_v34, %v1027_v7  ;;  %5924 = vtanh.f32 %v6753_v9 }
 0x4bb   :  { %1125 = vrot.lane.b32.xlu1 %v5915_v57, %s6377_s0  ;;  %v1088_v13 = vpop.permute.xlu1 %1087 }
 0x4bc   :  { %5926 = vtanh.f32 %v6755_v10  ;;  %v5917_v22 = vpop.eup %5916  ;;  %v6761_v15 = vadd.f32 %v1088_v13, %v1026_v11 }
 0x4bd   :  { %1127 = vrot.lane.b32.xlu0 %v5917_v22, %s6377_s0 }
 0x4be   :  { %v5919_v18 = vpop.eup %5918  ;;  %5928 = vtanh.f32 %v6761_v15 }
 0x4bf   :  { %1129 = vrot.lane.b32.xlu1 %v5919_v18, %s6377_s0  ;;  %v1092_v19 = vpop.permute.xlu1 %1091 }
 0x4c0   :  { %v5921_v21 = vpop.eup %5920  ;;  %v6768_v23 = vadd.f32 %v1092_v19, %v1028_v35 }
 0x4c1   :  { %744 = vrot.lane.b32.xlu0 %v5921_v21, %s6377_s0 }
 0x4c2   :  { %v5923_v28 = vpop.eup %5922  ;;  %5930 = vtanh.f32 %v6768_v23 }
 0x4c3   :  { %1133 = vrot.lane.b32.xlu1 %v5923_v28, %s6377_s0  ;;  %v1466_v28 = vld [vmem:[#allocation2 + $0x2] sm:$0x1] }
 0x4c4   :  { %v5925_v41 = vpop.eup %5924 }
 0x4c5   :  { %1131 = vrot.lane.b32.xlu0 %v5925_v41, %s6377_s0 }
 0x4c6   :  { %v5927_v25 = vpop.eup %5926 }
 0x4c7   :  { %1137 = vrot.lane.b32.xlu1 %v5927_v25, %s6377_s0 }
 0x4c8   :  { %v5929_v52 = vpop.eup %5928 }
 0x4c9   :  { %1135 = vrot.lane.b32.xlu0 %v5929_v52, %s6377_s0 }
 0x4cc   :  { %v5931_v40 = vpop.eup %5930 }
 0x4cd   :  { %1139 = vrot.lane.b32.xlu0 %v5931_v40, %s6377_s0  ;;  %v1467_v40 = vld [vmem:[#allocation2 + $0xa] sm:$0x1] }
 0x52d   :  { %v1126_v27 = vpop.permute.xlu1 %1125 }
 0x52e   :  { %v1149_v42 = vmul.f32 %v6688_v55, %v1126_v27  ;;  %v1468_v27 = vld [vmem:[#allocation2 + $0x12] sm:$0x1] }
 0x52f   :  { %v1128_v29 = vpop.permute.xlu0 %1127 }
 0x530   :  { %v1150_v31 = vmul.f32 %v6692_v14, %v1128_v29 }
 0x531   :  { %v1130_v32 = vpop.permute.xlu1 %1129 }
 0x532   :  { %v1151_v53 = vmul.f32 %v6694_v17, %v1130_v32  ;;  %v1239_v36 = vrot.slane %v1150_v31, 7 }
 0x533   :  { %v745_v58 = vpop.permute.xlu0 %744 }
 0x534   :  { %v6780_v38 = vmul.f32 %v6699_v24, %v745_v58  ;;  %v1241_v59 = vrot.slane %v1151_v53, 6  ;;  %v1240_v44 = vsel %vm619_vm3, %v1239_v36, %v1149_v42  ;;  %v1470_v36 = vld [vmem:[#allocation2 + $0x22] sm:$0x1] }
 0x535   :  { %v1134_v39 = vpop.permute.xlu1 %1133 }
 0x536   :  { %1157 = vrot.lane.b32.xlu1 %v6780_v38, %s6378_s3  ;;  %v1153_v45 = vmul.f32 %v6702_v46, %v1134_v39  ;;  %v1242_v51 = vsel %vm622_vm4, %v1241_v59, %v1240_v44  ;;  %v1472_v44 = vld [vmem:[#allocation2 + $0x32] sm:$0x1] }
 0x537   :  { %v1132_v0 = vpop.permute.xlu0 %1131 }
 0x538   :  { %v1152_v14 = vmul.f32 %v6707_v47, %v1132_v0  ;;  %v1245_v20 = vrot.slane %v1153_v45, 4  ;;  %v1469_v0 = vld [vmem:[#allocation2 + $0x1a] sm:$0x1] }
 0x539   :  { %v1138_v48 = vpop.permute.xlu1 %1137 }
 0x53a   :  { %v1243_v17 = vrot.slane %v1152_v14, 5  ;;  %v1155_v60 = vmul.f32 %v6710_v30, %v1138_v48  ;;  %v1471_v48 = vld [vmem:[#allocation2 + $0x2a] sm:$0x1] }
 0x53b   :  { %v1136_v24 = vpop.permute.xlu0 %1135 }
 0x53c   :  { %v1244_v57 = vsel %vm625_vm5, %v1243_v17, %v1242_v51  ;;  %v1154_v55 = vmul.f32 %v6715_v33, %v1136_v24  ;;  %v1249_v6 = vrot.slane %v1155_v60, 2 }
 0x53d   :  { %v1246_v5 = vsel %vm628_vm6, %v1245_v20, %v1244_v57  ;;  %v1473_v20 = vld [vmem:[#allocation2 + $0x3a] sm:$0x1] }
 0x53e   :  { %v1247_v16 = vrot.slane %v1154_v55, 3 }
 0x53f   :  { %v1140_v26 = vpop.permute.xlu0 %1139 }
 0x540   :  { %v1156_v47 = vmul.f32 %v6720_v37, %v1140_v26  ;;  %v1248_v46 = vsel %vm631_vm7, %v1247_v16, %v1246_v5 }
 0x541   :  { %v1250_v34 = vsel %vm634_vm8, %v1249_v6, %v1248_v46 }
 0x542   :  { %v1251_v7 = vrot.slane %v1156_v47, 1 }
 0x544   :  { %v1252_v11 = vsel %vm637_vm9, %v1251_v7, %v1250_v34 }
 0x545   :  { %1253 = vrot.lane.b32.xlu0 %v1252_v11, %s6378_s3 }
 0x5a8   :  { %v1158_v33 = vpop.permute.xlu1 %1157 }
 0x5a9   :  { %5430 = vmatmul.mubr.msk.f32.vlgmr.msra.gmra.mrb[10].mxu0 %vm30_vm2, %v1158_v33 }
 0x5aa   :  { %5683 = vmatpush3.bf16.msra.mxu0 %v6448_v8  ;;  %5451 = vmatprep.mubr.msk.f32.mxu0 %vm6375_vm1, %v6376_v4 }
 0x5ab   :  { %5684 = vmatprep.subr.bf16.mxu0 %v6374_v3 }
 0x5ae   :  { %5686 = vmatpush3.bf16.msra.mxu0 %v6460_v12 }
 0x5af   :  { %5693 = vmatprep.subr.bf16.mxu0 %v6374_v3 }
 0x5b7   :  { %v1254_v30 = vpop.permute.xlu0 %1253 }
 0x5b8   :  { %5441 = vmatmul.mubr.msk.f32.vlgmr.msra.gmra.mrb[6].mxu1 %vm30_vm2, %v1254_v30  ;;  %5452 = vmatmul.mubr.msk.f32.vlgmr.msra.gmra.mrb[12].mxu0 %vm30_vm2, %v1254_v30 }
 0x5b9   :  { %5689 = vmatpush3.bf16.msra.mxu1 %v6600_v50  ;;  %5462 = vmatprep.mubr.msk.f32.mxu1 %vm6375_vm1, %v6376_v4 }
 0x5ba   :  { %5690 = vmatprep.subr.bf16.mxu1 %v6374_v3  ;;  %5695 = vmatpush3.bf16.msra.mxu0 %v6613_v56 }
 0x5bb   :  { %5696 = vmatprep.subr.bf16.mxu0 %v6374_v3  ;;  %5473 = vmatprep.mubr.msk.f32.mxu0 %vm6375_vm1, %v6376_v4 }
 0x5bd   :  { %5692 = vmatpush3.bf16.msra.mxu1 %v6622_v61 }
 0x5be   :  { %5699 = vmatprep.subr.bf16.mxu1 %v6374_v3  ;;  %5698 = vmatpush3.bf16.msra.mxu0 %v6626_v63 }
 0x5bf   :  { %5705 = vmatprep.subr.bf16.mxu0 %v6374_v3 }
 0x67c   :  { %v1227_v37 = vpop.f32.mrb[10].mxu0 }
 0x67d   :  { %v5431_v13 = vpop.f32.mrb[11].mxu0 }
 0x68b   :  { %v1323_v22 = vpop.f32.mrb[6].mxu1  ;;  %v1540_v18 = vpop.f32.mrb[12].mxu0 }
 0x68c   :  { %v1324_v35 = vadd.f32 %v1323_v22, %v1227_v37  ;;  %v5442_v19 = vpop.f32.mrb[7].mxu1  ;;  %v5453_v21 = vpop.f32.mrb[13].mxu0  ;;  %v1560_v41 = vadd.f32 %v1540_v18, %v1466_v28  ;;  %v1545_v25 = vrot.slane %v1540_v18, 1  ;;  %v1546_v52 = vrot.slane %v1540_v18, 2 }
 0x68d   :  { %v1548_v31 = vrot.slane %v1540_v18, 4  ;;  %v1547_v39 = vrot.slane %v1540_v18, 3  ;;  %v1550_v42 = vrot.slane %v1540_v18, 6  ;;  %v1549_v14 = vrot.slane %v1540_v18, 5 }
 0x68e   :  { %5932 = vtanh.f32 %v1560_v41  ;;  %v1561_v29 = vadd.f32 %v1545_v25, %v1467_v40  ;;  %v1562_v32 = vadd.f32 %v1546_v52, %v1468_v27  ;;  %v1327_v58 = vadd.f32 %v6675_v62, %v1324_v35 }
 0x68f   :  { %v1564_v59 = vadd.f32 %v1548_v31, %v1470_v36  ;;  %v1563_v45 = vadd.f32 %v1547_v39, %v1469_v0  ;;  %v1566_v17 = vadd.f32 %v1550_v42, %v1472_v44  ;;  %v1551_v51 = vrot.slane %v1540_v18, 7 }
 0x690   :  { %5934 = vtanh.f32 %v1561_v29  ;;  %v1565_v24 = vadd.f32 %v1549_v14, %v1471_v48  ;;  %v5160_v7 = vmul.f32 -1.442695, %v1560_v41  ;;  %v5161_v34 = vmul.f32 -1.442695, %v1561_v29 }
 0x691   :  { %5936 = vtanh.f32 %v1562_v32  ;;  %v1567_v60 = vadd.f32 %v1551_v51, %v1473_v20  ;;  %v5162_v11 = vmul.f32 -1.442695, %v1562_v32  ;;  %v5158_v30 = vmul.f32 -1.442695, %v1327_v58 }
 0x692   :  { %5938 = vtanh.f32 %v1327_v58  ;;  %v5164_v37 = vmul.f32 -1.442695, %v1564_v59  ;;  %v5163_v22 = vmul.f32 -1.442695, %v1563_v45  ;;  %v5166_v18 = vmul.f32 -1.442695, %v1566_v17 }
 0x693   :  { %5940 = vtanh.f32 %v1564_v59  ;;  %v5165_v35 = vmul.f32 -1.442695, %v1565_v24  ;;  %v5167_v28 = vmul.f32 -1.442695, %v1567_v60 }
 0x694   :  { %5942 = vtanh.f32 %v1563_v45 }
 0x695   :  { %5944 = vtanh.f32 %v1566_v17 }
 0x696   :  { %5946 = vtanh.f32 %v1565_v24 }
 0x697   :  { %5948 = vtanh.f32 %v1567_v60 }
 0x698   :  { %v5933_v53 = vpop.eup %5932  ;;  %5950 = vpow2.f32 %v5160_v7 }
 0x699   :  { %1640 = vrot.lane.b32.xlu0 %v5933_v53, %s6377_s0  ;;  %5952 = vpow2.f32 %v5161_v34 }
 0x69a   :  { %v5935_v57 = vpop.eup %5934  ;;  %5954 = vpow2.f32 %v5162_v11 }
 0x69b   :  { %v5937_v55 = vpop.eup %5936  ;;  %1642 = vrot.lane.b32.xlu1 %v5935_v57, %s6377_s0  ;;  %5956 = vpow2.f32 %v5158_v30 }
 0x69c   :  { %v5939_v16 = vpop.eup %5938  ;;  %5958 = vpow2.f32 %v5164_v37 }
 0x69d   :  { %1644 = vrot.lane.b32.xlu0 %v5937_v55, %s6377_s0  ;;  %v5941_v26 = vpop.eup %5940 }
 0x69e   :  { %v5943_v5 = vpop.eup %5942 }
 0x69f   :  { %1337 = vrot.lane.b32.xlu1 %v5939_v16, %s6377_s0  ;;  %v5945_v47 = vpop.eup %5944 }
 0x6a0   :  { %v5947_v46 = vpop.eup %5946 }
 0x6a1   :  { %1648 = vrot.lane.b32.xlu0 %v5941_v26, %s6377_s0  ;;  %v5949_v6 = vpop.eup %5948 }
 0x6a2   :  { %v5951_v33 = vpop.eup %5950 }
 0x6a3   :  { %1646 = vrot.lane.b32.xlu1 %v5943_v5, %s6377_s0  ;;  %v1592_v13 = vadd.f32 1.0, %v5951_v33  ;;  %v5953_v19 = vpop.eup %5952 }
 0x6a4   :  { %v5955_v21 = vpop.eup %5954  ;;  %v1593_v41 = vadd.f32 1.0, %v5953_v19 }
 0x6a5   :  { %1652 = vrot.lane.b32.xlu0 %v5945_v47, %s6377_s0  ;;  %5960 = vrcp.f32 %v1592_v13  ;;  %v5957_v25 = vpop.eup %5956  ;;  %v1594_v52 = vadd.f32 1.0, %v5955_v21 }
 0x6a6   :  { %5962 = vpow2.f32 %v5163_v22  ;;  %v5959_v40 = vpop.eup %5958  ;;  %v1331_v29 = vadd.f32 1.0, %v5957_v25 }
 0x6a7   :  { %1650 = vrot.lane.b32.xlu1 %v5947_v46, %s6377_s0  ;;  %5964 = vpow2.f32 %v5166_v18  ;;  %v1596_v58 = vadd.f32 1.0, %v5959_v40 }
 0x6a8   :  { %5966 = vpow2.f32 %v5165_v35 }
 0x6a9   :  { %5968 = vpow2.f32 %v5167_v28 }
 0x6aa   :  { %5970 = vrcp.f32 %v1593_v41 }
 0x6ab   :  { %1654 = vrot.lane.b32.xlu1 %v5949_v6, %s6377_s0  ;;  %5972 = vrcp.f32 %v1594_v52 }
 0x6ac   :  { %5974 = vrcp.f32 %v1331_v29 }
 0x6ad   :  { %5976 = vrcp.f32 %v1596_v58 }
 0x6af   :  { %v6829_v27 = vpop.eup %5960 }
 0x6b0   :  { %v5963_v32 = vpop.eup %5962  ;;  %v1624_v35 = vmul.f32 %v6829_v27, %v6726_v43 }
 0x6b1   :  { %v5965_v36 = vpop.eup %5964  ;;  %v1595_v39 = vadd.f32 1.0, %v5963_v32 }
 0x6b2   :  { %v5967_v42 = vpop.eup %5966  ;;  %v1598_v59 = vadd.f32 1.0, %v5965_v36 }
 0x6b3   :  { %5978 = vrcp.f32 %v1595_v39  ;;  %v1597_v0 = vadd.f32 1.0, %v5967_v42  ;;  %v5969_v44 = vpop.eup %5968 }
 0x6b4   :  { %5980 = vrcp.f32 %v1598_v59  ;;  %v6833_v14 = vpop.eup %5970  ;;  %v1599_v57 = vadd.f32 1.0, %v5969_v44 }
 0x6b5   :  { %v6835_v17 = vpop.eup %5972  ;;  %5982 = vrcp.f32 %v1597_v0  ;;  %v1625_v28 = vmul.f32 %v6833_v14, %v6733_v49 }
 0x6b6   :  { %v6840_v55 = vpop.eup %5974  ;;  %5984 = vrcp.f32 %v1599_v57  ;;  %v1626_v25 = vmul.f32 %v6835_v17, %v6735_v54 }
 0x6b7   :  { %v6843_v60 = vpop.eup %5976  ;;  %v1335_v43 = vmul.f32 %v6840_v55, %v6743_v1 }
 0x6b8   :  { %v1628_v49 = vmul.f32 %v6843_v60, %v6745_v2 }
 0x6bd   :  { %v6848_v47 = vpop.eup %5978 }
 0x6be   :  { %v6851_v6 = vpop.eup %5980  ;;  %v1627_v36 = vmul.f32 %v6848_v47, %v6753_v9 }
 0x6bf   :  { %v6856_v33 = vpop.eup %5982  ;;  %v1630_v39 = vmul.f32 %v6851_v6, %v6755_v10 }
 0x6c0   :  { %v6861_v13 = vpop.eup %5984  ;;  %v1629_v0 = vmul.f32 %v6856_v33, %v6761_v15 }
 0x6c1   :  { %v1631_v10 = vmul.f32 %v6861_v13, %v6768_v23 }
 0x70b   :  { %v1641_v31 = vpop.permute.xlu0 %1640 }
 0x70c   :  { %v1664_v53 = vmul.f32 %v6829_v27, %v1641_v31 }
 0x70d   :  { %v1643_v45 = vpop.permute.xlu1 %1642 }
 0x70e   :  { %1680 = vrot.lane.b32.xlu1 %v1664_v53, %s6378_s3  ;;  %v1665_v48 = vmul.f32 %v6833_v14, %v1643_v45 }
 0x70f   :  { %v1645_v51 = vpop.permute.xlu0 %1644 }
 0x710   :  { %v1666_v24 = vmul.f32 %v6835_v17, %v1645_v51  ;;  %1682 = vrot.lane.b32.xlu0 %v1665_v48, %s6378_s3 }
 0x711   :  { %v1338_v20 = vpop.permute.xlu1 %1337 }
 0x712   :  { %1684 = vrot.lane.b32.xlu1 %v1666_v24, %s6378_s3  ;;  %v1340_v16 = vmul.f32 %v6840_v55, %v1338_v20 }
 0x713   :  { %v1649_v26 = vpop.permute.xlu0 %1648 }
 0x714   :  { %v1668_v5 = vmul.f32 %v6843_v60, %v1649_v26  ;;  %1342 = vrot.lane.b32.xlu0 %v1340_v16, %s6378_s3 }
 0x715   :  { %v1647_v46 = vpop.permute.xlu1 %1646 }
 0x716   :  { %1688 = vrot.lane.b32.xlu1 %v1668_v5, %s6378_s3  ;;  %v1667_v7 = vmul.f32 %v6848_v47, %v1647_v46 }
 0x717   :  { %v1653_v34 = vpop.permute.xlu0 %1652 }
 0x718   :  { %v1670_v11 = vmul.f32 %v6851_v6, %v1653_v34  ;;  %1686 = vrot.lane.b32.xlu0 %v1667_v7, %s6378_s3 }
 0x719   :  { %v1651_v30 = vpop.permute.xlu1 %1650 }
 0x71a   :  { %1692 = vrot.lane.b32.xlu1 %v1670_v11, %s6378_s3  ;;  %v1669_v37 = vmul.f32 %v6856_v33, %v1651_v30 }
 0x71c   :  { %1690 = vrot.lane.b32.xlu0 %v1669_v37, %s6378_s3 }
 0x71d   :  { %v1655_v22 = vpop.permute.xlu1 %1654 }
 0x71e   :  { %v1671_v18 = vmul.f32 %v6861_v13, %v1655_v22 }
 0x720   :  { %1694 = vrot.lane.b32.xlu0 %v1671_v18, %s6378_s3 }
 0x780   :  { %v1681_v19 = vpop.permute.xlu1 %1680 }
 0x781   :  { %v6867_v21 = vadd.f32 %v1681_v19, %v1624_v35 }
 0x782   :  { %v1683_v41 = vpop.permute.xlu0 %1682 }
 0x783   :  { %5986 = vtanh.f32 %v6867_v21  ;;  %v6874_v52 = vadd.f32 %v1683_v41, %v1625_v28 }
 0x784   :  { %v1685_v40 = vpop.permute.xlu1 %1684 }
 0x785   :  { %v6876_v29 = vadd.f32 %v1685_v40, %v1626_v25  ;;  %5988 = vtanh.f32 %v6874_v52 }
 0x786   :  { %v1343_v32 = vpop.permute.xlu0 %1342 }
 0x787   :  { %5990 = vtanh.f32 %v6876_v29  ;;  %v6885_v54 = vadd.f32 %v1343_v32, %v1335_v43 }
 0x788   :  { %v1689_v53 = vpop.permute.xlu1 %1688 }
 0x789   :  { %v6887_v58 = vadd.f32 %v1689_v53, %v1628_v49  ;;  %5992 = vtanh.f32 %v6885_v54 }
 0x78a   :  { %v1687_v1 = vpop.permute.xlu0 %1686 }
 0x78b   :  { %5994 = vtanh.f32 %v6887_v58  ;;  %v6895_v42 = vadd.f32 %v1687_v1, %v1627_v36 }
 0x78c   :  { %v1693_v2 = vpop.permute.xlu1 %1692 }
 0x78d   :  { %v5987_v31 = vpop.eup %5986  ;;  %v6897_v59 = vadd.f32 %v1693_v2, %v1630_v39  ;;  %5996 = vtanh.f32 %v6895_v42 }
 0x78e   :  { %1728 = vrot.lane.b32.xlu0 %v5987_v31, %s6377_s0  ;;  %v1691_v44 = vpop.permute.xlu0 %1690 }
 0x78f   :  { %5998 = vtanh.f32 %v6897_v59  ;;  %v5989_v9 = vpop.eup %5988  ;;  %v6903_v45 = vadd.f32 %v1691_v44, %v1629_v0 }
 0x790   :  { %1730 = vrot.lane.b32.xlu1 %v5989_v9, %s6377_s0 }
 0x791   :  { %v5991_v48 = vpop.eup %5990  ;;  %6000 = vtanh.f32 %v6903_v45 }
 0x792   :  { %1732 = vrot.lane.b32.xlu0 %v5991_v48, %s6377_s0  ;;  %v1695_v51 = vpop.permute.xlu0 %1694 }
 0x793   :  { %v5993_v24 = vpop.eup %5992  ;;  %v6910_v57 = vadd.f32 %v1695_v51, %v1631_v10 }
 0x794   :  { %1348 = vrot.lane.b32.xlu1 %v5993_v24, %s6377_s0 }
 0x795   :  { %v5995_v15 = vpop.eup %5994  ;;  %6002 = vtanh.f32 %v6910_v57 }
 0x796   :  { %1736 = vrot.lane.b32.xlu0 %v5995_v15, %s6377_s0 }
 0x797   :  { %v5997_v20 = vpop.eup %5996 }
 0x798   :  { %1734 = vrot.lane.b32.xlu1 %v5997_v20, %s6377_s0  ;;  %v2069_v20 = vld [vmem:[#allocation2 + $0x3] sm:$0x1] }
 0x799   :  { %v5999_v16 = vpop.eup %5998 }
 0x79a   :  { %1740 = vrot.lane.b32.xlu0 %v5999_v16, %s6377_s0 }
 0x79b   :  { %v6001_v26 = vpop.eup %6000 }
 0x79c   :  { %1738 = vrot.lane.b32.xlu1 %v6001_v26, %s6377_s0 }
 0x79f   :  { %v6003_v23 = vpop.eup %6002 }
 0x7a0   :  { %1742 = vrot.lane.b32.xlu1 %v6003_v23, %s6377_s0 }
 0x800   :  { %v1729_v5 = vpop.permute.xlu0 %1728 }
 0x801   :  { %v1752_v35 = vmul.f32 %v6829_v27, %v1729_v5  ;;  %v2070_v5 = vld [vmem:[#allocation2 + $0xb] sm:$0x1] }
 0x802   :  { %v1731_v46 = vpop.permute.xlu1 %1730 }
 0x803   :  { %v1753_v7 = vmul.f32 %v6833_v14, %v1731_v46  ;;  %v2071_v46 = vld [vmem:[#allocation2 + $0x13] sm:$0x1] }
 0x804   :  { %v1733_v34 = vpop.permute.xlu0 %1732 }
 0x805   :  { %v1754_v11 = vmul.f32 %v6835_v17, %v1733_v34  ;;  %v1842_v37 = vrot.slane %v1753_v7, 7 }
 0x806   :  { %v1349_v30 = vpop.permute.xlu1 %1348 }
 0x807   :  { %v6922_v22 = vmul.f32 %v6840_v55, %v1349_v30  ;;  %v1844_v19 = vrot.slane %v1754_v11, 6  ;;  %v1843_v41 = vsel %vm619_vm3, %v1842_v37, %v1752_v35 }
 0x808   :  { %v1737_v18 = vpop.permute.xlu0 %1736 }
 0x809   :  { %1760 = vrot.lane.b32.xlu0 %v6922_v22, %s6378_s3  ;;  %v1756_v25 = vmul.f32 %v6843_v60, %v1737_v18  ;;  %v1845_v31 = vsel %vm622_vm4, %v1844_v19, %v1843_v41  ;;  %v2073_v18 = vld [vmem:[#allocation2 + $0x23] sm:$0x1]  ;;  %v2072_v41 = vld [vmem:[#allocation2 + $0x1b] sm:$0x1] }
 0x80a   :  { %v1735_v28 = vpop.permute.xlu1 %1734 }
 0x80b   :  { %v1755_v14 = vmul.f32 %v6848_v47, %v1735_v28  ;;  %v1848_v32 = vrot.slane %v1756_v25, 4 }
 0x80c   :  { %v1741_v40 = vpop.permute.xlu0 %1740 }
 0x80d   :  { %v1846_v17 = vrot.slane %v1755_v14, 5  ;;  %v1758_v49 = vmul.f32 %v6851_v6, %v1741_v40  ;;  %v2075_v14 = vld [vmem:[#allocation2 + $0x33] sm:$0x1] }
 0x80e   :  { %v1739_v55 = vpop.permute.xlu1 %1738 }
 0x80f   :  { %v1847_v43 = vsel %vm625_vm5, %v1846_v17, %v1845_v31  ;;  %v1757_v27 = vmul.f32 %v6856_v33, %v1739_v55  ;;  %v1852_v39 = vrot.slane %v1758_v49, 2  ;;  %v2074_v31 = vld [vmem:[#allocation2 + $0x2b] sm:$0x1] }
 0x810   :  { %v1849_v1 = vsel %vm628_vm6, %v1848_v32, %v1847_v43  ;;  %v2076_v32 = vld [vmem:[#allocation2 + $0x3b] sm:$0x1] }
 0x811   :  { %v1850_v53 = vrot.slane %v1757_v27, 3 }
 0x812   :  { %v1743_v36 = vpop.permute.xlu1 %1742 }
 0x813   :  { %v1759_v47 = vmul.f32 %v6861_v13, %v1743_v36  ;;  %v1851_v60 = vsel %vm631_vm7, %v1850_v53, %v1849_v1 }
 0x814   :  { %v1853_v0 = vsel %vm634_vm8, %v1852_v39, %v1851_v60 }
 0x815   :  { %v1854_v2 = vrot.slane %v1759_v47, 1 }
 0x817   :  { %v1855_v44 = vsel %vm637_vm9, %v1854_v2, %v1853_v0 }
 0x818   :  { %1856 = vrot.lane.b32.xlu1 %v1855_v44, %s6378_s3 }
 0x87b   :  { %v1761_v33 = vpop.permute.xlu0 %1760 }
 0x87c   :  { %5463 = vmatmul.mubr.msk.f32.vlgmr.msra.gmra.mrb[8].mxu1 %vm30_vm2, %v1761_v33 }
 0x87d   :  { %5701 = vmatpush3.bf16.msra.mxu1 %v6448_v8  ;;  %5484 = vmatprep.mubr.msk.f32.mxu1 %vm6375_vm1, %v6376_v4 }
 0x87e   :  { %5702 = vmatprep.subr.bf16.mxu1 %v6374_v3 }
 0x881   :  { %5704 = vmatpush3.bf16.msra.mxu1 %v6460_v12 }
 0x882   :  { %5711 = vmatprep.subr.bf16.mxu1 %v6374_v3 }
 0x88a   :  { %v1857_v6 = vpop.permute.xlu1 %1856 }
 0x88b   :  { %5474 = vmatmul.mubr.msk.f32.vlgmr.msra.gmra.mrb[14].mxu0 %vm30_vm2, %v1857_v6  ;;  %5485 = vmatmul.mubr.msk.f32.vlgmr.msra.gmra.mrb[10].mxu1 %vm30_vm2, %v1857_v6 }
 0x88c   :  { %5707 = vmatpush3.bf16.msra.mxu0 %v6600_v50  ;;  %5495 = vmatprep.mubr.msk.f32.mxu0 %vm6375_vm1, %v6376_v4 }
 0x88d   :  { %5708 = vmatprep.subr.bf16.mxu0 %v6374_v3  ;;  %5713 = vmatpush3.bf16.msra.mxu1 %v6613_v56 }
 0x88e   :  { %5714 = vmatprep.subr.bf16.mxu1 %v6374_v3  ;;  %5506 = vmatprep.mubr.msk.f32.mxu1 %vm6375_vm1, %v6376_v4 }
 0x890   :  { %5710 = vmatpush3.bf16.msra.mxu0 %v6622_v61 }
 0x891   :  { %5717 = vmatprep.subr.bf16.mxu0 %v6374_v3  ;;  %5716 = vmatpush3.bf16.msra.mxu1 %v6626_v63 }
 0x892   :  { %5723 = vmatprep.subr.bf16.mxu1 %v6374_v3 }
 0x94f   :  { %v1830_v13 = vpop.f32.mrb[8].mxu1 }
 0x950   :  { %v5464_v9 = vpop.f32.mrb[9].mxu1 }
 0x95e   :  { %v1926_v48 = vpop.f32.mrb[14].mxu0  ;;  %v2143_v10 = vpop.f32.mrb[10].mxu1 }
 0x95f   :  { %v1927_v51 = vadd.f32 %v1926_v48, %v1830_v13  ;;  %v5475_v24 = vpop.f32.mrb[15].mxu0  ;;  %v5486_v15 = vpop.f32.mrb[11].mxu1  ;;  %v2163_v16 = vadd.f32 %v2143_v10, %v2069_v20  ;;  %v2148_v26 = vrot.slane %v2143_v10, 1  ;;  %v2149_v23 = vrot.slane %v2143_v10, 2 }
 0x960   :  { %v2151_v34 = vrot.slane %v2143_v10, 4  ;;  %v2150_v35 = vrot.slane %v2143_v10, 3  ;;  %v2153_v19 = vrot.slane %v2143_v10, 6  ;;  %v2152_v25 = vrot.slane %v2143_v10, 5 }
 0x961   :  { %6004 = vtanh.f32 %v2163_v16  ;;  %v2164_v7 = vadd.f32 %v2148_v26, %v2070_v5  ;;  %v2165_v11 = vadd.f32 %v2149_v23, %v2071_v46  ;;  %v1930_v37 = vadd.f32 %v6675_v62, %v1927_v51 }
 0x962   :  { %v2167_v28 = vadd.f32 %v2151_v34, %v2073_v18  ;;  %v2166_v17 = vadd.f32 %v2150_v35, %v2072_v41  ;;  %v2169_v40 = vadd.f32 %v2153_v19, %v2075_v14  ;;  %v2154_v55 = vrot.slane %v2143_v10, 7 }
 0x963   :  { %6006 = vtanh.f32 %v2164_v7  ;;  %v2168_v43 = vadd.f32 %v2152_v25, %v2074_v31  ;;  %v5172_v2 = vmul.f32 -1.442695, %v2163_v16  ;;  %v5173_v0 = vmul.f32 -1.442695, %v2164_v7 }
 0x964   :  { %6008 = vtanh.f32 %v2165_v11  ;;  %v2170_v49 = vadd.f32 %v2154_v55, %v2076_v32  ;;  %v5174_v44 = vmul.f32 -1.442695, %v2165_v11  ;;  %v5170_v6 = vmul.f32 -1.442695, %v1930_v37 }
 0x965   :  { %6010 = vtanh.f32 %v1930_v37  ;;  %v5176_v13 = vmul.f32 -1.442695, %v2167_v28  ;;  %v5175_v48 = vmul.f32 -1.442695, %v2166_v17  ;;  %v5178_v10 = vmul.f32 -1.442695, %v2169_v40 }
 0x966   :  { %6012 = vtanh.f32 %v2167_v28  ;;  %v5177_v51 = vmul.f32 -1.442695, %v2168_v43  ;;  %v5179_v20 = vmul.f32 -1.442695, %v2170_v49 }
 0x967   :  { %6014 = vtanh.f32 %v2166_v17 }
 0x968   :  { %6016 = vtanh.f32 %v2169_v40 }
 0x969   :  { %6018 = vtanh.f32 %v2168_v43 }
 0x96a   :  { %6020 = vtanh.f32 %v2170_v49 }
 0x96b   :  { %v6005_v30 = vpop.eup %6004  ;;  %6022 = vpow2.f32 %v5172_v2 }
 0x96c   :  { %2243 = vrot.lane.b32.xlu1 %v6005_v30, %s6377_s0  ;;  %6024 = vpow2.f32 %v5173_v0 }
 0x96d   :  { %v6007_v62 = vpop.eup %6006  ;;  %6026 = vpow2.f32 %v5174_v44 }
 0x96e   :  { %v6009_v27 = vpop.eup %6008  ;;  %2245 = vrot.lane.b32.xlu0 %v6007_v62, %s6377_s0  ;;  %6028 = vpow2.f32 %v5170_v6 }
 0x96f   :  { %v6011_v53 = vpop.eup %6010  ;;  %6030 = vpow2.f32 %v5176_v13 }
 0x970   :  { %2247 = vrot.lane.b32.xlu1 %v6009_v27, %s6377_s0  ;;  %v6013_v36 = vpop.eup %6012 }
 0x971   :  { %v6015_v1 = vpop.eup %6014 }
 0x972   :  { %1940 = vrot.lane.b32.xlu0 %v6011_v53, %s6377_s0  ;;  %v6017_v47 = vpop.eup %6016 }
 0x973   :  { %v6019_v60 = vpop.eup %6018 }
 0x974   :  { %2251 = vrot.lane.b32.xlu1 %v6013_v36, %s6377_s0  ;;  %v6021_v39 = vpop.eup %6020 }
 0x975   :  { %v6023_v33 = vpop.eup %6022 }
 0x976   :  { %2249 = vrot.lane.b32.xlu0 %v6015_v1, %s6377_s0  ;;  %v2195_v9 = vadd.f32 1.0, %v6023_v33  ;;  %v6025_v24 = vpop.eup %6024 }
 0x977   :  { %v6027_v15 = vpop.eup %6026  ;;  %v2196_v16 = vadd.f32 1.0, %v6025_v24 }
 0x978   :  { %2255 = vrot.lane.b32.xlu1 %v6017_v47, %s6377_s0  ;;  %6032 = vrcp.f32 %v2195_v9  ;;  %v6029_v26 = vpop.eup %6028  ;;  %v2197_v23 = vadd.f32 1.0, %v6027_v15 }
 0x979   :  { %6034 = vpow2.f32 %v5175_v48  ;;  %v6031_v5 = vpop.eup %6030  ;;  %v1934_v7 = vadd.f32 1.0, %v6029_v26 }
 0x97a   :  { %2253 = vrot.lane.b32.xlu0 %v6019_v60, %s6377_s0  ;;  %6036 = vpow2.f32 %v5178_v10  ;;  %v2199_v37 = vadd.f32 1.0, %v6031_v5 }
 0x97b   :  { %6038 = vpow2.f32 %v5177_v51 }
 0x97c   :  { %6040 = vpow2.f32 %v5179_v20 }
 0x97d   :  { %6042 = vrcp.f32 %v2196_v16 }
 0x97e   :  { %2257 = vrot.lane.b32.xlu0 %v6021_v39, %s6377_s0  ;;  %6044 = vrcp.f32 %v2197_v23 }
 0x97f   :  { %6046 = vrcp.f32 %v1934_v7 }
 0x980   :  { %6048 = vrcp.f32 %v2199_v37 }
 0x982   :  { %v6971_v46 = vpop.eup %6032 }
 0x983   :  { %v6035_v11 = vpop.eup %6034  ;;  %v2227_v51 = vmul.f32 %v6971_v46, %v6867_v21 }
 0x984   :  { %v6037_v18 = vpop.eup %6036  ;;  %v2198_v35 = vadd.f32 1.0, %v6035_v11 }
 0x985   :  { %v6039_v19 = vpop.eup %6038  ;;  %v2201_v28 = vadd.f32 1.0, %v6037_v18 }
 0x986   :  { %6050 = vrcp.f32 %v2198_v35  ;;  %v2200_v41 = vadd.f32 1.0, %v6039_v19  ;;  %v6041_v14 = vpop.eup %6040 }
 0x987   :  { %6052 = vrcp.f32 %v2201_v28  ;;  %v6975_v25 = vpop.eup %6042  ;;  %v2202_v62 = vadd.f32 1.0, %v6041_v14 }
 0x988   :  { %v6977_v40 = vpop.eup %6044  ;;  %6054 = vrcp.f32 %v2200_v41  ;;  %v2228_v20 = vmul.f32 %v6975_v25, %v6874_v52 }
 0x989   :  { %v6982_v27 = vpop.eup %6046  ;;  %6056 = vrcp.f32 %v2202_v62  ;;  %v2229_v26 = vmul.f32 %v6977_v40, %v6876_v29 }
 0x98a   :  { %v6985_v49 = vpop.eup %6048  ;;  %v1938_v21 = vmul.f32 %v6982_v27, %v6885_v54 }
 0x98b   :  { %v2231_v52 = vmul.f32 %v6985_v49, %v6887_v58 }
 0x990   :  { %v6990_v47 = vpop.eup %6050 }
 0x991   :  { %v6993_v39 = vpop.eup %6052  ;;  %v2230_v18 = vmul.f32 %v6990_v47, %v6895_v42 }
 0x992   :  { %v6998_v33 = vpop.eup %6054  ;;  %v2233_v35 = vmul.f32 %v6993_v39, %v6897_v59 }
 0x993   :  { %v7003_v9 = vpop.eup %6056  ;;  %v2232_v41 = vmul.f32 %v6998_v33, %v6903_v45 }
 0x994   :  { %v2234_v59 = vmul.f32 %v7003_v9, %v6910_v57 }
 0x9de   :  { %v2244_v34 = vpop.permute.xlu1 %2243 }
 0x9df   :  { %v2267_v30 = vmul.f32 %v6971_v46, %v2244_v34 }
 0x9e0   :  { %v2246_v17 = vpop.permute.xlu0 %2245 }
 0x9e1   :  { %2283 = vrot.lane.b32.xlu0 %v2267_v30, %s6378_s3  ;;  %v2268_v31 = vmul.f32 %v6975_v25, %v2246_v17 }
 0x9e2   :  { %v2248_v55 = vpop.permute.xlu1 %2247 }
 0x9e3   :  { %v2269_v43 = vmul.f32 %v6977_v40, %v2248_v55  ;;  %2285 = vrot.lane.b32.xlu1 %v2268_v31, %s6378_s3 }
 0x9e4   :  { %v1941_v32 = vpop.permute.xlu0 %1940 }
 0x9e5   :  { %2287 = vrot.lane.b32.xlu0 %v2269_v43, %s6378_s3  ;;  %v1943_v53 = vmul.f32 %v6982_v27, %v1941_v32 }
 0x9e6   :  { %v2252_v36 = vpop.permute.xlu1 %2251 }
 0x9e7   :  { %v2271_v1 = vmul.f32 %v6985_v49, %v2252_v36  ;;  %1945 = vrot.lane.b32.xlu1 %v1943_v53, %s6378_s3 }
 0x9e8   :  { %v2250_v60 = vpop.permute.xlu0 %2249 }
 0x9e9   :  { %2291 = vrot.lane.b32.xlu0 %v2271_v1, %s6378_s3  ;;  %v2270_v2 = vmul.f32 %v6990_v47, %v2250_v60 }
 0x9ea   :  { %v2256_v0 = vpop.permute.xlu1 %2255 }
 0x9eb   :  { %v2273_v44 = vmul.f32 %v6993_v39, %v2256_v0  ;;  %2289 = vrot.lane.b32.xlu1 %v2270_v2, %s6378_s3 }
 0x9ec   :  { %v2254_v6 = vpop.permute.xlu0 %2253 }
 0x9ed   :  { %2295 = vrot.lane.b32.xlu0 %v2273_v44, %s6378_s3  ;;  %v2272_v13 = vmul.f32 %v6998_v33, %v2254_v6 }
 0x9ef   :  { %2293 = vrot.lane.b32.xlu1 %v2272_v13, %s6378_s3 }
 0x9f0   :  { %v2258_v48 = vpop.permute.xlu0 %2257 }
 0x9f1   :  { %v2274_v10 = vmul.f32 %v7003_v9, %v2258_v48 }
 0x9f3   :  { %2297 = vrot.lane.b32.xlu1 %v2274_v10, %s6378_s3 }
 0xa53   :  { %v2284_v24 = vpop.permute.xlu0 %2283 }
 0xa54   :  { %v7009_v15 = vadd.f32 %v2284_v24, %v2227_v51 }
 0xa55   :  { %v2286_v16 = vpop.permute.xlu1 %2285 }
 0xa56   :  { %6058 = vtanh.f32 %v7009_v15  ;;  %v7016_v23 = vadd.f32 %v2286_v16, %v2228_v20 }
 0xa57   :  { %v2288_v5 = vpop.permute.xlu0 %2287 }
 0xa58   :  { %v7018_v7 = vadd.f32 %v2288_v5, %v2229_v26  ;;  %6060 = vtanh.f32 %v7016_v23 }
 0xa59   :  { %v1946_v11 = vpop.permute.xlu1 %1945 }
 0xa5a   :  { %6062 = vtanh.f32 %v7018_v7  ;;  %v7027_v29 = vadd.f32 %v1946_v11, %v1938_v21 }
 0xa5b   :  { %v2292_v30 = vpop.permute.xlu0 %2291 }
 0xa5c   :  { %v7029_v37 = vadd.f32 %v2292_v30, %v2231_v52  ;;  %6064 = vtanh.f32 %v7027_v29 }
 0xa5d   :  { %v2290_v54 = vpop.permute.xlu1 %2289 }
 0xa5e   :  { %6066 = vtanh.f32 %v7029_v37  ;;  %v7037_v19 = vadd.f32 %v2290_v54, %v2230_v18 }
 0xa5f   :  { %v2296_v58 = vpop.permute.xlu0 %2295 }
 0xa60   :  { %v6059_v34 = vpop.eup %6058  ;;  %v7039_v28 = vadd.f32 %v2296_v58, %v2233_v35  ;;  %6068 = vtanh.f32 %v7037_v19 }
 0xa61   :  { %2331 = vrot.lane.b32.xlu1 %v6059_v34, %s6377_s0  ;;  %v2294_v14 = vpop.permute.xlu1 %2293 }
 0xa62   :  { %6070 = vtanh.f32 %v7039_v28  ;;  %v6061_v42 = vpop.eup %6060  ;;  %v7045_v17 = vadd.f32 %v2294_v14, %v2232_v41 }
 0xa63   :  { %2333 = vrot.lane.b32.xlu0 %v6061_v42, %s6377_s0 }
 0xa64   :  { %v6063_v31 = vpop.eup %6062  ;;  %6072 = vtanh.f32 %v7045_v17 }
 0xa65   :  { %2335 = vrot.lane.b32.xlu1 %v6063_v31, %s6377_s0  ;;  %v2298_v55 = vpop.permute.xlu1 %2297 }
 0xa66   :  { %v6065_v43 = vpop.eup %6064  ;;  %v7052_v62 = vadd.f32 %v2298_v55, %v2234_v59 }
 0xa67   :  { %1951 = vrot.lane.b32.xlu0 %v6065_v43, %s6377_s0 }
 0xa68   :  { %v6067_v45 = vpop.eup %6066  ;;  %6074 = vtanh.f32 %v7052_v62 }
 0xa69   :  { %2339 = vrot.lane.b32.xlu1 %v6067_v45, %s6377_s0 }
 0xa6a   :  { %v6069_v32 = vpop.eup %6068 }
 0xa6b   :  { %2337 = vrot.lane.b32.xlu0 %v6069_v32, %s6377_s0  ;;  %v2672_v32 = vld [vmem:[#allocation2 + $0x4] sm:$0x1] }
 0xa6c   :  { %v6071_v53 = vpop.eup %6070 }
 0xa6d   :  { %2343 = vrot.lane.b32.xlu1 %v6071_v53, %s6377_s0 }
 0xa6e   :  { %v6073_v36 = vpop.eup %6072 }
 0xa6f   :  { %2341 = vrot.lane.b32.xlu0 %v6073_v36, %s6377_s0 }
 0xa72   :  { %v6075_v57 = vpop.eup %6074 }
 0xa73   :  { %2345 = vrot.lane.b32.xlu0 %v6075_v57, %s6377_s0 }
 0xad3   :  { %v2332_v1 = vpop.permute.xlu1 %2331 }
 0xad4   :  { %v2355_v51 = vmul.f32 %v6971_v46, %v2332_v1  ;;  %v2673_v1 = vld [vmem:[#allocation2 + $0xc] sm:$0x1] }
 0xad5   :  { %v2334_v60 = vpop.permute.xlu0 %2333 }
 0xad6   :  { %v2356_v2 = vmul.f32 %v6975_v25, %v2334_v60  ;;  %v2674_v60 = vld [vmem:[#allocation2 + $0x14] sm:$0x1] }
 0xad7   :  { %v2336_v0 = vpop.permute.xlu1 %2335 }
 0xad8   :  { %v2357_v44 = vmul.f32 %v6977_v40, %v2336_v0  ;;  %v2445_v13 = vrot.slane %v2356_v2, 7 }
 0xad9   :  { %v1952_v6 = vpop.permute.xlu0 %1951 }
 0xada   :  { %v7064_v48 = vmul.f32 %v6982_v27, %v1952_v6  ;;  %v2447_v24 = vrot.slane %v2357_v44, 6  ;;  %v2446_v16 = vsel %vm619_vm3, %v2445_v13, %v2355_v51  ;;  %v7106_v13 = vld [vmem:[%s8204_s6] ss:$0 sm:$0xff]  ;;  %v2676_v51 = vld [vmem:[#allocation2 + $0x24] sm:$0x1] }
 0xadb   :  { %v2340_v10 = vpop.permute.xlu1 %2339 }
 0xadc   :  { %2363 = vrot.lane.b32.xlu1 %v7064_v48, %s6378_s3  ;;  %v2359_v26 = vmul.f32 %v6985_v49, %v2340_v10  ;;  %v2448_v34 = vsel %vm622_vm4, %v2447_v24, %v2446_v16 }
 0xadd   :  { %v2338_v20 = vpop.permute.xlu0 %2337 }
 0xade   :  { %v2358_v25 = vmul.f32 %v6990_v47, %v2338_v20  ;;  %v2451_v11 = vrot.slane %v2359_v26, 4  ;;  %v2678_v26 = vld [vmem:[#allocation2 + $0x34] sm:$0x1] }
 0xadf   :  { %v2344_v5 = vpop.permute.xlu1 %2343 }
 0xae0   :  { %v2449_v40 = vrot.slane %v2358_v25, 5  ;;  %v2361_v52 = vmul.f32 %v6993_v39, %v2344_v5  ;;  %v2675_v25 = vld [vmem:[#allocation2 + $0x1c] sm:$0x1] }
 0xae1   :  { %v2342_v27 = vpop.permute.xlu0 %2341 }
 0xae2   :  { %v2450_v21 = vsel %vm625_vm5, %v2449_v40, %v2448_v34  ;;  %v2360_v46 = vmul.f32 %v6998_v33, %v2342_v27  ;;  %v2455_v35 = vrot.slane %v2361_v52, 2  ;;  %v2677_v27 = vld [vmem:[#allocation2 + $0x2c] sm:$0x1] }
 0xae3   :  { %v2452_v18 = vsel %vm628_vm6, %v2451_v11, %v2450_v21 }
 0xae4   :  { %v2453_v30 = vrot.slane %v2360_v46, 3 }
 0xae5   :  { %v2346_v54 = vpop.permute.xlu0 %2345 }
 0xae6   :  { %v2454_v47 = vsel %vm631_vm7, %v2453_v30, %v2452_v18  ;;  %v2362_v49 = vmul.f32 %v7003_v9, %v2346_v54  ;;  %v2679_v30 = vld [vmem:[#allocation2 + $0x3c] sm:$0x1] }
 0xae7   :  { %v2456_v41 = vsel %vm634_vm8, %v2455_v35, %v2454_v47 }
 0xae8   :  { %v2457_v58 = vrot.slane %v2362_v49, 1 }
 0xaea   :  { %v2458_v14 = vsel %vm637_vm9, %v2457_v58, %v2456_v41 }
 0xaeb   :  { %2459 = vrot.lane.b32.xlu0 %v2458_v14, %s6378_s3 }
 0xb4e   :  { %v2364_v33 = vpop.permute.xlu1 %2363 }
 0xb4f   :  { %5496 = vmatmul.mubr.msk.f32.vlgmr.msra.gmra.mrb[16].mxu0 %vm30_vm2, %v2364_v33 }
 0xb50   :  { %5719 = vmatpush3.bf16.msra.mxu0 %v6448_v8  ;;  %5517 = vmatprep.mubr.msk.f32.mxu0 %vm6375_vm1, %v6376_v4 }
 0xb51   :  { %5720 = vmatprep.subr.bf16.mxu0 %v6374_v3 }
 0xb54   :  { %5722 = vmatpush3.bf16.msra.mxu0 %v6460_v12 }
 0xb55   :  { %5729 = vmatprep.subr.bf16.mxu0 %v6374_v3 }
 0xb5d   :  { %v2460_v39 = vpop.permute.xlu0 %2459 }
 0xb5e   :  { %5507 = vmatmul.mubr.msk.f32.vlgmr.msra.gmra.mrb[12].mxu1 %vm30_vm2, %v2460_v39  ;;  %5518 = vmatmul.mubr.msk.f32.vlgmr.msra.gmra.mrb[18].mxu0 %vm30_vm2, %v2460_v39 }
 0xb5f   :  { %5725 = vmatpush3.bf16.msra.mxu1 %v6600_v50  ;;  %5528 = vmatprep.mubr.msk.f32.mxu1 %vm6375_vm1, %v6376_v4 }
 0xb60   :  { %5726 = vmatprep.subr.bf16.mxu1 %v6374_v3  ;;  %5731 = vmatpush3.bf16.msra.mxu0 %v6613_v56 }
 0xb61   :  { %5732 = vmatprep.subr.bf16.mxu0 %v6374_v3  ;;  %5539 = vmatprep.mubr.msk.f32.mxu0 %vm6375_vm1, %v6376_v4 }
 0xb63   :  { %5728 = vmatpush3.bf16.msra.mxu1 %v6622_v61 }
 0xb64   :  { %5735 = vmatprep.subr.bf16.mxu1 %v6374_v3  ;;  %5734 = vmatpush3.bf16.msra.mxu0 %v6626_v63 }
 0xb65   :  { %5741 = vmatprep.subr.bf16.mxu0 %v6374_v3 }
 0xc22   :  { %v2433_v9 = vpop.f32.mrb[16].mxu0 }
 0xc23   :  { %v5497_v42 = vpop.f32.mrb[17].mxu0 }
 0xc31   :  { %v2529_v31 = vpop.f32.mrb[12].mxu1  ;;  %v2746_v59 = vpop.f32.mrb[18].mxu0 }
 0xc32   :  { %v2530_v55 = vadd.f32 %v2529_v31, %v2433_v9  ;;  %v5508_v43 = vpop.f32.mrb[13].mxu1  ;;  %v5519_v45 = vpop.f32.mrb[19].mxu0  ;;  %v2766_v53 = vadd.f32 %v2746_v59, %v2672_v32  ;;  %v2751_v36 = vrot.slane %v2746_v59, 1  ;;  %v2752_v57 = vrot.slane %v2746_v59, 2 }
 0xc33   :  { %v2754_v0 = vrot.slane %v2746_v59, 4  ;;  %v2753_v24 = vrot.slane %v2746_v59, 3  ;;  %v2756_v20 = vrot.slane %v2746_v59, 6  ;;  %v2755_v40 = vrot.slane %v2746_v59, 5 }
 0xc34   :  { %6076 = vtanh.f32 %v2766_v53  ;;  %v2767_v2 = vadd.f32 %v2751_v36, %v2673_v1  ;;  %v2768_v44 = vadd.f32 %v2752_v57, %v2674_v60  ;;  %v2533_v10 = vadd.f32 %v7106_v13, %v2530_v55 }
 0xc35   :  { %v2770_v16 = vadd.f32 %v2754_v0, %v2676_v51  ;;  %v2769_v5 = vadd.f32 %v2753_v24, %v2675_v25  ;;  %v2772_v34 = vadd.f32 %v2756_v20, %v2678_v26  ;;  %v2757_v21 = vrot.slane %v2746_v59, 7 }
 0xc36   :  { %6078 = vtanh.f32 %v2767_v2  ;;  %v2771_v46 = vadd.f32 %v2755_v40, %v2677_v27  ;;  %v5184_v14 = vmul.f32 -1.442695, %v2766_v53  ;;  %v5185_v33 = vmul.f32 -1.442695, %v2767_v2 }
 0xc37   :  { %6080 = vtanh.f32 %v2768_v44  ;;  %v2773_v18 = vadd.f32 %v2757_v21, %v2679_v30  ;;  %v5186_v39 = vmul.f32 -1.442695, %v2768_v44  ;;  %v5182_v42 = vmul.f32 -1.442695, %v2533_v10 }
 0xc38   :  { %6082 = vtanh.f32 %v2533_v10  ;;  %v5188_v31 = vmul.f32 -1.442695, %v2770_v16  ;;  %v5187_v55 = vmul.f32 -1.442695, %v2769_v5  ;;  %v5190_v43 = vmul.f32 -1.442695, %v2772_v34 }
 0xc39   :  { %6084 = vtanh.f32 %v2770_v16  ;;  %v5189_v45 = vmul.f32 -1.442695, %v2771_v46  ;;  %v5191_v53 = vmul.f32 -1.442695, %v2773_v18 }
 0xc3a   :  { %6086 = vtanh.f32 %v2769_v5 }
 0xc3b   :  { %6088 = vtanh.f32 %v2772_v34 }
 0xc3c   :  { %6090 = vtanh.f32 %v2771_v46 }
 0xc3d   :  { %6092 = vtanh.f32 %v2773_v18 }
 0xc3e   :  { %v6077_v6 = vpop.eup %6076  ;;  %6094 = vpow2.f32 %v5184_v14 }
 0xc3f   :  { %2846 = vrot.lane.b32.xlu0 %v6077_v6, %s6377_s0  ;;  %6096 = vpow2.f32 %v5185_v33 }
 0xc40   :  { %v6079_v11 = vpop.eup %6078  ;;  %6098 = vpow2.f32 %v5186_v39 }
 0xc41   :  { %v6081_v52 = vpop.eup %6080  ;;  %2848 = vrot.lane.b32.xlu1 %v6079_v11, %s6377_s0  ;;  %6100 = vpow2.f32 %v5182_v42 }
 0xc42   :  { %v6083_v54 = vpop.eup %6082  ;;  %6102 = vpow2.f32 %v5188_v31 }
 0xc43   :  { %2850 = vrot.lane.b32.xlu0 %v6081_v52, %s6377_s0  ;;  %v6085_v47 = vpop.eup %6084 }
 0xc44   :  { %v6087_v49 = vpop.eup %6086 }
 0xc45   :  { %2543 = vrot.lane.b32.xlu1 %v6083_v54, %s6377_s0  ;;  %v6089_v35 = vpop.eup %6088 }
 0xc46   :  { %v6091_v58 = vpop.eup %6090 }
 0xc47   :  { %2854 = vrot.lane.b32.xlu0 %v6085_v47, %s6377_s0  ;;  %v6093_v41 = vpop.eup %6092 }
 0xc48   :  { %v6095_v9 = vpop.eup %6094 }
 0xc49   :  { %2852 = vrot.lane.b32.xlu1 %v6087_v49, %s6377_s0  ;;  %v2798_v59 = vadd.f32 1.0, %v6095_v9  ;;  %v6097_v32 = vpop.eup %6096 }
 0xc4a   :  { %v6099_v36 = vpop.eup %6098  ;;  %v2799_v57 = vadd.f32 1.0, %v6097_v32 }
 0xc4b   :  { %2858 = vrot.lane.b32.xlu0 %v6089_v35, %s6377_s0  ;;  %6104 = vrcp.f32 %v2798_v59  ;;  %v6101_v1 = vpop.eup %6100  ;;  %v2800_v60 = vadd.f32 1.0, %v6099_v36 }
 0xc4c   :  { %6106 = vpow2.f32 %v5187_v55  ;;  %v6103_v2 = vpop.eup %6102  ;;  %v2537_v44 = vadd.f32 1.0, %v6101_v1 }
 0xc4d   :  { %2856 = vrot.lane.b32.xlu1 %v6091_v58, %s6377_s0  ;;  %6108 = vpow2.f32 %v5190_v43  ;;  %v2802_v24 = vadd.f32 1.0, %v6103_v2 }
 0xc4e   :  { %6110 = vpow2.f32 %v5189_v45 }
 0xc4f   :  { %6112 = vpow2.f32 %v5191_v53 }
 0xc50   :  { %6114 = vrcp.f32 %v2799_v57 }
 0xc51   :  { %2860 = vrot.lane.b32.xlu1 %v6093_v41, %s6377_s0  ;;  %6116 = vrcp.f32 %v2800_v60 }
 0xc52   :  { %6118 = vrcp.f32 %v2537_v44 }
 0xc53   :  { %6120 = vrcp.f32 %v2802_v24 }
 0xc55   :  { %v7118_v0 = vpop.eup %6104 }
 0xc56   :  { %v6107_v10 = vpop.eup %6106  ;;  %v2830_v36 = vmul.f32 %v7118_v0, %v7009_v15 }
 0xc57   :  { %v6109_v20 = vpop.eup %6108  ;;  %v2801_v16 = vadd.f32 1.0, %v6107_v10 }
 0xc58   :  { %v6111_v25 = vpop.eup %6110  ;;  %v2804_v26 = vadd.f32 1.0, %v6109_v20 }
 0xc59   :  { %6122 = vrcp.f32 %v2801_v16  ;;  %v2803_v40 = vadd.f32 1.0, %v6111_v25  ;;  %v6113_v5 = vpop.eup %6112 }
 0xc5a   :  { %6124 = vrcp.f32 %v2804_v26  ;;  %v7122_v34 = vpop.eup %6114  ;;  %v2805_v30 = vadd.f32 1.0, %v6113_v5 }
 0xc5b   :  { %v7124_v21 = vpop.eup %6116  ;;  %6126 = vrcp.f32 %v2803_v40  ;;  %v2831_v1 = vmul.f32 %v7122_v34, %v7016_v23 }
 0xc5c   :  { %v7129_v18 = vpop.eup %6118  ;;  %6128 = vrcp.f32 %v2805_v30  ;;  %v2832_v2 = vmul.f32 %v7124_v21, %v7018_v7 }
 0xc5d   :  { %v7132_v47 = vpop.eup %6120  ;;  %v2541_v15 = vmul.f32 %v7129_v18, %v7027_v29 }
 0xc5e   :  { %v2834_v23 = vmul.f32 %v7132_v47, %v7029_v37 }
 0xc63   :  { %v7137_v41 = vpop.eup %6122 }
 0xc64   :  { %v7140_v33 = vpop.eup %6124  ;;  %v2833_v25 = vmul.f32 %v7137_v41, %v7037_v19 }
 0xc65   :  { %v7145_v31 = vpop.eup %6126  ;;  %v2836_v26 = vmul.f32 %v7140_v33, %v7039_v28 }
 0xc66   :  { %v7150_v43 = vpop.eup %6128 }
 0xc67   :  { %v2837_v28 = vmul.f32 %v7150_v43, %v7052_v62 }
 0xcb1   :  { %v2847_v6 = vpop.permute.xlu0 %2846 }
 0xcb2   :  { %v2870_v51 = vmul.f32 %v7118_v0, %v2847_v6 }
 0xcb3   :  { %v2849_v27 = vpop.permute.xlu1 %2848 }
 0xcb4   :  { %2886 = vrot.lane.b32.xlu1 %v2870_v51, %s6378_s3  ;;  %v2871_v46 = vmul.f32 %v7122_v34, %v2849_v27  ;;  %v2835_v27 = vmul.f32 %v7145_v31, %v7045_v17 }
 0xcb5   :  { %v2851_v11 = vpop.permute.xlu0 %2850 }
 0xcb6   :  { %v2872_v52 = vmul.f32 %v7124_v21, %v2851_v11  ;;  %2888 = vrot.lane.b32.xlu0 %v2871_v46, %s6378_s3 }
 0xcb7   :  { %v2544_v54 = vpop.permute.xlu1 %2543 }
 0xcb8   :  { %2890 = vrot.lane.b32.xlu1 %v2872_v52, %s6378_s3  ;;  %v2546_v49 = vmul.f32 %v7129_v18, %v2544_v54 }
 0xcb9   :  { %v2855_v35 = vpop.permute.xlu0 %2854 }
 0xcba   :  { %v2874_v58 = vmul.f32 %v7132_v47, %v2855_v35  ;;  %2548 = vrot.lane.b32.xlu0 %v2546_v49, %s6378_s3 }
 0xcbb   :  { %v2853_v14 = vpop.permute.xlu1 %2852 }
 0xcbc   :  { %2894 = vrot.lane.b32.xlu1 %v2874_v58, %s6378_s3  ;;  %v2873_v39 = vmul.f32 %v7137_v41, %v2853_v14 }
 0xcbd   :  { %v2859_v9 = vpop.permute.xlu0 %2858 }
 0xcbe   :  { %v2876_v42 = vmul.f32 %v7140_v33, %v2859_v9  ;;  %2892 = vrot.lane.b32.xlu0 %v2873_v39, %s6378_s3 }
 0xcbf   :  { %v2857_v59 = vpop.permute.xlu1 %2856 }
 0xcc0   :  { %2898 = vrot.lane.b32.xlu1 %v2876_v42, %s6378_s3  ;;  %v2875_v55 = vmul.f32 %v7145_v31, %v2857_v59 }
 0xcc2   :  { %2896 = vrot.lane.b32.xlu0 %v2875_v55, %s6378_s3 }
 0xcc3   :  { %v2861_v45 = vpop.permute.xlu1 %2860 }
 0xcc4   :  { %v2877_v32 = vmul.f32 %v7150_v43, %v2861_v45 }
 0xcc6   :  { %2900 = vrot.lane.b32.xlu0 %v2877_v32, %s6378_s3 }
 0xd26   :  { %v2887_v53 = vpop.permute.xlu1 %2886 }
 0xd27   :  { %v7156_v57 = vadd.f32 %v2887_v53, %v2830_v36 }
 0xd28   :  { %v2889_v60 = vpop.permute.xlu0 %2888 }
 0xd29   :  { %6130 = vtanh.f32 %v7156_v57  ;;  %v7163_v44 = vadd.f32 %v2889_v60, %v2831_v1 }
 0xd2a   :  { %v2891_v6 = vpop.permute.xlu1 %2890 }
 0xd2b   :  { %v7165_v10 = vadd.f32 %v2891_v6, %v2832_v2  ;;  %6132 = vtanh.f32 %v7163_v44 }
 0xd2c   :  { %v2549_v24 = vpop.permute.xlu0 %2548 }
 0xd2d   :  { %6134 = vtanh.f32 %v7165_v10  ;;  %v7174_v7 = vadd.f32 %v2549_v24, %v2541_v15 }
 0xd2e   :  { %v2895_v20 = vpop.permute.xlu1 %2894 }
 0xd2f   :  { %v7176_v16 = vadd.f32 %v2895_v20, %v2834_v23  ;;  %6136 = vtanh.f32 %v7174_v7 }
 0xd30   :  { %v2893_v29 = vpop.permute.xlu0 %2892 }
 0xd31   :  { %6138 = vtanh.f32 %v7176_v16  ;;  %v7184_v40 = vadd.f32 %v2893_v29, %v2833_v25 }
 0xd32   :  { %v2899_v37 = vpop.permute.xlu1 %2898 }
 0xd33   :  { %v6131_v51 = vpop.eup %6130  ;;  %v7186_v5 = vadd.f32 %v2899_v37, %v2836_v26  ;;  %6140 = vtanh.f32 %v7184_v40 }
 0xd34   :  { %2934 = vrot.lane.b32.xlu0 %v6131_v51, %s6377_s0  ;;  %v2897_v46 = vpop.permute.xlu0 %2896 }
 0xd35   :  { %6142 = vtanh.f32 %v7186_v5  ;;  %v6133_v19 = vpop.eup %6132  ;;  %v7192_v11 = vadd.f32 %v2897_v46, %v2835_v27 }
 0xd36   :  { %2936 = vrot.lane.b32.xlu1 %v6133_v19, %s6377_s0 }
 0xd37   :  { %v6135_v52 = vpop.eup %6134  ;;  %6144 = vtanh.f32 %v7192_v11 }
 0xd38   :  { %2938 = vrot.lane.b32.xlu0 %v6135_v52, %s6377_s0  ;;  %v2901_v30 = vpop.permute.xlu0 %2900 }
 0xd39   :  { %v6137_v54 = vpop.eup %6136  ;;  %v7199_v49 = vadd.f32 %v2901_v30, %v2837_v28 }
 0xd3a   :  { %2554 = vrot.lane.b32.xlu1 %v6137_v54, %s6377_s0 }
 0xd3b   :  { %v6139_v17 = vpop.eup %6138  ;;  %6146 = vtanh.f32 %v7199_v49 }
 0xd3c   :  { %2942 = vrot.lane.b32.xlu0 %v6139_v17, %s6377_s0 }
 0xd3d   :  { %v6141_v35 = vpop.eup %6140 }
 0xd3e   :  { %2940 = vrot.lane.b32.xlu1 %v6141_v35, %s6377_s0 }
 0xd3f   :  { %v6143_v58 = vpop.eup %6142 }
 0xd40   :  { %2946 = vrot.lane.b32.xlu0 %v6143_v58, %s6377_s0 }
 0xd41   :  { %v6145_v14 = vpop.eup %6144 }
 0xd42   :  { %2944 = vrot.lane.b32.xlu1 %v6145_v14, %s6377_s0  ;;  %v3275_v14 = vld [vmem:[#allocation2 + $0x5] sm:$0x1] }
 0xd45   :  { %v6147_v62 = vpop.eup %6146 }
 0xd46   :  { %2948 = vrot.lane.b32.xlu1 %v6147_v62, %s6377_s0 }
 0xda6   :  { %v2935_v39 = vpop.permute.xlu0 %2934 }
 0xda7   :  { %v2958_v1 = vmul.f32 %v7118_v0, %v2935_v39 }
 0xda8   :  { %v2937_v9 = vpop.permute.xlu1 %2936 }
 0xda9   :  { %v2959_v42 = vmul.f32 %v7122_v34, %v2937_v9 }
 0xdaa   :  { %v2939_v59 = vpop.permute.xlu0 %2938 }
 0xdab   :  { %v2960_v55 = vmul.f32 %v7124_v21, %v2939_v59  ;;  %v3048_v32 = vrot.slane %v2959_v42, 7  ;;  %v3276_v42 = vld [vmem:[#allocation2 + $0xd] sm:$0x1]  ;;  %v3277_v59 = vld [vmem:[#allocation2 + $0x15] sm:$0x1] }
 0xdac   :  { %v2555_v45 = vpop.permute.xlu1 %2554 }
 0xdad   :  { %v7211_v36 = vmul.f32 %v7129_v18, %v2555_v45  ;;  %v3050_v60 = vrot.slane %v2960_v55, 6  ;;  %v3049_v6 = vsel %vm619_vm3, %v3048_v32, %v2958_v1 }
 0xdae   :  { %v2943_v53 = vpop.permute.xlu0 %2942 }
 0xdaf   :  { %2966 = vrot.lane.b32.xlu0 %v7211_v36, %s6378_s3  ;;  %v2962_v51 = vmul.f32 %v7132_v47, %v2943_v53  ;;  %v3051_v24 = vsel %vm622_vm4, %v3050_v60, %v3049_v6  ;;  %v3279_v60 = vld [vmem:[#allocation2 + $0x25] sm:$0x1] }
 0xdb0   :  { %v2941_v2 = vpop.permute.xlu1 %2940 }
 0xdb1   :  { %v2961_v34 = vmul.f32 %v7137_v41, %v2941_v2  ;;  %v3054_v20 = vrot.slane %v2962_v51, 4  ;;  %v3278_v51 = vld [vmem:[#allocation2 + $0x1d] sm:$0x1] }
 0xdb2   :  { %v2947_v15 = vpop.permute.xlu0 %2946 }
 0xdb3   :  { %v3052_v21 = vrot.slane %v2961_v34, 5  ;;  %v2964_v25 = vmul.f32 %v7140_v33, %v2947_v15 }
 0xdb4   :  { %v2945_v18 = vpop.permute.xlu1 %2944 }
 0xdb5   :  { %v3053_v23 = vsel %vm625_vm5, %v3052_v21, %v3051_v24  ;;  %v2963_v0 = vmul.f32 %v7145_v31, %v2945_v18  ;;  %v3058_v27 = vrot.slane %v2964_v25, 2  ;;  %v3281_v21 = vld [vmem:[#allocation2 + $0x35] sm:$0x1] }
 0xdb6   :  { %v3055_v26 = vsel %vm628_vm6, %v3054_v20, %v3053_v23  ;;  %v3280_v23 = vld [vmem:[#allocation2 + $0x2d] sm:$0x1] }
 0xdb7   :  { %v3056_v29 = vrot.slane %v2963_v0, 3 }
 0xdb8   :  { %v2949_v37 = vpop.permute.xlu1 %2948 }
 0xdb9   :  { %v3057_v41 = vsel %vm631_vm7, %v3056_v29, %v3055_v26  ;;  %v2965_v47 = vmul.f32 %v7150_v43, %v2949_v37  ;;  %v3282_v26 = vld [vmem:[#allocation2 + $0x3d] sm:$0x1] }
 0xdba   :  { %v3059_v19 = vsel %vm634_vm8, %v3058_v27, %v3057_v41 }
 0xdbb   :  { %v3060_v46 = vrot.slane %v2965_v47, 1 }
 0xdbd   :  { %v3061_v52 = vsel %vm637_vm9, %v3060_v46, %v3059_v19 }
 0xdbe   :  { %3062 = vrot.lane.b32.xlu1 %v3061_v52, %s6378_s3 }
 0xe21   :  { %v2967_v31 = vpop.permute.xlu0 %2966 }
 0xe22   :  { %5529 = vmatmul.mubr.msk.f32.vlgmr.msra.gmra.mrb[14].mxu1 %vm30_vm2, %v2967_v31 }
 0xe23   :  { %5737 = vmatpush3.bf16.msra.mxu1 %v6448_v8  ;;  %5550 = vmatprep.mubr.msk.f32.mxu1 %vm6375_vm1, %v6376_v4 }
 0xe24   :  { %5738 = vmatprep.subr.bf16.mxu1 %v6374_v3 }
 0xe27   :  { %5740 = vmatpush3.bf16.msra.mxu1 %v6460_v12 }
 0xe28   :  { %5747 = vmatprep.subr.bf16.mxu1 %v6374_v3 }
 0xe30   :  { %v3063_v33 = vpop.permute.xlu1 %3062 }
 0xe31   :  { %5540 = vmatmul.mubr.msk.f32.vlgmr.msra.gmra.mrb[20].mxu0 %vm30_vm2, %v3063_v33  ;;  %5551 = vmatmul.mubr.msk.f32.vlgmr.msra.gmra.mrb[16].mxu1 %vm30_vm2, %v3063_v33 }
 0xe32   :  { %5743 = vmatpush3.bf16.msra.mxu0 %v6600_v50  ;;  %5561 = vmatprep.mubr.msk.f32.mxu0 %vm6375_vm1, %v6376_v4 }
 0xe33   :  { %5744 = vmatprep.subr.bf16.mxu0 %v6374_v3  ;;  %5749 = vmatpush3.bf16.msra.mxu1 %v6613_v56 }
 0xe34   :  { %5750 = vmatprep.subr.bf16.mxu1 %v6374_v3  ;;  %5572 = vmatprep.mubr.msk.f32.mxu1 %vm6375_vm1, %v6376_v4 }
 0xe36   :  { %5746 = vmatpush3.bf16.msra.mxu0 %v6622_v61 }
 0xe37   :  { %5753 = vmatprep.subr.bf16.mxu0 %v6374_v3  ;;  %5752 = vmatpush3.bf16.msra.mxu1 %v6626_v63 }
 0xe38   :  { %5759 = vmatprep.subr.bf16.mxu1 %v6374_v3 }
 0xef5   :  { %v3036_v43 = vpop.f32.mrb[14].mxu1 }
 0xef6   :  { %v5530_v28 = vpop.f32.mrb[15].mxu1 }
 0xf04   :  { %v3132_v30 = vpop.f32.mrb[20].mxu0  ;;  %v3349_v54 = vpop.f32.mrb[16].mxu1 }
 0xf05   :  { %v3133_v17 = vadd.f32 %v3132_v30, %v3036_v43  ;;  %v5541_v35 = vpop.f32.mrb[21].mxu0  ;;  %v5552_v58 = vpop.f32.mrb[17].mxu1  ;;  %v3369_v62 = vadd.f32 %v3349_v54, %v3275_v14  ;;  %v3354_v39 = vrot.slane %v3349_v54, 1  ;;  %v3355_v9 = vrot.slane %v3349_v54, 2 }
 0xf06   :  { %v3357_v45 = vrot.slane %v3349_v54, 4  ;;  %v3356_v2 = vrot.slane %v3349_v54, 3  ;;  %v3359_v6 = vrot.slane %v3349_v54, 6  ;;  %v3358_v15 = vrot.slane %v3349_v54, 5 }
 0xf07   :  { %6148 = vtanh.f32 %v3369_v62  ;;  %v3370_v55 = vadd.f32 %v3354_v39, %v3276_v42  ;;  %v3371_v32 = vadd.f32 %v3355_v9, %v3277_v59  ;;  %v3136_v1 = vadd.f32 %v7106_v13, %v3133_v17 }
 0xf08   :  { %v3373_v34 = vadd.f32 %v3357_v45, %v3279_v60  ;;  %v3372_v24 = vadd.f32 %v3356_v2, %v3278_v51  ;;  %v3375_v18 = vadd.f32 %v3359_v6, %v3281_v21  ;;  %v3360_v0 = vrot.slane %v3349_v54, 7 }
 0xf09   :  { %6150 = vtanh.f32 %v3370_v55  ;;  %v3374_v20 = vadd.f32 %v3358_v15, %v3280_v23  ;;  %v5196_v31 = vmul.f32 -1.442695, %v3369_v62  ;;  %v5197_v33 = vmul.f32 -1.442695, %v3370_v55 }
 0xf0a   :  { %6152 = vtanh.f32 %v3371_v32  ;;  %v3376_v37 = vadd.f32 %v3360_v0, %v3282_v26  ;;  %v5198_v43 = vmul.f32 -1.442695, %v3371_v32  ;;  %v5194_v30 = vmul.f32 -1.442695, %v3136_v1 }
 0xf0b   :  { %6154 = vtanh.f32 %v3136_v1  ;;  %v5200_v54 = vmul.f32 -1.442695, %v3373_v34  ;;  %v5199_v35 = vmul.f32 -1.442695, %v3372_v24  ;;  %v5202_v58 = vmul.f32 -1.442695, %v3375_v18 }
 0xf0c   :  { %6156 = vtanh.f32 %v3373_v34  ;;  %v5201_v14 = vmul.f32 -1.442695, %v3374_v20  ;;  %v5203_v62 = vmul.f32 -1.442695, %v3376_v37 }
 0xf0d   :  { %6158 = vtanh.f32 %v3372_v24 }
 0xf0e   :  { %6160 = vtanh.f32 %v3375_v18 }
 0xf0f   :  { %6162 = vtanh.f32 %v3374_v20 }
 0xf10   :  { %6164 = vtanh.f32 %v3376_v37 }
 0xf11   :  { %v6149_v53 = vpop.eup %6148  ;;  %6166 = vpow2.f32 %v5196_v31 }
 0xf12   :  { %3449 = vrot.lane.b32.xlu1 %v6149_v53, %s6377_s0  ;;  %6168 = vpow2.f32 %v5197_v33 }
 0xf13   :  { %v6151_v25 = vpop.eup %6150  ;;  %6170 = vpow2.f32 %v5198_v43 }
 0xf14   :  { %v6153_v29 = vpop.eup %6152  ;;  %3451 = vrot.lane.b32.xlu0 %v6151_v25, %s6377_s0  ;;  %6172 = vpow2.f32 %v5194_v30 }
 0xf15   :  { %v6155_v41 = vpop.eup %6154  ;;  %6174 = vpow2.f32 %v5200_v54 }
 0xf16   :  { %3453 = vrot.lane.b32.xlu1 %v6153_v29, %s6377_s0  ;;  %v6157_v47 = vpop.eup %6156 }
 0xf17   :  { %v6159_v27 = vpop.eup %6158 }
 0xf18   :  { %3146 = vrot.lane.b32.xlu0 %v6155_v41, %s6377_s0  ;;  %v6161_v46 = vpop.eup %6160 }
 0xf19   :  { %v6163_v19 = vpop.eup %6162 }
 0xf1a   :  { %3457 = vrot.lane.b32.xlu1 %v6157_v47, %s6377_s0  ;;  %v6165_v52 = vpop.eup %6164 }
 0xf1b   :  { %v6167_v28 = vpop.eup %6166 }
 0xf1c   :  { %3455 = vrot.lane.b32.xlu0 %v6159_v27, %s6377_s0  ;;  %v3401_v17 = vadd.f32 1.0, %v6167_v28  ;;  %v6169_v39 = vpop.eup %6168 }
 0xf1d   :  { %v6171_v9 = vpop.eup %6170  ;;  %v3402_v42 = vadd.f32 1.0, %v6169_v39 }
 0xf1e   :  { %3461 = vrot.lane.b32.xlu1 %v6161_v46, %s6377_s0  ;;  %6176 = vrcp.f32 %v3401_v17  ;;  %v6173_v59 = vpop.eup %6172  ;;  %v3403_v55 = vadd.f32 1.0, %v6171_v9 }
 0xf1f   :  { %6178 = vpow2.f32 %v5199_v35  ;;  %v6175_v45 = vpop.eup %6174  ;;  %v3140_v53 = vadd.f32 1.0, %v6173_v59 }
 0xf20   :  { %3459 = vrot.lane.b32.xlu0 %v6163_v19, %s6377_s0  ;;  %6180 = vpow2.f32 %v5202_v58  ;;  %v3405_v6 = vadd.f32 1.0, %v6175_v45 }
 0xf21   :  { %6182 = vpow2.f32 %v5201_v14 }
 0xf22   :  { %6184 = vpow2.f32 %v5203_v62 }
 0xf23   :  { %6186 = vrcp.f32 %v3402_v42 }
 0xf24   :  { %3463 = vrot.lane.b32.xlu0 %v6165_v52, %s6377_s0  ;;  %6188 = vrcp.f32 %v3403_v55 }
 0xf25   :  { %6190 = vrcp.f32 %v3140_v53 }
 0xf26   :  { %6192 = vrcp.f32 %v3405_v6 }
 0xf28   :  { %v7260_v32 = vpop.eup %6176 }
 0xf29   :  { %v6179_v60 = vpop.eup %6178  ;;  %v3433_v62 = vmul.f32 %v7260_v32, %v7156_v57 }
 0xf2a   :  { %v6181_v34 = vpop.eup %6180  ;;  %v3404_v51 = vadd.f32 1.0, %v6179_v60 }
 0xf2b   :  { %v6183_v21 = vpop.eup %6182  ;;  %v3407_v15 = vadd.f32 1.0, %v6181_v34 }
 0xf2c   :  { %6194 = vrcp.f32 %v3404_v51  ;;  %v3406_v24 = vadd.f32 1.0, %v6183_v21  ;;  %v6185_v18 = vpop.eup %6184 }
 0xf2d   :  { %6196 = vrcp.f32 %v3407_v15  ;;  %v7264_v23 = vpop.eup %6186  ;;  %v3408_v37 = vadd.f32 1.0, %v6185_v18 }
 0xf2e   :  { %v7266_v20 = vpop.eup %6188  ;;  %6198 = vrcp.f32 %v3406_v24  ;;  %v3434_v55 = vmul.f32 %v7264_v23, %v7163_v44 }
 0xf2f   :  { %v7271_v41 = vpop.eup %6190  ;;  %6200 = vrcp.f32 %v3408_v37  ;;  %v3435_v53 = vmul.f32 %v7266_v20, %v7165_v10 }
 0xf30   :  { %v7274_v27 = vpop.eup %6192  ;;  %v3144_v57 = vmul.f32 %v7271_v41, %v7174_v7 }
 0xf31   :  { %v3437_v44 = vmul.f32 %v7274_v27, %v7176_v16 }
 0xf36   :  { %v7279_v31 = vpop.eup %6194 }
 0xf37   :  { %v7282_v43 = vpop.eup %6196  ;;  %v3436_v15 = vmul.f32 %v7279_v31, %v7184_v40 }
 0xf38   :  { %v7287_v17 = vpop.eup %6198  ;;  %v3439_v24 = vmul.f32 %v7282_v43, %v7186_v5 }
 0xf39   :  { %v7292_v14 = vpop.eup %6200 }
 0xf3a   :  { %v3440_v5 = vmul.f32 %v7292_v14, %v7199_v49 }
 0xf84   :  { %v3450_v1 = vpop.permute.xlu1 %3449 }
 0xf85   :  { %v3473_v2 = vmul.f32 %v7260_v32, %v3450_v1 }
 0xf86   :  { %v3452_v0 = vpop.permute.xlu0 %3451 }
 0xf87   :  { %3489 = vrot.lane.b32.xlu0 %v3473_v2, %s6378_s3  ;;  %v3474_v25 = vmul.f32 %v7264_v23, %v3452_v0 }
 0xf88   :  { %v3454_v29 = vpop.permute.xlu1 %3453 }
 0xf89   :  { %v3475_v26 = vmul.f32 %v7266_v20, %v3454_v29  ;;  %3491 = vrot.lane.b32.xlu1 %v3474_v25, %s6378_s3  ;;  %v3438_v25 = vmul.f32 %v7287_v17, %v7192_v11 }
 0xf8a   :  { %v3147_v47 = vpop.permute.xlu0 %3146 }
 0xf8b   :  { %3493 = vrot.lane.b32.xlu0 %v3475_v26, %s6378_s3  ;;  %v3149_v46 = vmul.f32 %v7271_v41, %v3147_v47 }
 0xf8c   :  { %v3458_v19 = vpop.permute.xlu1 %3457 }
 0xf8d   :  { %v3477_v52 = vmul.f32 %v7274_v27, %v3458_v19  ;;  %3151 = vrot.lane.b32.xlu1 %v3149_v46, %s6378_s3 }
 0xf8e   :  { %v3456_v33 = vpop.permute.xlu0 %3455 }
 0xf8f   :  { %3497 = vrot.lane.b32.xlu0 %v3477_v52, %s6378_s3  ;;  %v3476_v28 = vmul.f32 %v7279_v31, %v3456_v33 }
 0xf90   :  { %v3462_v30 = vpop.permute.xlu1 %3461 }
 0xf91   :  { %v3479_v54 = vmul.f32 %v7282_v43, %v3462_v30  ;;  %3495 = vrot.lane.b32.xlu1 %v3476_v28, %s6378_s3 }
 0xf92   :  { %v3460_v35 = vpop.permute.xlu0 %3459 }
 0xf93   :  { %3501 = vrot.lane.b32.xlu0 %v3479_v54, %s6378_s3  ;;  %v3478_v58 = vmul.f32 %v7287_v17, %v3460_v35 }
 0xf95   :  { %3499 = vrot.lane.b32.xlu1 %v3478_v58, %s6378_s3 }
 0xf96   :  { %v3464_v39 = vpop.permute.xlu0 %3463 }
 0xf97   :  { %v3480_v9 = vmul.f32 %v7292_v14, %v3464_v39 }
 0xf99   :  { %3503 = vrot.lane.b32.xlu1 %v3480_v9, %s6378_s3 }
 0xff9   :  { %v3490_v42 = vpop.permute.xlu0 %3489 }
 0xffa   :  { %v7298_v59 = vadd.f32 %v3490_v42, %v3433_v62 }
 0xffb   :  { %v3492_v45 = vpop.permute.xlu1 %3491 }
 0xffc   :  { %6202 = vtanh.f32 %v7298_v59  ;;  %v7305_v1 = vadd.f32 %v3492_v45, %v3434_v55 }
 0xffd   :  { %v3494_v60 = vpop.permute.xlu0 %3493 }
 0xffe   :  { %v7307_v2 = vadd.f32 %v3494_v60, %v3435_v53  ;;  %6204 = vtanh.f32 %v7305_v1 }
 0xfff   :  { %v3152_v34 = vpop.permute.xlu1 %3151 }
0x1000   :  { %6206 = vtanh.f32 %v7307_v2  ;;  %v7316_v10 = vadd.f32 %v3152_v34, %v3144_v57 }
0x1001   :  { %v3498_v51 = vpop.permute.xlu0 %3497 }
0x1002   :  { %v7318_v21 = vadd.f32 %v3498_v51, %v3437_v44  ;;  %6208 = vtanh.f32 %v7316_v10 }
0x1003   :  { %v3496_v7 = vpop.permute.xlu1 %3495 }
0x1004   :  { %6210 = vtanh.f32 %v7318_v21  ;;  %v7326_v18 = vadd.f32 %v3496_v7, %v3436_v15 }
0x1005   :  { %v3502_v16 = vpop.permute.xlu0 %3501 }
0x1006   :  { %v6203_v6 = vpop.eup %6202  ;;  %v7328_v0 = vadd.f32 %v3502_v16, %v3439_v24  ;;  %6212 = vtanh.f32 %v7326_v18 }
0x1007   :  { %3537 = vrot.lane.b32.xlu1 %v6203_v6, %s6377_s0  ;;  %v3500_v29 = vpop.permute.xlu1 %3499 }
0x1008   :  { %6214 = vtanh.f32 %v7328_v0  ;;  %v6205_v40 = vpop.eup %6204  ;;  %v7334_v26 = vadd.f32 %v3500_v29, %v3438_v25 }
0x1009   :  { %3539 = vrot.lane.b32.xlu0 %v6205_v40, %s6377_s0 }
0x100a   :  { %v6207_v37 = vpop.eup %6206  ;;  %6216 = vtanh.f32 %v7334_v26 }
0x100b   :  { %3541 = vrot.lane.b32.xlu1 %v6207_v37, %s6377_s0  ;;  %v3504_v47 = vpop.permute.xlu1 %3503 }
0x100c   :  { %v6209_v46 = vpop.eup %6208  ;;  %v7341_v19 = vadd.f32 %v3504_v47, %v3440_v5 }
0x100d   :  { %3157 = vrot.lane.b32.xlu0 %v6209_v46, %s6377_s0 }
0x100e   :  { %v6211_v11 = vpop.eup %6210  ;;  %6218 = vtanh.f32 %v7341_v19 }
0x100f   :  { %3545 = vrot.lane.b32.xlu1 %v6211_v11, %s6377_s0 }
0x1010   :  { %v6213_v52 = vpop.eup %6212 }
0x1011   :  { %3543 = vrot.lane.b32.xlu0 %v6213_v52, %s6377_s0 }
0x1012   :  { %v6215_v33 = vpop.eup %6214 }
0x1013   :  { %3549 = vrot.lane.b32.xlu1 %v6215_v33, %s6377_s0 }
0x1014   :  { %v6217_v28 = vpop.eup %6216 }
0x1015   :  { %3547 = vrot.lane.b32.xlu0 %v6217_v28, %s6377_s0 }
0x1018   :  { %v6219_v49 = vpop.eup %6218 }
0x1019   :  { %3551 = vrot.lane.b32.xlu0 %v6219_v49, %s6377_s0  ;;  %v3878_v49 = vld [vmem:[#allocation2 + $0x6] sm:$0x1] }
0x1079   :  { %v3538_v30 = vpop.permute.xlu1 %3537 }
0x107a   :  { %v3561_v45 = vmul.f32 %v7260_v32, %v3538_v30 }
0x107b   :  { %v3540_v54 = vpop.permute.xlu0 %3539 }
0x107c   :  { %v3562_v35 = vmul.f32 %v7264_v23, %v3540_v54 }
0x107d   :  { %v3542_v58 = vpop.permute.xlu1 %3541 }
0x107e   :  { %v3563_v39 = vmul.f32 %v7266_v20, %v3542_v58  ;;  %v3651_v62 = vrot.slane %v3562_v35, 7  ;;  %v3879_v58 = vld [vmem:[#allocation2 + $0xe] sm:$0x1] }
0x107f   :  { %v3158_v9 = vpop.permute.xlu0 %3157 }
0x1080   :  { %v7353_v42 = vmul.f32 %v7271_v41, %v3158_v9  ;;  %v3653_v53 = vrot.slane %v3563_v39, 6  ;;  %v3652_v6 = vsel %vm619_vm3, %v3651_v62, %v3561_v45  ;;  %v3880_v39 = vld [vmem:[#allocation2 + $0x16] sm:$0x1] }
0x1081   :  { %v3546_v55 = vpop.permute.xlu1 %3545 }
0x1082   :  { %3569 = vrot.lane.b32.xlu1 %v7353_v42, %s6378_s3  ;;  %v3565_v57 = vmul.f32 %v7274_v27, %v3546_v55  ;;  %v3654_v44 = vsel %vm622_vm4, %v3653_v53, %v3652_v6 }
0x1083   :  { %v3544_v60 = vpop.permute.xlu0 %3543 }
0x1084   :  { %v3564_v23 = vmul.f32 %v7279_v31, %v3544_v60  ;;  %v3657_v15 = vrot.slane %v3565_v57, 4  ;;  %v3882_v60 = vld [vmem:[#allocation2 + $0x26] sm:$0x1] }
0x1085   :  { %v3550_v34 = vpop.permute.xlu1 %3549 }
0x1086   :  { %v3655_v20 = vrot.slane %v3564_v23, 5  ;;  %v3567_v7 = vmul.f32 %v7282_v43, %v3550_v34  ;;  %v3884_v34 = vld [vmem:[#allocation2 + $0x36] sm:$0x1] }
0x1087   :  { %v3548_v41 = vpop.permute.xlu0 %3547 }
0x1088   :  { %v3656_v51 = vsel %vm625_vm5, %v3655_v20, %v3654_v44  ;;  %v3566_v32 = vmul.f32 %v7287_v17, %v3548_v41  ;;  %v3661_v29 = vrot.slane %v3567_v7, 2  ;;  %v3881_v20 = vld [vmem:[#allocation2 + $0x1e] sm:$0x1] }
0x1089   :  { %v3658_v16 = vsel %vm628_vm6, %v3657_v15, %v3656_v51 }
0x108a   :  { %v3659_v24 = vrot.slane %v3566_v32, 3  ;;  %v3883_v32 = vld [vmem:[#allocation2 + $0x2e] sm:$0x1] }
0x108b   :  { %v3552_v25 = vpop.permute.xlu0 %3551 }
0x108c   :  { %v3660_v31 = vsel %vm631_vm7, %v3659_v24, %v3658_v16  ;;  %v3568_v27 = vmul.f32 %v7292_v14, %v3552_v25  ;;  %v3885_v16 = vld [vmem:[#allocation2 + $0x3e] sm:$0x1] }
0x108d   :  { %v3662_v37 = vsel %vm634_vm8, %v3661_v29, %v3660_v31 }
0x108e   :  { %v3663_v40 = vrot.slane %v3568_v27, 1 }
0x1090   :  { %v3664_v5 = vsel %vm637_vm9, %v3663_v40, %v3662_v37 }
0x1091   :  { %3665 = vrot.lane.b32.xlu0 %v3664_v5, %s6378_s3 }
0x10f4   :  { %v3570_v17 = vpop.permute.xlu1 %3569 }
0x10f5   :  { %5562 = vmatmul.mubr.msk.f32.vlgmr.msra.gmra.mrb[22].mxu0 %vm30_vm2, %v3570_v17 }
0x10f6   :  { %5755 = vmatpush3.bf16.msra.mxu0 %v6448_v8  ;;  %5583 = vmatprep.mubr.msk.f32.mxu0 %vm6375_vm1, %v6376_v4 }
0x10f7   :  { %5756 = vmatprep.subr.bf16.mxu0 %v6374_v3 }
0x10fa   :  { %5758 = vmatpush3.bf16.msra.mxu0 %v6460_v12 }
0x10fb   :  { %5765 = vmatprep.subr.bf16.mxu0 %v6374_v3 }
0x1103   :  { %v3666_v43 = vpop.permute.xlu0 %3665 }
0x1104   :  { %5573 = vmatmul.mubr.msk.f32.vlgmr.msra.gmra.mrb[18].mxu1 %vm30_vm2, %v3666_v43  ;;  %5584 = vmatmul.mubr.msk.f32.vlgmr.msra.gmra.mrb[24].mxu0 %vm30_vm2, %v3666_v43 }
0x1105   :  { %5761 = vmatpush3.bf16.msra.mxu1 %v6600_v50  ;;  %5594 = vmatprep.mubr.msk.f32.mxu1 %vm6375_vm1, %v6376_v4 }
0x1106   :  { %5762 = vmatprep.subr.bf16.mxu1 %v6374_v3  ;;  %5767 = vmatpush3.bf16.msra.mxu0 %v6613_v56 }
0x1107   :  { %5768 = vmatprep.subr.bf16.mxu0 %v6374_v3  ;;  %5605 = vmatprep.mubr.msk.f32.mxu0 %vm6375_vm1, %v6376_v4 }
0x1109   :  { %5764 = vmatpush3.bf16.msra.mxu1 %v6622_v61 }
0x110a   :  { %5771 = vmatprep.subr.bf16.mxu1 %v6374_v3  ;;  %5770 = vmatpush3.bf16.msra.mxu0 %v6626_v63 }
0x110b   :  { %5777 = vmatprep.subr.bf16.mxu0 %v6374_v3 }
0x11c8   :  { %v3639_v14 = vpop.f32.mrb[22].mxu0 }
0x11c9   :  { %v5563_v47 = vpop.f32.mrb[23].mxu0 }
0x11d7   :  { %v3735_v46 = vpop.f32.mrb[18].mxu1  ;;  %v3952_v11 = vpop.f32.mrb[24].mxu0 }
0x11d8   :  { %v3736_v52 = vadd.f32 %v3735_v46, %v3639_v14  ;;  %v5574_v33 = vpop.f32.mrb[19].mxu1  ;;  %v5585_v28 = vpop.f32.mrb[25].mxu0  ;;  %v3972_v30 = vadd.f32 %v3952_v11, %v3878_v49  ;;  %v3957_v54 = vrot.slane %v3952_v11, 1  ;;  %v3958_v35 = vrot.slane %v3952_v11, 2 }
0x11d9   :  { %v3960_v62 = vrot.slane %v3952_v11, 4  ;;  %v3959_v6 = vrot.slane %v3952_v11, 3  ;;  %v3962_v23 = vrot.slane %v3952_v11, 6  ;;  %v3961_v44 = vrot.slane %v3952_v11, 5 }
0x11da   :  { %6220 = vtanh.f32 %v3972_v30  ;;  %v3973_v9 = vadd.f32 %v3957_v54, %v3879_v58  ;;  %v3974_v55 = vadd.f32 %v3958_v35, %v3880_v39  ;;  %v3739_v53 = vadd.f32 %v7106_v13, %v3736_v52 }
0x11db   :  { %v3976_v57 = vadd.f32 %v3960_v62, %v3882_v60  ;;  %v3975_v41 = vadd.f32 %v3959_v6, %v3881_v20  ;;  %v3978_v51 = vadd.f32 %v3962_v23, %v3884_v34  ;;  %v3963_v15 = vrot.slane %v3952_v11, 7 }
0x11dc   :  { %6222 = vtanh.f32 %v3973_v9  ;;  %v3977_v7 = vadd.f32 %v3961_v44, %v3883_v32  ;;  %v5208_v17 = vmul.f32 -1.442695, %v3972_v30  ;;  %v5209_v43 = vmul.f32 -1.442695, %v3973_v9 }
0x11dd   :  { %6224 = vtanh.f32 %v3974_v55  ;;  %v3979_v25 = vadd.f32 %v3963_v15, %v3885_v16  ;;  %v5210_v14 = vmul.f32 -1.442695, %v3974_v55  ;;  %v5206_v46 = vmul.f32 -1.442695, %v3739_v53 }
0x11de   :  { %6226 = vtanh.f32 %v3739_v53  ;;  %v5212_v11 = vmul.f32 -1.442695, %v3976_v57  ;;  %v5211_v33 = vmul.f32 -1.442695, %v3975_v41  ;;  %v5214_v28 = vmul.f32 -1.442695, %v3978_v51 }
0x11df   :  { %6228 = vtanh.f32 %v3976_v57  ;;  %v5213_v49 = vmul.f32 -1.442695, %v3977_v7  ;;  %v5215_v30 = vmul.f32 -1.442695, %v3979_v25 }
0x11e0   :  { %6230 = vtanh.f32 %v3975_v41 }
0x11e1   :  { %6232 = vtanh.f32 %v3978_v51 }
0x11e2   :  { %6234 = vtanh.f32 %v3977_v7 }
0x11e3   :  { %6236 = vtanh.f32 %v3979_v25 }
0x11e4   :  { %v6221_v45 = vpop.eup %6220  ;;  %6238 = vpow2.f32 %v5208_v17 }
0x11e5   :  { %4052 = vrot.lane.b32.xlu0 %v6221_v45, %s6377_s0  ;;  %6240 = vpow2.f32 %v5209_v43 }
0x11e6   :  { %v6223_v13 = vpop.eup %6222  ;;  %6242 = vpow2.f32 %v5210_v14 }
0x11e7   :  { %v6225_v24 = vpop.eup %6224  ;;  %4054 = vrot.lane.b32.xlu1 %v6223_v13, %s6377_s0  ;;  %6244 = vpow2.f32 %v5206_v46 }
0x11e8   :  { %v6227_v31 = vpop.eup %6226  ;;  %6246 = vpow2.f32 %v5212_v11 }
0x11e9   :  { %4056 = vrot.lane.b32.xlu0 %v6225_v24, %s6377_s0  ;;  %v6229_v27 = vpop.eup %6228 }
0x11ea   :  { %v6231_v29 = vpop.eup %6230 }
0x11eb   :  { %3749 = vrot.lane.b32.xlu1 %v6227_v31, %s6377_s0  ;;  %v6233_v40 = vpop.eup %6232 }
0x11ec   :  { %v6235_v37 = vpop.eup %6234 }
0x11ed   :  { %4060 = vrot.lane.b32.xlu0 %v6229_v27, %s6377_s0  ;;  %v6237_v5 = vpop.eup %6236 }
0x11ee   :  { %v6239_v47 = vpop.eup %6238 }
0x11ef   :  { %4058 = vrot.lane.b32.xlu1 %v6231_v29, %s6377_s0  ;;  %v4004_v52 = vadd.f32 1.0, %v6239_v47  ;;  %v6241_v54 = vpop.eup %6240 }
0x11f0   :  { %v6243_v35 = vpop.eup %6242  ;;  %v4005_v58 = vadd.f32 1.0, %v6241_v54 }
0x11f1   :  { %4064 = vrot.lane.b32.xlu0 %v6233_v40, %s6377_s0  ;;  %6248 = vrcp.f32 %v4004_v52  ;;  %v6245_v39 = vpop.eup %6244  ;;  %v4006_v9 = vadd.f32 1.0, %v6243_v35 }
0x11f2   :  { %6250 = vpow2.f32 %v5211_v33  ;;  %v6247_v62 = vpop.eup %6246  ;;  %v3743_v45 = vadd.f32 1.0, %v6245_v39 }
0x11f3   :  { %4062 = vrot.lane.b32.xlu1 %v6235_v37, %s6377_s0  ;;  %6252 = vpow2.f32 %v5214_v28  ;;  %v4008_v23 = vadd.f32 1.0, %v6247_v62 }
0x11f4   :  { %6254 = vpow2.f32 %v5213_v49 }
0x11f5   :  { %6256 = vpow2.f32 %v5215_v30 }
0x11f6   :  { %6258 = vrcp.f32 %v4005_v58 }
0x11f7   :  { %4066 = vrot.lane.b32.xlu1 %v6237_v5, %s6377_s0  ;;  %6260 = vrcp.f32 %v4006_v9 }
0x11f8   :  { %6262 = vrcp.f32 %v3743_v45 }
0x11f9   :  { %6264 = vrcp.f32 %v4008_v23 }
0x11fb   :  { %v7402_v55 = vpop.eup %6248 }
0x11fc   :  { %v6251_v60 = vpop.eup %6250  ;;  %v4036_v30 = vmul.f32 %v7402_v55, %v7298_v59 }
0x11fd   :  { %v6253_v57 = vpop.eup %6252  ;;  %v4007_v20 = vadd.f32 1.0, %v6251_v60 }
0x11fe   :  { %v6255_v34 = vpop.eup %6254  ;;  %v4010_v44 = vadd.f32 1.0, %v6253_v57 }
0x11ff   :  { %6266 = vrcp.f32 %v4007_v20  ;;  %v4009_v41 = vadd.f32 1.0, %v6255_v34  ;;  %v6257_v51 = vpop.eup %6256 }
0x1200   :  { %6268 = vrcp.f32 %v4010_v44  ;;  %v7406_v32 = vpop.eup %6258  ;;  %v4011_v25 = vadd.f32 1.0, %v6257_v51 }
0x1201   :  { %v7408_v7 = vpop.eup %6260  ;;  %6270 = vrcp.f32 %v4009_v41  ;;  %v4037_v9 = vmul.f32 %v7406_v32, %v7305_v1 }
0x1202   :  { %v7413_v31 = vpop.eup %6262  ;;  %6272 = vrcp.f32 %v4011_v25  ;;  %v4038_v45 = vmul.f32 %v7408_v7, %v7307_v2 }
0x1203   :  { %v7416_v29 = vpop.eup %6264  ;;  %v3747_v59 = vmul.f32 %v7413_v31, %v7316_v10 }
0x1204   :  { %v4040_v1 = vmul.f32 %v7416_v29, %v7318_v21 }
0x1209   :  { %v7421_v17 = vpop.eup %6266 }
0x120a   :  { %v7424_v14 = vpop.eup %6268  ;;  %v4039_v44 = vmul.f32 %v7421_v17, %v7326_v18 }
0x120b   :  { %v7429_v52 = vpop.eup %6270  ;;  %v4042_v41 = vmul.f32 %v7424_v14, %v7328_v0 }
0x120c   :  { %v7434_v49 = vpop.eup %6272 }
0x120d   :  { %v4043_v0 = vmul.f32 %v7434_v49, %v7341_v19 }
0x1257   :  { %v4053_v53 = vpop.permute.xlu0 %4052 }
0x1258   :  { %v4076_v6 = vmul.f32 %v7402_v55, %v4053_v53 }
0x1259   :  { %v4055_v15 = vpop.permute.xlu1 %4054 }
0x125a   :  { %4092 = vrot.lane.b32.xlu1 %v4076_v6, %s6378_s3  ;;  %v4077_v13 = vmul.f32 %v7406_v32, %v4055_v15 }
0x125b   :  { %v4057_v24 = vpop.permute.xlu0 %4056 }
0x125c   :  { %v4078_v16 = vmul.f32 %v7408_v7, %v4057_v24  ;;  %4094 = vrot.lane.b32.xlu0 %v4077_v13, %s6378_s3  ;;  %v4041_v13 = vmul.f32 %v7429_v52, %v7334_v26 }
0x125d   :  { %v3750_v27 = vpop.permute.xlu1 %3749 }
0x125e   :  { %4096 = vrot.lane.b32.xlu1 %v4078_v16, %s6378_s3  ;;  %v3752_v40 = vmul.f32 %v7413_v31, %v3750_v27 }
0x125f   :  { %v4061_v37 = vpop.permute.xlu0 %4060 }
0x1260   :  { %v4080_v5 = vmul.f32 %v7416_v29, %v4061_v37  ;;  %3754 = vrot.lane.b32.xlu0 %v3752_v40, %s6378_s3 }
0x1261   :  { %v4059_v43 = vpop.permute.xlu1 %4058 }
0x1262   :  { %4100 = vrot.lane.b32.xlu1 %v4080_v5, %s6378_s3  ;;  %v4079_v47 = vmul.f32 %v7421_v17, %v4059_v43 }
0x1263   :  { %v4065_v46 = vpop.permute.xlu0 %4064 }
0x1264   :  { %v4082_v11 = vmul.f32 %v7424_v14, %v4065_v46  ;;  %4098 = vrot.lane.b32.xlu0 %v4079_v47, %s6378_s3 }
0x1265   :  { %v4063_v33 = vpop.permute.xlu1 %4062 }
0x1266   :  { %4104 = vrot.lane.b32.xlu1 %v4082_v11, %s6378_s3  ;;  %v4081_v28 = vmul.f32 %v7429_v52, %v4063_v33 }
0x1268   :  { %4102 = vrot.lane.b32.xlu0 %v4081_v28, %s6378_s3 }
0x1269   :  { %v4067_v54 = vpop.permute.xlu1 %4066 }
0x126a   :  { %v4083_v35 = vmul.f32 %v7434_v49, %v4067_v54 }
0x126c   :  { %4106 = vrot.lane.b32.xlu0 %v4083_v35, %s6378_s3 }
0x12cc   :  { %v4093_v58 = vpop.permute.xlu1 %4092 }
0x12cd   :  { %v7440_v39 = vadd.f32 %v4093_v58, %v4036_v30 }
0x12ce   :  { %v4095_v62 = vpop.permute.xlu0 %4094 }
0x12cf   :  { %6274 = vtanh.f32 %v7440_v39  ;;  %v7447_v53 = vadd.f32 %v4095_v62, %v4037_v9 }
0x12d0   :  { %v4097_v60 = vpop.permute.xlu1 %4096 }
0x12d1   :  { %v7449_v6 = vadd.f32 %v4097_v60, %v4038_v45  ;;  %6276 = vtanh.f32 %v7447_v53 }
0x12d2   :  { %v3755_v57 = vpop.permute.xlu0 %3754 }
0x12d3   :  { %6278 = vtanh.f32 %v7449_v6  ;;  %v7458_v2 = vadd.f32 %v3755_v57, %v3747_v59 }
0x12d4   :  { %v4101_v20 = vpop.permute.xlu1 %4100 }
0x12d5   :  { %v7460_v34 = vadd.f32 %v4101_v20, %v4040_v1  ;;  %6280 = vtanh.f32 %v7458_v2 }
0x12d6   :  { %v4099_v10 = vpop.permute.xlu0 %4098 }
0x12d7   :  { %6282 = vtanh.f32 %v7460_v34  ;;  %v7468_v51 = vadd.f32 %v4099_v10, %v4039_v44 }
0x12d8   :  { %v4105_v21 = vpop.permute.xlu1 %4104 }
0x12d9   :  { %v6275_v23 = vpop.eup %6274  ;;  %v7470_v15 = vadd.f32 %v4105_v21, %v4042_v41  ;;  %6284 = vtanh.f32 %v7468_v51 }
0x12da   :  { %4140 = vrot.lane.b32.xlu0 %v6275_v23, %s6377_s0  ;;  %v4103_v24 = vpop.permute.xlu0 %4102 }
0x12db   :  { %6286 = vtanh.f32 %v7470_v15  ;;  %v6277_v18 = vpop.eup %6276  ;;  %v7476_v16 = vadd.f32 %v4103_v24, %v4041_v13 }
0x12dc   :  { %4142 = vrot.lane.b32.xlu1 %v6277_v18, %s6377_s0 }
0x12dd   :  { %v6279_v25 = vpop.eup %6278  ;;  %6288 = vtanh.f32 %v7476_v16 }
0x12de   :  { %4144 = vrot.lane.b32.xlu0 %v6279_v25, %s6377_s0  ;;  %v4107_v27 = vpop.permute.xlu0 %4106 }
0x12df   :  { %v6281_v40 = vpop.eup %6280  ;;  %v7483_v37 = vadd.f32 %v4107_v27, %v4043_v0 }
0x12e0   :  { %3760 = vrot.lane.b32.xlu1 %v6281_v40, %s6377_s0 }
0x12e1   :  { %v6283_v26 = vpop.eup %6282  ;;  %6290 = vtanh.f32 %v7483_v37 }
0x12e2   :  { %4148 = vrot.lane.b32.xlu0 %v6283_v26, %s6377_s0  ;;  %v4481_v26 = vld [vmem:[#allocation2 + $0x7] sm:$0x1] }
0x12e3   :  { %v6285_v5 = vpop.eup %6284 }
0x12e4   :  { %4146 = vrot.lane.b32.xlu1 %v6285_v5, %s6377_s0 }
0x12e5   :  { %v6287_v43 = vpop.eup %6286 }
0x12e6   :  { %4152 = vrot.lane.b32.xlu0 %v6287_v43, %s6377_s0 }
0x12e7   :  { %v6289_v47 = vpop.eup %6288 }
0x12e8   :  { %4150 = vrot.lane.b32.xlu1 %v6289_v47, %s6377_s0  ;;  %v4482_v47 = vld [vmem:[#allocation2 + $0xf] sm:$0x1] }
0x12eb   :  { %v6291_v19 = vpop.eup %6290 }
0x12ec   :  { %4154 = vrot.lane.b32.xlu1 %v6291_v19, %s6377_s0  ;;  %v4483_v19 = vld [vmem:[#allocation2 + $0x17] sm:$0x1] }
0x134c   :  { %v4141_v46 = vpop.permute.xlu0 %4140 }
0x134d   :  { %v4164_v62 = vmul.f32 %v7402_v55, %v4141_v46 }
0x134e   :  { %v4143_v11 = vpop.permute.xlu1 %4142 }
0x134f   :  { %v4165_v33 = vmul.f32 %v7406_v32, %v4143_v11 }
0x1350   :  { %v4145_v28 = vpop.permute.xlu0 %4144 }
0x1351   :  { %v4166_v54 = vmul.f32 %v7408_v7, %v4145_v28  ;;  %v4254_v30 = vrot.slane %v4165_v33, 7  ;;  %v4485_v33 = vld [vmem:[#allocation2 + $0x27] sm:$0x1]  ;;  %v4484_v28 = vld [vmem:[#allocation2 + $0x1f] sm:$0x1] }
0x1352   :  { %v3761_v35 = vpop.permute.xlu1 %3760 }
0x1353   :  { %v7495_v58 = vmul.f32 %v7413_v31, %v3761_v35  ;;  %v4256_v45 = vrot.slane %v4166_v54, 6  ;;  %v4255_v23 = vsel %vm619_vm3, %v4254_v30, %v4164_v62  ;;  %v4487_v62 = vld [vmem:[#allocation2 + $0x37] sm:$0x1] }
0x1354   :  { %v4149_v9 = vpop.permute.xlu0 %4148 }
0x1355   :  { %4172 = vrot.lane.b32.xlu0 %v7495_v58, %s6378_s3  ;;  %v4168_v59 = vmul.f32 %v7416_v29, %v4149_v9  ;;  %v4257_v1 = vsel %vm622_vm4, %v4256_v45, %v4255_v23  ;;  %v4486_v45 = vld [vmem:[#allocation2 + $0x2f] sm:$0x1] }
0x1356   :  { %v4147_v60 = vpop.permute.xlu1 %4146 }
0x1357   :  { %v4167_v32 = vmul.f32 %v7421_v17, %v4147_v60  ;;  %v4260_v44 = vrot.slane %v4168_v59, 4  ;;  %v7536_v59 = vld [vmem:[%s8204_s6] ss:$0 sm:$0xff] }
0x1358   :  { %v4153_v57 = vpop.permute.xlu0 %4152 }
0x1359   :  { %v4258_v7 = vrot.slane %v4167_v32, 5  ;;  %v4170_v10 = vmul.f32 %v7424_v14, %v4153_v57  ;;  %v4488_v57 = vld [vmem:[#allocation2 + $0x3f] sm:$0x1] }
0x135a   :  { %v4151_v31 = vpop.permute.xlu1 %4150 }
0x135b   :  { %v4259_v20 = vsel %vm625_vm5, %v4258_v7, %v4257_v1  ;;  %v4169_v55 = vmul.f32 %v7429_v52, %v4151_v31  ;;  %v4264_v24 = vrot.slane %v4170_v10, 2 }
0x135c   :  { %v4261_v21 = vsel %vm628_vm6, %v4260_v44, %v4259_v20 }
0x135d   :  { %v4262_v41 = vrot.slane %v4169_v55, 3 }
0x135e   :  { %v4155_v13 = vpop.permute.xlu1 %4154 }
0x135f   :  { %v4263_v17 = vsel %vm631_vm7, %v4262_v41, %v4261_v21  ;;  %v4171_v29 = vmul.f32 %v7434_v49, %v4155_v13 }
0x1360   :  { %v4265_v25 = vsel %vm634_vm8, %v4264_v24, %v4263_v17 }
0x1361   :  { %v4266_v18 = vrot.slane %v4171_v29, 1 }
0x1363   :  { %v4267_v0 = vsel %vm637_vm9, %v4266_v18, %v4265_v25 }
0x1364   :  { %4268 = vrot.lane.b32.xlu1 %v4267_v0, %s6378_s3 }
0x13c7   :  { %v4173_v52 = vpop.permute.xlu0 %4172 }
0x13c8   :  { %5595 = vmatmul.mubr.msk.f32.vlgmr.msra.gmra.mrb[20].mxu1 %vm30_vm2, %v4173_v52 }
0x13c9   :  { %5773 = vmatpush3.bf16.msra.mxu1 %v6448_v8  ;;  %5616 = vmatprep.mubr.msk.f32.mxu1 %vm6375_vm1, %v6376_v4 }
0x13ca   :  { %5774 = vmatprep.subr.bf16.mxu1 %v6374_v3 }
0x13cd   :  { %5776 = vmatpush3.bf16.msra.mxu1 %v6460_v12 }
0x13ce   :  { %5783 = vmatprep.subr.bf16.mxu1 %v6374_v3 }
0x13d6   :  { %v4269_v14 = vpop.permute.xlu1 %4268 }
0x13d7   :  { %5606 = vmatmul.mubr.msk.f32.vlgmr.msra.gmra.mrb[26].mxu0 %vm30_vm2, %v4269_v14  ;;  %5617 = vmatmul.mubr.msk.f32.vlgmr.msra.gmra.mrb[22].mxu1 %vm30_vm2, %v4269_v14 }
0x13d8   :  { %5779 = vmatpush3.bf16.msra.mxu0 %v6600_v50  ;;  %5785 = vmatpush3.bf16.msra.mxu1 %v6613_v56 }
0x13d9   :  { %5780 = vmatprep.subr.bf16.mxu0 %v6374_v3  ;;  %5786 = vmatprep.subr.bf16.mxu1 %v6374_v3 }
0x13da   :  { %5627 = vmatprep.mubr.msk.f32.mxu0 %vm6375_vm1, %v6376_v4  ;;  %5638 = vmatprep.mubr.msk.f32.mxu1 %vm6375_vm1, %v6376_v4 }
0x13dc   :  { %5782 = vmatpush3.bf16.msra.mxu0 %v6622_v61  ;;  %5788 = vmatpush3.bf16.msra.mxu1 %v6626_v63 }
0x149b   :  { %v4242_v8 = vpop.f32.mrb[20].mxu1 }
0x149c   :  { %v5596_v12 = vpop.f32.mrb[21].mxu1 }
0x14aa   :  { %v4338_v49 = vpop.f32.mrb[26].mxu0  ;;  %v4555_v50 = vpop.f32.mrb[22].mxu1 }
0x14ab   :  { %v4339_v27 = vadd.f32 %v4338_v49, %v4242_v8  ;;  %v5607_v56 = vpop.f32.mrb[27].mxu0  ;;  %v5618_v40 = vpop.f32.mrb[23].mxu1  ;;  %v4575_v5 = vadd.f32 %v4555_v50, %v4481_v26  ;;  %v4560_v3 = vrot.slane %v4555_v50, 1  ;;  %v4561_v43 = vrot.slane %v4555_v50, 2 }
0x14ac   :  { %v4563_v46 = vrot.slane %v4555_v50, 4  ;;  %v4562_v11 = vrot.slane %v4555_v50, 3  ;;  %v4565_v54 = vrot.slane %v4555_v50, 6  ;;  %v4564_v30 = vrot.slane %v4555_v50, 5 }
0x14ad   :  { %6292 = vtanh.f32 %v4575_v5  ;;  %v4576_v4 = vadd.f32 %v4560_v3, %v4482_v47  ;;  %v4577_v61 = vadd.f32 %v4561_v43, %v4483_v19  ;;  %v4566_v23 = vrot.slane %v4555_v50, 7 }
0x14ae   :  { %v4579_v35 = vadd.f32 %v4563_v46, %v4485_v33  ;;  %v4578_v9 = vadd.f32 %v4562_v11, %v4484_v28  ;;  %v4581_v60 = vadd.f32 %v4565_v54, %v4487_v62  ;;  %v4580_v32 = vadd.f32 %v4564_v30, %v4486_v45 }
0x14af   :  { %6294 = vtanh.f32 %v4576_v4  ;;  %v4342_v7 = vadd.f32 %v7536_v59, %v4339_v27  ;;  %v4582_v1 = vadd.f32 %v4566_v23, %v4488_v57  ;;  %v5220_v17 = vmul.f32 -1.442695, %v4575_v5 }
0x14b0   :  { %6296 = vtanh.f32 %v4577_v61  ;;  %v5221_v29 = vmul.f32 -1.442695, %v4576_v4  ;;  %v5222_v24 = vmul.f32 -1.442695, %v4577_v61  ;;  %v5224_v25 = vmul.f32 -1.442695, %v4579_v35 }
0x14b1   :  { %6298 = vtanh.f32 %v4579_v35  ;;  %v5223_v0 = vmul.f32 -1.442695, %v4578_v9  ;;  %v5226_v14 = vmul.f32 -1.442695, %v4581_v60  ;;  %v5225_v8 = vmul.f32 -1.442695, %v4580_v32 }
0x14b2   :  { %6300 = vtanh.f32 %v4578_v9  ;;  %v5218_v12 = vmul.f32 -1.442695, %v4342_v7  ;;  %v5227_v49 = vmul.f32 -1.442695, %v4582_v1 }
0x14b3   :  { %6302 = vtanh.f32 %v4581_v60 }
0x14b4   :  { %6304 = vtanh.f32 %v4580_v32 }
0x14b5   :  { %6306 = vtanh.f32 %v4342_v7 }
0x14b6   :  { %6308 = vtanh.f32 %v4582_v1 }
0x14b7   :  { %v6293_v63 = vpop.eup %6292  ;;  %6310 = vpow2.f32 %v5220_v17 }
0x14b8   :  { %4655 = vrot.lane.b32.xlu0 %v6293_v63, %s6377_s0  ;;  %6312 = vpow2.f32 %v5221_v29 }
0x14b9   :  { %v6295_v31 = vpop.eup %6294  ;;  %6314 = vpow2.f32 %v5222_v24 }
0x14ba   :  { %v6297_v20 = vpop.eup %6296  ;;  %6316 = vpow2.f32 %v5224_v25 }
0x14bb   :  { %4659 = vrot.lane.b32.xlu1 %v6297_v20, %s6377_s0  ;;  %v6299_v55 = vpop.eup %6298  ;;  %6318 = vpow2.f32 %v5223_v0 }
0x14bc   :  { %4657 = vrot.lane.b32.xlu0 %v6295_v31, %s6377_s0  ;;  %v6301_v44 = vpop.eup %6300 }
0x14bd   :  { %v6303_v10 = vpop.eup %6302 }
0x14be   :  { %v6305_v41 = vpop.eup %6304 }
0x14bf   :  { %4661 = vrot.lane.b32.xlu1 %v6301_v44, %s6377_s0  ;;  %v6307_v21 = vpop.eup %6306 }
0x14c0   :  { %4663 = vrot.lane.b32.xlu0 %v6299_v55, %s6377_s0  ;;  %v6309_v13 = vpop.eup %6308 }
0x14c1   :  { %v6311_v18 = vpop.eup %6310 }
0x14c2   :  { %v4607_v52 = vadd.f32 1.0, %v6311_v18  ;;  %v6313_v50 = vpop.eup %6312 }
0x14c3   :  { %4665 = vrot.lane.b32.xlu1 %v6305_v41, %s6377_s0  ;;  %v6315_v27 = vpop.eup %6314  ;;  %v4608_v56 = vadd.f32 1.0, %v6313_v50 }
0x14c4   :  { %4667 = vrot.lane.b32.xlu0 %v6303_v10, %s6377_s0  ;;  %6320 = vrcp.f32 %v4607_v52  ;;  %v6317_v40 = vpop.eup %6316  ;;  %v4609_v26 = vadd.f32 1.0, %v6315_v27 }
0x14c5   :  { %6322 = vpow2.f32 %v5226_v14  ;;  %v6319_v5 = vpop.eup %6318  ;;  %v4611_v47 = vadd.f32 1.0, %v6317_v40 }
0x14c6   :  { %6324 = vpow2.f32 %v5225_v8  ;;  %v4610_v4 = vadd.f32 1.0, %v6319_v5 }
0x14c7   :  { %4669 = vrot.lane.b32.xlu1 %v6309_v13, %s6377_s0  ;;  %6326 = vpow2.f32 %v5218_v12 }
0x14c8   :  { %4352 = vrot.lane.b32.xlu0 %v6307_v21, %s6377_s0  ;;  %6328 = vpow2.f32 %v5227_v49 }
0x14c9   :  { %6330 = vrcp.f32 %v4608_v56 }
0x14ca   :  { %6332 = vrcp.f32 %v4609_v26 }
0x14cb   :  { %6334 = vrcp.f32 %v4611_v47 }
0x14cc   :  { %6336 = vrcp.f32 %v4610_v4 }
0x14ce   :  { %v7547_v3 = vpop.eup %6320 }
0x14cf   :  { %v6323_v19 = vpop.eup %6322  ;;  %v4639_v52 = vmul.f32 %v7547_v3, %v7440_v39 }
0x14d0   :  { %v6325_v11 = vpop.eup %6324  ;;  %v4613_v61 = vadd.f32 1.0, %v6323_v19 }
0x14d1   :  { %v6327_v33 = vpop.eup %6326  ;;  %v4612_v63 = vadd.f32 1.0, %v6325_v11 }
0x14d2   :  { %v6329_v28 = vpop.eup %6328  ;;  %v4346_v54 = vadd.f32 1.0, %v6327_v33  ;;  %6338 = vrcp.f32 %v4613_v61 }
0x14d3   :  { %6340 = vrcp.f32 %v4612_v63  ;;  %v4614_v35 = vadd.f32 1.0, %v6329_v28  ;;  %v7551_v30 = vpop.eup %6330 }
0x14d4   :  { %v7553_v62 = vpop.eup %6332  ;;  %6342 = vrcp.f32 %v4346_v54  ;;  %v4640_v12 = vmul.f32 %v7551_v30, %v7447_v53 }
0x14d5   :  { %6344 = vrcp.f32 %v4614_v35  ;;  %v7558_v32 = vpop.eup %6334  ;;  %v4641_v49 = vmul.f32 %v7553_v62, %v7449_v6 }
0x14d6   :  { %v7561_v57 = vpop.eup %6336 }
0x14d7   :  { %v4642_v47 = vmul.f32 %v7561_v57, %v7468_v51 }
0x14dc   :  { %v7566_v55 = vpop.eup %6338 }
0x14dd   :  { %v7569_v10 = vpop.eup %6340 }
0x14de   :  { %v7574_v17 = vpop.eup %6342  ;;  %v4644_v51 = vmul.f32 %v7569_v10, %v7476_v16 }
0x14df   :  { %v7577_v24 = vpop.eup %6344 }
0x152a   :  { %v4656_v43 = vpop.permute.xlu0 %4655 }
0x152b   :  { %v4679_v46 = vmul.f32 %v7547_v3, %v4656_v43  ;;  %v4643_v43 = vmul.f32 %v7558_v32, %v7460_v34  ;;  %v4645_v34 = vmul.f32 %v7566_v55, %v7470_v15 }
0x152d   :  { %4695 = vrot.lane.b32.xlu1 %v4679_v46, %s6378_s3  ;;  %v4660_v45 = vpop.permute.xlu1 %4659 }
0x152e   :  { %v4658_v9 = vpop.permute.xlu0 %4657  ;;  %v4681_v23 = vmul.f32 %v7553_v62, %v4660_v45 }
0x152f   :  { %v4680_v60 = vmul.f32 %v7551_v30, %v4658_v9 }
0x1530   :  { %4699 = vrot.lane.b32.xlu0 %v4681_v23, %s6378_s3  ;;  %v4350_v23 = vmul.f32 %v7574_v17, %v7458_v2 }
0x1531   :  { %4697 = vrot.lane.b32.xlu1 %v4680_v60, %s6378_s3  ;;  %v4662_v1 = vpop.permute.xlu1 %4661 }
0x1532   :  { %v4664_v7 = vpop.permute.xlu0 %4663  ;;  %v4682_v20 = vmul.f32 %v7561_v57, %v4662_v1 }
0x1533   :  { %v4683_v31 = vmul.f32 %v7558_v32, %v4664_v7  ;;  %v4646_v7 = vmul.f32 %v7577_v24, %v7483_v37 }
0x1534   :  { %4701 = vrot.lane.b32.xlu0 %v4682_v20, %s6378_s3 }
0x1535   :  { %4703 = vrot.lane.b32.xlu1 %v4683_v31, %s6378_s3  ;;  %v4666_v41 = vpop.permute.xlu1 %4665 }
0x1536   :  { %v4668_v44 = vpop.permute.xlu0 %4667  ;;  %v4684_v13 = vmul.f32 %v7569_v10, %v4666_v41 }
0x1537   :  { %v4685_v21 = vmul.f32 %v7566_v55, %v4668_v44 }
0x1538   :  { %4705 = vrot.lane.b32.xlu0 %v4684_v13, %s6378_s3 }
0x1539   :  { %4707 = vrot.lane.b32.xlu1 %v4685_v21, %s6378_s3  ;;  %v4670_v18 = vpop.permute.xlu1 %4669 }
0x153a   :  { %v4353_v29 = vpop.permute.xlu0 %4352  ;;  %v4686_v0 = vmul.f32 %v7577_v24, %v4670_v18 }
0x153b   :  { %v4355_v25 = vmul.f32 %v7574_v17, %v4353_v29 }
0x153c   :  { %4709 = vrot.lane.b32.xlu0 %v4686_v0, %s6378_s3 }
0x153d   :  { %4357 = vrot.lane.b32.xlu1 %v4355_v25, %s6378_s3 }
0x159f   :  { %v4696_v14 = vpop.permute.xlu1 %4695 }
0x15a0   :  { %v4719_v8 = vadd.f32 %v4696_v14, %v4639_v52 }
0x15a2   :  { %6346 = vtanh.f32 %v4719_v8  ;;  %v4700_v27 = vpop.permute.xlu0 %4699 }
0x15a3   :  { %v4698_v50 = vpop.permute.xlu1 %4697  ;;  %v4721_v40 = vadd.f32 %v4700_v27, %v4641_v49 }
0x15a4   :  { %v4720_v56 = vadd.f32 %v4698_v50, %v4640_v12 }
0x15a5   :  { %v5096_v39 = vrot.slane %v4721_v40, 6 }
0x15a6   :  { %6348 = vtanh.f32 %v4720_v56  ;;  %v5094_v5 = vrot.slane %v4720_v56, 7  ;;  %v4702_v6 = vpop.permute.xlu0 %4701 }
0x15a7   :  { %6350 = vtanh.f32 %v4721_v40  ;;  %v4704_v19 = vpop.permute.xlu1 %4703  ;;  %v4722_v11 = vadd.f32 %v4702_v6, %v4642_v47 }
0x15a8   :  { %v5095_v53 = vsel %vm619_vm3, %v5094_v5, %v4719_v8  ;;  %v4723_v46 = vadd.f32 %v4704_v19, %v4643_v43 }
0x15a9   :  { %v5097_v4 = vsel %vm622_vm4, %v5096_v39, %v5095_v53  ;;  %v5098_v33 = vrot.slane %v4722_v11, 5 }
0x15aa   :  { %6352 = vtanh.f32 %v4723_v46  ;;  %v5100_v61 = vrot.slane %v4723_v46, 4  ;;  %v4706_v28 = vpop.permute.xlu0 %4705 }
0x15ab   :  { %6354 = vtanh.f32 %v4722_v11  ;;  %v4708_v63 = vpop.permute.xlu1 %4707  ;;  %v5099_v35 = vsel %vm625_vm5, %v5098_v33, %v5097_v4  ;;  %v4724_v9 = vadd.f32 %v4706_v28, %v4644_v51 }
0x15ac   :  { %v6347_v26 = vpop.eup %6346  ;;  %v4725_v54 = vadd.f32 %v4708_v63, %v4645_v34  ;;  %v5101_v45 = vsel %vm628_vm6, %v5100_v61, %v5099_v35 }
0x15ad   :  { %4743 = vrot.lane.b32.xlu0 %v6347_v26, %s6377_s0  ;;  %v5102_v15 = vrot.slane %v4724_v9, 3 }
0x15ae   :  { %6356 = vtanh.f32 %v4725_v54  ;;  %v5104_v60 = vrot.slane %v4725_v54, 2  ;;  %v4710_v31 = vpop.permute.xlu0 %4709 }
0x15af   :  { %6358 = vtanh.f32 %v4724_v9  ;;  %v4358_v1 = vpop.permute.xlu1 %4357  ;;  %v5103_v41 = vsel %vm631_vm7, %v5102_v15, %v5101_v45  ;;  %v4726_v21 = vadd.f32 %v4710_v31, %v4646_v7  ;;  %v6379_v45 = vmov 1966171168  }
0x15b0   :  { %v6349_v16 = vpop.eup %6348  ;;  %v7606_v20 = vadd.f32 %v4358_v1, %v4350_v23  ;;  %v5105_v2 = vsel %vm634_vm8, %v5104_v60, %v5103_v41  ;;  %v751_v60 = vunpack.c.l.s4 %v6379_v45  ;;  %v753_v23 = vlaneseq }
0x15b1   :  { %v6351_v44 = vpop.eup %6350  ;;  %4745 = vrot.lane.b32.xlu0 %v6349_v16, %s6377_s0  ;;  %v5106_v13 = vrot.slane %v4726_v21, 1 }
0x15b2   :  { %4747 = vrot.lane.b32.xlu1 %v6351_v44, %s6377_s0  ;;  %6360 = vtanh.f32 %v7606_v20  ;;  %v752_v16 = vunpack.c.0.s8 %v751_v60  ;;  %v754_v31 = vshrl.u32 %v753_v23, 7 }
0x15b3   :  { %6362 = vtanh.f32 %v4726_v21  ;;  %v7615_v18 = vsel %vm637_vm9, %v5106_v13, %v5105_v2  ;;  %v749_v2 = vcombine.high %v6780_v38, %v6780_v38 }
0x15b4   :  { %v6353_v37 = vpop.eup %6352  ;;  %v7650_v41 = vsub.s32 %v752_v16, %v754_v31  ;;  %v3162_v16 = vcombine.high %v7353_v42, %v7353_v42 }
0x15b5   :  { %v6355_v29 = vpop.eup %6354  ;;  %4751 = vrot.lane.b32.xlu0 %v6353_v37, %s6377_s0 }
0x15b6   :  { %4749 = vrot.lane.b32.xlu1 %v6355_v29, %s6377_s0  ;;  %v756_v21 = vrot.slane %v6780_v38, %v7650_v41  ;;  %v7657_v29 = vsub.s32 0, %v754_v31 }
0x15b8   :  { %v6357_v25 = vpop.eup %6356  ;;  %v764_v13 = vcombine.high %v756_v21, %v756_v21  ;;  %v772_v37 = vrot.slane %v756_v21, %v7650_v41 }
0x15b9   :  { %v6359_v0 = vpop.eup %6358  ;;  %4755 = vrot.lane.b32.xlu0 %v6357_v25, %s6377_s0 }
0x15ba   :  { %4753 = vrot.lane.b32.xlu1 %v6359_v0, %s6377_s0  ;;  %v7664_v0 = vrot.slane %v764_v13, %v7650_v41  ;;  %v7757_v13 = vrot.slane %v3162_v16, %v7650_v41 }
0x15bc   :  { %v6361_v52 = vpop.eup %6360 }
0x15bd   :  { %v6363_v14 = vpop.eup %6362  ;;  %4363 = vrot.lane.b32.xlu0 %v6361_v52, %s6377_s0  ;;  %v801_v52 = vrot.slane %v772_v37, %v7657_v29 }
0x15be   :  { %4757 = vrot.lane.b32.xlu1 %v6363_v14, %s6377_s0  ;;  %v794_v14 = vcombine.high %v772_v37, %v772_v37 }
0x161f   :  { %v4744_v8 = vpop.permute.xlu0 %4743 }
0x1620   :  { %v4767_v56 = vmul.f32 %v7547_v3, %v4744_v8  ;;  %v809_v8 = vrot.slane %v794_v14, %v7657_v29 }
0x1623   :  { %v4746_v12 = vpop.permute.xlu0 %4745 }
0x1624   :  { %v4748_v49 = vpop.permute.xlu1 %4747  ;;  %v4768_v50 = vmul.f32 %v7551_v30, %v4746_v12  ;;  %v796_v12 = vcombine.high %v7664_v0, %v7664_v0 }
0x1625   :  { %v4769_v27 = vmul.f32 %v7553_v62, %v4748_v49  ;;  %v7676_v49 = vrot.slane %v6922_v22, %v7650_v41 }
0x1626   :  { %v4857_v40 = vrot.slane %v4768_v50, 7  ;;  %v813_v50 = vrot.slane %v796_v12, %v7657_v29 }
0x1627   :  { %v4752_v26 = vpop.permute.xlu0 %4751  ;;  %v4859_v5 = vrot.slane %v4769_v27, 6 }
0x1628   :  { %v4858_v43 = vsel %vm619_vm3, %v4857_v40, %v4767_v56  ;;  %v4750_v39 = vpop.permute.xlu1 %4749  ;;  %v4771_v47 = vmul.f32 %v7558_v32, %v4752_v26  ;;  %v1353_v56 = vcombine.high %v6922_v22, %v6922_v22  ;;  %v1368_v40 = vcombine.high %v7676_v49, %v7676_v49 }
0x1629   :  { %v4770_v19 = vmul.f32 %v7561_v57, %v4750_v39  ;;  %v4860_v53 = vsel %vm622_vm4, %v4859_v5, %v4858_v43 }
0x162a   :  { %v4863_v6 = vrot.slane %v4771_v47, 4  ;;  %v7688_v43 = vrot.slane %v1353_v56, %v7650_v41  ;;  %v1390_v47 = vrot.slane %v1368_v40, %v7650_v41 }
0x162b   :  { %v4861_v46 = vrot.slane %v4770_v19, 5  ;;  %v4756_v4 = vpop.permute.xlu0 %4755 }
0x162c   :  { %v4754_v30 = vpop.permute.xlu1 %4753  ;;  %v4773_v62 = vmul.f32 %v7566_v55, %v4756_v4  ;;  %v1369_v22 = vcombine.high %v7688_v43, %v7688_v43  ;;  %v1409_v19 = vrot.slane %v1390_v47, %v7657_v29 }
0x162d   :  { %v4862_v3 = vsel %vm625_vm5, %v4861_v46, %v4860_v53  ;;  %v4772_v11 = vmul.f32 %v7569_v10, %v4754_v30  ;;  %v1400_v53 = vcombine.high %v1390_v47, %v1390_v47  ;;  %v1956_v30 = vcombine.high %v7064_v48, %v7064_v48 }
0x162e   :  { %v4864_v61 = vsel %vm628_vm6, %v4863_v6, %v4862_v3  ;;  %v4867_v34 = vrot.slane %v4773_v62, 2  ;;  %v7699_v6 = vrot.slane %v7064_v48, %v7650_v41  ;;  %v1397_v4 = vrot.slane %v1369_v22, %v7650_v41 }
0x162f   :  { %v4865_v33 = vrot.slane %v4772_v11, 3  ;;  %v4364_v51 = vpop.permute.xlu0 %4363  ;;  %v1417_v46 = vrot.slane %v1400_v53, %v7657_v29 }
0x1630   :  { %v4758_v32 = vpop.permute.xlu1 %4757  ;;  %v7634_v57 = vmul.f32 %v7574_v17, %v4364_v51  ;;  %v1971_v62 = vcombine.high %v7699_v6, %v7699_v6  ;;  %v1425_v3 = vrot.slane %v1397_v4, %v7657_v29  ;;  %v1401_v11 = vcombine.high %v1397_v4, %v1397_v4 }
0x1631   :  { %v4866_v63 = vsel %vm631_vm7, %v4865_v33, %v4864_v61  ;;  %v4774_v28 = vmul.f32 %v7577_v24, %v4758_v32  ;;  %v7711_v61 = vrot.slane %v1956_v30, %v7650_v41 }
0x1632   :  { %v4868_v54 = vsel %vm634_vm8, %v4867_v34, %v4866_v63  ;;  %4775 = vrot.lane.b32.xlu1 %v7634_v57, %s6378_s3  ;;  %v1433_v34 = vrot.slane %v1401_v11, %v7657_v29  ;;  %v1993_v33 = vrot.slane %v1971_v62, %v7650_v41  ;;  %v7722_v63 = vrot.slane %v7211_v36, %v7650_v41 }
0x1633   :  { %v4869_v55 = vrot.slane %v4774_v28, 1  ;;  %v1972_v48 = vcombine.high %v7711_v61, %v7711_v61  ;;  %v7792_v53 = vrot.slane %v7634_v57, %v7650_v41 }
0x1634   :  { %v2012_v51 = vrot.slane %v1993_v33, %v7657_v29  ;;  %v2003_v32 = vcombine.high %v1993_v33, %v1993_v33 }
0x1635   :  { %v4870_v10 = vsel %vm637_vm9, %v4869_v55, %v4868_v54  ;;  %v2000_v54 = vrot.slane %v1972_v48, %v7650_v41  ;;  %v2559_v55 = vcombine.high %v7211_v36, %v7211_v36  ;;  %v4383_v30 = vcombine.high %v7792_v53, %v7792_v53 }
0x1636   :  { %4871 = vrot.lane.b32.xlu0 %v4870_v10, %s6378_s3  ;;  %v2020_v28 = vrot.slane %v2003_v32, %v7657_v29  ;;  %v2574_v10 = vcombine.high %v7722_v63, %v7722_v63 }
0x1637   :  { %v4405_v33 = vrot.slane %v4383_v30, %v7650_v41 }
0x1638   :  { %v2596_v45 = vrot.slane %v2574_v10, %v7650_v41 }
0x1639   :  { %v4424_v32 = vrot.slane %v4405_v33, %v7657_v29 }
0x163a   :  { %v2615_v60 = vrot.slane %v2596_v45, %v7657_v29  ;;  %v2606_v23 = vcombine.high %v2596_v45, %v2596_v45 }
0x16a4   :  { %v4776_v35 = vpop.permute.xlu1 %4775 }
0x16a5   :  { %5628 = vmatmul.mubr.msk.f32.vlgmr.msra.gmra.mrb[28].mxu0 %vm30_vm2, %v4776_v35  ;;  %v2028_v35 = vrot.slane %v2000_v54, %v7657_v29 }
0x16a8   :  { %v4872_v9 = vpop.permute.xlu0 %4871 }
0x16a9   :  { %5085 = vst.msk [vmem:[#allocation3] sm:$0xff] %vm30_vm2, %v4872_v9  ;;  %5639 = vmatmul.mubr.msk.f32.vlgmr.msra.gmra.mrb[24].mxu1 %vm30_vm2, %v4872_v9  ;;  %v2004_v9 = vcombine.high %v2000_v54, %v2000_v54 }
0x1778   :  { %v4845_v17 = vpop.f32.mrb[28].mxu0 }
0x1779   :  { %v5629_v24 = vpop.f32.mrb[29].mxu0 }
0x177a   :  { %v2036_v24 = vrot.slane %v2004_v9, %v7657_v29 }
0x177c   :  { %v4941_v15 = vpop.f32.mrb[24].mxu1 }
0x177d   :  { %v4942_v7 = vadd.f32 %v4941_v15, %v4845_v17  ;;  %v5640_v1 = vpop.f32.mrb[25].mxu1  ;;  %v7734_v17 = vrot.slane %v2559_v55, %v7650_v41  ;;  %v7745_v15 = vrot.slane %v7353_v42, %v7650_v41  ;;  %v3178_v42 = vcombine.high %v7757_v13, %v7757_v13 }
0x177f   :  { %v7647_v44 = vadd.f32 %v7536_v59, %v4942_v7  ;;  %v7661_v59 = vrot.slane %v749_v2, %v7650_v41  ;;  %v2575_v36 = vcombine.high %v7734_v17, %v7734_v17  ;;  %v2623_v7 = vrot.slane %v2606_v23, %v7657_v29 }
0x1780   :  { %v3177_v31 = vcombine.high %v7745_v15, %v7745_v15  ;;  %v3206_v12 = vrot.slane %v3178_v42, %v7650_v41  ;;  %v805_v23 = vrot.slane %v7664_v0, %v7657_v29  ;;  %v1376_v0 = vrot.slane %v7676_v49, %v7650_v41 }
0x1781   :  { %6364 = vtanh.f32 %v7647_v44  ;;  %v765_v38 = vcombine.high %v7661_v59, %v7661_v59  ;;  %v2603_v1 = vrot.slane %v2575_v36, %v7650_v41  ;;  %v5230_v47 = vmul.f32 -1.442695, %v7647_v44 }
0x1782   :  { %v3234_v56 = vrot.slane %v3206_v12, %v7657_v29  ;;  %v3210_v40 = vcombine.high %v3206_v12, %v3206_v12  ;;  %v4368_v44 = vcombine.high %v7634_v57, %v7634_v57 }
0x1783   :  { %v793_v27 = vrot.slane %v765_v38, %v7650_v41  ;;  %v2631_v21 = vrot.slane %v2603_v1, %v7657_v29  ;;  %v2607_v2 = vcombine.high %v2603_v1, %v2603_v1  ;;  %v7768_v38 = vrot.slane %v7495_v58, %v7650_v41 }
0x1784   :  { %6366 = vpow2.f32 %v5230_v47  ;;  %v1986_v47 = vrot.slane %v7711_v61, %v7650_v41 }
0x1785   :  { %v821_v26 = vrot.slane %v793_v27, %v7657_v29  ;;  %v797_v5 = vcombine.high %v793_v27, %v793_v27  ;;  %v2639_v37 = vrot.slane %v2607_v2, %v7657_v29  ;;  %v3780_v27 = vcombine.high %v7768_v38, %v7768_v38 }
0x1787   :  { %v829_v39 = vrot.slane %v797_v5, %v7657_v29  ;;  %v3242_v5 = vrot.slane %v3210_v40, %v7657_v29 }
0x178b   :  { %v6365_v25 = vpop.eup %6364 }
0x178c   :  { %4955 = vrot.lane.b32.xlu1 %v6365_v25, %s6377_s0  ;;  %v3199_v25 = vrot.slane %v3177_v31, %v7650_v41 }
0x178e   :  { %v3209_v14 = vcombine.high %v3199_v25, %v3199_v25  ;;  %v6367_v11 = vpop.eup %6366 }
0x1790   :  { %830 = vrot.lane.b32.xlu1 %v801_v52, %s6378_s3  ;;  %v3218_v52 = vrot.slane %v3199_v25, %v7657_v29  ;;  %v1398_v25 = vcombine.high %v1376_v0, %v1376_v0 }
0x1792   :  { %v1413_v42 = vrot.slane %v1398_v25, %v7657_v29 }
0x1794   :  { %834 = vrot.lane.b32.xlu1 %v809_v8, %s6378_s3  ;;  %v3226_v8 = vrot.slane %v3209_v14, %v7657_v29 }
0x1798   :  { %836 = vrot.lane.b32.xlu1 %v813_v50, %s6378_s3  ;;  %v3765_v50 = vcombine.high %v7495_v58, %v7495_v58 }
0x179c   :  { %840 = vrot.lane.b32.xlu1 %v821_v26, %s6378_s3  ;;  %v7780_v26 = vrot.slane %v3765_v50, %v7650_v41 }
0x179e   :  { %v3781_v58 = vcombine.high %v7780_v26, %v7780_v26 }
0x17a0   :  { %844 = vrot.lane.b32.xlu1 %v829_v39, %s6378_s3  ;;  %v3802_v39 = vrot.slane %v3780_v27, %v7650_v41  ;;  %v3809_v4 = vrot.slane %v3781_v58, %v7650_v41  ;;  %v1979_v27 = vrot.slane %v7699_v6, %v7650_v41 }
0x17a2   :  { %v3821_v22 = vrot.slane %v3802_v39, %v7657_v29  ;;  %v3837_v62 = vrot.slane %v3809_v4, %v7657_v29  ;;  %v2008_v40 = vrot.slane %v1979_v27, %v7657_v29 }
0x17a4   :  { %1436 = vrot.lane.b32.xlu1 %v1409_v19, %s6378_s3  ;;  %v3812_v19 = vcombine.high %v3802_v39, %v3802_v39 }
0x17a8   :  { %1440 = vrot.lane.b32.xlu1 %v1417_v46, %s6378_s3  ;;  %v3829_v46 = vrot.slane %v3812_v19, %v7657_v29  ;;  %v2002_v19 = vcombine.high %v1986_v47, %v1986_v47 }
0x17aa   :  { %v2032_v61 = vrot.slane %v2002_v19, %v7657_v29 }
0x17ac   :  { %1444 = vrot.lane.b32.xlu1 %v1425_v3, %s6378_s3  ;;  %v3813_v3 = vcombine.high %v3809_v4, %v3809_v4  ;;  %v2582_v4 = vrot.slane %v7722_v63, %v7650_v41 }
0x17ae   :  { %v3845_v48 = vrot.slane %v3813_v3, %v7657_v29  ;;  %v2611_v30 = vrot.slane %v2582_v4, %v7657_v29 }
0x17b0   :  { %1448 = vrot.lane.b32.xlu1 %v1433_v34, %s6378_s3  ;;  %v7804_v34 = vrot.slane %v4368_v44, %v7650_v41 }
0x17b2   :  { %v4384_v57 = vcombine.high %v7804_v34, %v7804_v34 }
0x17b4   :  { %2039 = vrot.lane.b32.xlu1 %v2012_v51, %s6378_s3  ;;  %v4949_v51 = vadd.f32 1.0, %v6367_v11  ;;  %v4412_v55 = vrot.slane %v4384_v57, %v7650_v41  ;;  %v2589_v11 = vrot.slane %v7734_v17, %v7650_v41 }
0x17b6   :  { %6368 = vrcp.f32 %v4949_v51  ;;  %v4440_v10 = vrot.slane %v4412_v55, %v7657_v29  ;;  %v2605_v51 = vcombine.high %v2589_v11, %v2589_v11 }
0x17b8   :  { %2043 = vrot.lane.b32.xlu1 %v2020_v28, %s6378_s3  ;;  %v4415_v28 = vcombine.high %v4405_v33, %v4405_v33  ;;  %v2635_v17 = vrot.slane %v2605_v51, %v7657_v29 }
0x17ba   :  { %v4432_v54 = vrot.slane %v4415_v28, %v7657_v29 }
0x17bc   :  { %2047 = vrot.lane.b32.xlu1 %v2028_v35, %s6378_s3  ;;  %v4416_v35 = vcombine.high %v4412_v55, %v4412_v55 }
0x17be   :  { %v4448_v45 = vrot.slane %v4416_v35, %v7657_v29 }
0x17c0   :  { %2051 = vrot.lane.b32.xlu1 %v2036_v24, %s6378_s3  ;;  %v7818_v9 = vpop.eup %6368 }
0x17c4   :  { %2642 = vrot.lane.b32.xlu1 %v2615_v60, %s6378_s3 }
0x17c8   :  { %2646 = vrot.lane.b32.xlu1 %v2623_v7, %s6378_s3  ;;  %v779_v7 = vrot.slane %v7661_v59, %v7650_v41 }
0x17ca   :  { %v817_v16 = vrot.slane %v779_v7, %v7657_v29  ;;  %v795_v31 = vcombine.high %v779_v7, %v779_v7 }
0x17cc   :  { %2650 = vrot.lane.b32.xlu1 %v2631_v21, %s6378_s3  ;;  %v825_v59 = vrot.slane %v795_v31, %v7657_v29  ;;  %v4953_v31 = vmul.f32 %v7818_v9, %v7606_v20  ;;  %v3185_v20 = vrot.slane %v7745_v15, %v7650_v41 }
0x17d0   :  { %2654 = vrot.lane.b32.xlu1 %v2639_v37, %s6378_s3  ;;  %v1405_v37 = vrot.slane %v1376_v0, %v7657_v29 }
0x17d4   :  { %3245 = vrot.lane.b32.xlu1 %v3218_v52, %s6378_s3  ;;  %v1383_v52 = vrot.slane %v7688_v43, %v7650_v41 }
0x17d6   :  { %v1399_v12 = vcombine.high %v1383_v52, %v1383_v52 }
0x17d8   :  { %3249 = vrot.lane.b32.xlu1 %v3226_v8, %s6378_s3  ;;  %v1421_v8 = vrot.slane %v1383_v52, %v7657_v29  ;;  %v1429_v43 = vrot.slane %v1399_v12, %v7657_v29  ;;  %v3207_v52 = vcombine.high %v3185_v20, %v3185_v20 }
0x17dc   :  { %3253 = vrot.lane.b32.xlu1 %v3234_v56, %s6378_s3 }
0x17e0   :  { %3257 = vrot.lane.b32.xlu1 %v3242_v5, %s6378_s3  ;;  %v2001_v5 = vcombine.high %v1979_v27, %v1979_v27 }
0x17e2   :  { %v2016_v39 = vrot.slane %v2001_v5, %v7657_v29 }
0x17e4   :  { %3848 = vrot.lane.b32.xlu1 %v3821_v22, %s6378_s3  ;;  %v2024_v22 = vrot.slane %v1986_v47, %v7657_v29  ;;  %v3795_v47 = vrot.slane %v7780_v26, %v7650_v41  ;;  %v4391_v26 = vrot.slane %v7792_v53, %v7650_v41  ;;  %v4398_v53 = vrot.slane %v7804_v34, %v7650_v41 }
0x17e6   :  { %v3811_v19 = vcombine.high %v3795_v47, %v3795_v47 }
0x17e8   :  { %3852 = vrot.lane.b32.xlu1 %v3829_v46, %s6378_s3 }
0x17ec   :  { %3856 = vrot.lane.b32.xlu1 %v3837_v62, %s6378_s3  ;;  %v2604_v62 = vcombine.high %v2582_v4, %v2582_v4  ;;  %v3841_v4 = vrot.slane %v3811_v19, %v7657_v29 }
0x17ee   :  { %v2619_v3 = vrot.slane %v2604_v62, %v7657_v29 }
0x17f0   :  { %3860 = vrot.lane.b32.xlu1 %v3845_v48, %s6378_s3  ;;  %v2627_v48 = vrot.slane %v2589_v11, %v7657_v29  ;;  %v4436_v11 = vrot.slane %v4398_v53, %v7657_v29 }
0x17f4   :  { %4451 = vrot.lane.b32.xlu1 %v4424_v32, %s6378_s3 }
0x17f8   :  { %4455 = vrot.lane.b32.xlu1 %v4432_v54, %s6378_s3 }
0x17fc   :  { %4459 = vrot.lane.b32.xlu1 %v4440_v10, %s6378_s3 }
0x17fe   :  { %v4956_v24 = vpop.permute.xlu1 %4955 }
0x17ff   :  { %v4958_v36 = vmul.f32 %v7818_v9, %v4956_v24 }
0x1800   :  { %4463 = vrot.lane.b32.xlu1 %v4448_v45, %s6378_s3 }
0x1801   :  { %4960 = vrot.lane.b32.xlu0 %v4958_v36, %s6378_s3 }
0x1802   :  { %v831_v60 = vpop.permute.xlu1 %830 }
0x1803   :  { %855 = vst.msk [vmem:[%s8205_s7] sm:$0x1] %vm854_vm10, %v831_v60 }
0x1805   :  { %832 = vrot.lane.b32.xlu0 %v805_v23, %s6378_s3 }
0x1806   :  { %v835_v1 = vpop.permute.xlu1 %834 }
0x1807   :  { %857 = vst.msk [vmem:[%s8205_s7 + $0x10] sm:$0x1] %vm854_vm10, %v835_v1 }
0x1809   :  { %838 = vrot.lane.b32.xlu0 %v817_v16, %s6378_s3 }
0x180a   :  { %v837_v21 = vpop.permute.xlu1 %836 }
0x180b   :  { %858 = vst.msk [vmem:[%s8205_s7 + $0x18] sm:$0x1] %vm854_vm10, %v837_v21 }
0x180d   :  { %842 = vrot.lane.b32.xlu0 %v825_v59, %s6378_s3 }
0x180e   :  { %v841_v2 = vpop.permute.xlu1 %840 }
0x180f   :  { %860 = vst.msk [vmem:[%s8205_s7 + $0x28] sm:$0x1] %vm854_vm10, %v841_v2 }
0x1811   :  { %1434 = vrot.lane.b32.xlu0 %v1405_v37, %s6378_s3 }
0x1812   :  { %v845_v49 = vpop.permute.xlu1 %844 }
0x1813   :  { %862 = vst.msk [vmem:[%s8205_s7 + $0x38] sm:$0x1] %vm854_vm10, %v845_v49 }
0x1815   :  { %1438 = vrot.lane.b32.xlu0 %v1413_v42, %s6378_s3  ;;  %v3214_v42 = vrot.slane %v3185_v20, %v7657_v29 }
0x1816   :  { %v1437_v14 = vpop.permute.xlu1 %1436 }
0x1817   :  { %1459 = vst.msk [vmem:[%s8205_s7 + $0x9] sm:$0x1] %vm854_vm10, %v1437_v14  ;;  %v3222_v14 = vrot.slane %v3207_v52, %v7657_v29 }
0x1819   :  { %1442 = vrot.lane.b32.xlu0 %v1421_v8, %s6378_s3  ;;  %v3192_v8 = vrot.slane %v7757_v13, %v7650_v41  ;;  %v3788_v13 = vrot.slane %v7768_v38, %v7650_v41 }
0x181a   :  { %v1441_v50 = vpop.permute.xlu1 %1440 }
0x181b   :  { %1461 = vst.msk [vmem:[%s8205_s7 + $0x19] sm:$0x1] %vm854_vm10, %v1441_v50  ;;  %v3230_v50 = vrot.slane %v3192_v8, %v7657_v29  ;;  %v3208_v27 = vcombine.high %v3192_v8, %v3192_v8  ;;  %v3817_v5 = vrot.slane %v3788_v13, %v7657_v29 }
0x181d   :  { %1446 = vrot.lane.b32.xlu0 %v1429_v43, %s6378_s3 }
0x181e   :  { %v1445_v56 = vpop.permute.xlu1 %1444 }
0x181f   :  { %1463 = vst.msk [vmem:[%s8205_s7 + $0x29] sm:$0x1] %vm854_vm10, %v1445_v56  ;;  %v3238_v56 = vrot.slane %v3208_v27, %v7657_v29 }
0x1821   :  { %2037 = vrot.lane.b32.xlu0 %v2008_v40, %s6378_s3 }
0x1822   :  { %v1449_v6 = vpop.permute.xlu1 %1448 }
0x1823   :  { %1465 = vst.msk [vmem:[%s8205_s7 + $0x39] sm:$0x1] %vm854_vm10, %v1449_v6  ;;  %v3810_v6 = vcombine.high %v3788_v13, %v3788_v13 }
0x1825   :  { %2041 = vrot.lane.b32.xlu0 %v2016_v39, %s6378_s3  ;;  %v3825_v39 = vrot.slane %v3810_v6, %v7657_v29 }
0x1826   :  { %v2040_v58 = vpop.permute.xlu1 %2039 }
0x1827   :  { %2062 = vst.msk [vmem:[%s8205_s7 + $0xa] sm:$0x1] %vm854_vm10, %v2040_v58 }
0x1829   :  { %2045 = vrot.lane.b32.xlu0 %v2024_v22, %s6378_s3  ;;  %v3833_v22 = vrot.slane %v3795_v47, %v7657_v29 }
0x182a   :  { %v2044_v46 = vpop.permute.xlu1 %2043 }
0x182b   :  { %2064 = vst.msk [vmem:[%s8205_s7 + $0x1a] sm:$0x1] %vm854_vm10, %v2044_v46 }
0x182d   :  { %2049 = vrot.lane.b32.xlu0 %v2032_v61, %s6378_s3  ;;  %v4413_v61 = vcombine.high %v4391_v26, %v4391_v26 }
0x182e   :  { %v2048_v44 = vpop.permute.xlu1 %2047 }
0x182f   :  { %2066 = vst.msk [vmem:[%s8205_s7 + $0x2a] sm:$0x1] %vm854_vm10, %v2048_v44 }
0x1831   :  { %2640 = vrot.lane.b32.xlu0 %v2611_v30, %s6378_s3  ;;  %v4420_v30 = vrot.slane %v4391_v26, %v7657_v29 }
0x1832   :  { %v2052_v63 = vpop.permute.xlu1 %2051 }
0x1833   :  { %2068 = vst.msk [vmem:[%s8205_s7 + $0x3a] sm:$0x1] %vm854_vm10, %v2052_v63  ;;  %v4428_v63 = vrot.slane %v4413_v61, %v7657_v29 }
0x1835   :  { %2644 = vrot.lane.b32.xlu0 %v2619_v3, %s6378_s3 }
0x1836   :  { %v2643_v33 = vpop.permute.xlu1 %2642 }
0x1837   :  { %2665 = vst.msk [vmem:[%s8205_s7 + $0xb] sm:$0x1] %vm854_vm10, %v2643_v33  ;;  %v4414_v33 = vcombine.high %v4398_v53, %v4398_v53 }
0x1839   :  { %2648 = vrot.lane.b32.xlu0 %v2627_v48, %s6378_s3  ;;  %v4444_v48 = vrot.slane %v4414_v33, %v7657_v29 }
0x183a   :  { %v2647_v57 = vpop.permute.xlu1 %2646 }
0x183b   :  { %2667 = vst.msk [vmem:[%s8205_s7 + $0x1b] sm:$0x1] %vm854_vm10, %v2647_v57 }
0x183d   :  { %2652 = vrot.lane.b32.xlu0 %v2635_v17, %s6378_s3 }
0x183e   :  { %v2651_v32 = vpop.permute.xlu1 %2650 }
0x183f   :  { %2669 = vst.msk [vmem:[%s8205_s7 + $0x2b] sm:$0x1] %vm854_vm10, %v2651_v32 }
0x1842   :  { %v2655_v28 = vpop.permute.xlu1 %2654 }
0x1843   :  { %2671 = vst.msk [vmem:[%s8205_s7 + $0x3b] sm:$0x1] %vm854_vm10, %v2655_v28 }
0x1846   :  { %v3246_v54 = vpop.permute.xlu1 %3245 }
0x1847   :  { %3268 = vst.msk [vmem:[%s8205_s7 + $0xc] sm:$0x1] %vm854_vm10, %v3246_v54 }
0x184a   :  { %v3250_v55 = vpop.permute.xlu1 %3249 }
0x184b   :  { %3270 = vst.msk [vmem:[%s8205_s7 + $0x1c] sm:$0x1] %vm854_vm10, %v3250_v55 }
0x184e   :  { %v3254_v10 = vpop.permute.xlu1 %3253 }
0x184f   :  { %3272 = vst.msk [vmem:[%s8205_s7 + $0x2c] sm:$0x1] %vm854_vm10, %v3254_v10 }
0x1852   :  { %v3258_v35 = vpop.permute.xlu1 %3257 }
0x1853   :  { %3274 = vst.msk [vmem:[%s8205_s7 + $0x3c] sm:$0x1] %vm854_vm10, %v3258_v35 }
0x1856   :  { %v3849_v24 = vpop.permute.xlu1 %3848 }
0x1857   :  { %3871 = vst.msk [vmem:[%s8205_s7 + $0xd] sm:$0x1] %vm854_vm10, %v3849_v24 }
0x185a   :  { %v3853_v45 = vpop.permute.xlu1 %3852 }
0x185b   :  { %3873 = vst.msk [vmem:[%s8205_s7 + $0x1d] sm:$0x1] %vm854_vm10, %v3853_v45 }
0x185e   :  { %v3857_v36 = vpop.permute.xlu1 %3856 }
0x185f   :  { %3875 = vst.msk [vmem:[%s8205_s7 + $0x2d] sm:$0x1] %vm854_vm10, %v3857_v36 }
0x1862   :  { %v3861_v60 = vpop.permute.xlu1 %3860 }
0x1863   :  { %3877 = vst.msk [vmem:[%s8205_s7 + $0x3d] sm:$0x1] %vm854_vm10, %v3861_v60 }
0x1866   :  { %v4452_v23 = vpop.permute.xlu1 %4451 }
0x1867   :  { %4474 = vst.msk [vmem:[%s8205_s7 + $0xe] sm:$0x1] %vm854_vm10, %v4452_v23 }
0x186a   :  { %v4456_v7 = vpop.permute.xlu1 %4455 }
0x186b   :  { %4476 = vst.msk [vmem:[%s8205_s7 + $0x1e] sm:$0x1] %vm854_vm10, %v4456_v7 }
0x186e   :  { %v4460_v1 = vpop.permute.xlu1 %4459 }
0x186f   :  { %4478 = vst.msk [vmem:[%s8205_s7 + $0x2e] sm:$0x1] %vm854_vm10, %v4460_v1 }
0x1872   :  { %v4464_v16 = vpop.permute.xlu1 %4463 }
0x1873   :  { %4480 = vst.msk [vmem:[%s8205_s7 + $0x3e] sm:$0x1] %vm854_vm10, %v4464_v16  ;;  %v4961_v21 = vpop.permute.xlu0 %4960 }
0x1874   :  { %v7987_v0 = vadd.f32 %v4961_v21, %v4953_v31 }
0x1876   :  { %6370 = vtanh.f32 %v7987_v0 }
0x1877   :  { %v833_v59 = vpop.permute.xlu0 %832 }
0x1878   :  { %856 = vst.msk [vmem:[%s8205_s7 + $0x8] sm:$0x1] %vm854_vm10, %v833_v59 }
0x187b   :  { %v839_v2 = vpop.permute.xlu0 %838 }
0x187c   :  { %859 = vst.msk [vmem:[%s8205_s7 + $0x20] sm:$0x1] %vm854_vm10, %v839_v2 }
0x187f   :  { %v843_v37 = vpop.permute.xlu0 %842 }
0x1880   :  { %v6371_v25 = vpop.eup %6370  ;;  %861 = vst.msk [vmem:[%s8205_s7 + $0x30] sm:$0x1] %vm854_vm10, %v843_v37 }
0x1881   :  { %4966 = vrot.lane.b32.xlu0 %v6371_v25, %s6377_s0 }
0x1883   :  { %v1435_v49 = vpop.permute.xlu0 %1434 }
0x1884   :  { %1458 = vst.msk [vmem:[%s8205_s7 + $0x1] sm:$0x1] %vm854_vm10, %v1435_v49 }
0x1885   :  { %3243 = vrot.lane.b32.xlu0 %v3214_v42, %s6378_s3 }
0x1887   :  { %v1439_v15 = vpop.permute.xlu0 %1438 }
0x1888   :  { %1460 = vst.msk [vmem:[%s8205_s7 + $0x11] sm:$0x1] %vm854_vm10, %v1439_v15 }
0x1889   :  { %3247 = vrot.lane.b32.xlu0 %v3222_v14, %s6378_s3 }
0x188b   :  { %v1443_v12 = vpop.permute.xlu0 %1442 }
0x188c   :  { %1462 = vst.msk [vmem:[%s8205_s7 + $0x21] sm:$0x1] %vm854_vm10, %v1443_v12 }
0x188d   :  { %3251 = vrot.lane.b32.xlu0 %v3230_v50, %s6378_s3 }
0x188f   :  { %v1447_v43 = vpop.permute.xlu0 %1446 }
0x1890   :  { %1464 = vst.msk [vmem:[%s8205_s7 + $0x31] sm:$0x1] %vm854_vm10, %v1447_v43 }
0x1891   :  { %3255 = vrot.lane.b32.xlu0 %v3238_v56, %s6378_s3 }
0x1893   :  { %v2038_v40 = vpop.permute.xlu0 %2037 }
0x1894   :  { %2061 = vst.msk [vmem:[%s8205_s7 + $0x2] sm:$0x1] %vm854_vm10, %v2038_v40 }
0x1895   :  { %3846 = vrot.lane.b32.xlu0 %v3817_v5, %s6378_s3 }
0x1897   :  { %v2042_v38 = vpop.permute.xlu0 %2041 }
0x1898   :  { %2063 = vst.msk [vmem:[%s8205_s7 + $0x12] sm:$0x1] %vm854_vm10, %v2042_v38 }
0x1899   :  { %3850 = vrot.lane.b32.xlu0 %v3825_v39, %s6378_s3 }
0x189b   :  { %v2046_v58 = vpop.permute.xlu0 %2045 }
0x189c   :  { %2065 = vst.msk [vmem:[%s8205_s7 + $0x22] sm:$0x1] %vm854_vm10, %v2046_v58 }
0x189d   :  { %3854 = vrot.lane.b32.xlu0 %v3833_v22, %s6378_s3 }
0x189f   :  { %v2050_v46 = vpop.permute.xlu0 %2049 }
0x18a0   :  { %2067 = vst.msk [vmem:[%s8205_s7 + $0x32] sm:$0x1] %vm854_vm10, %v2050_v46 }
0x18a1   :  { %3858 = vrot.lane.b32.xlu0 %v3841_v4, %s6378_s3 }
0x18a3   :  { %v2641_v44 = vpop.permute.xlu0 %2640 }
0x18a4   :  { %2664 = vst.msk [vmem:[%s8205_s7 + $0x3] sm:$0x1] %vm854_vm10, %v2641_v44 }
0x18a5   :  { %4449 = vrot.lane.b32.xlu0 %v4420_v30, %s6378_s3 }
0x18a7   :  { %v2645_v62 = vpop.permute.xlu0 %2644 }
0x18a8   :  { %2666 = vst.msk [vmem:[%s8205_s7 + $0x13] sm:$0x1] %vm854_vm10, %v2645_v62 }
0x18a9   :  { %4453 = vrot.lane.b32.xlu0 %v4428_v63, %s6378_s3 }
0x18ab   :  { %v2649_v3 = vpop.permute.xlu0 %2648 }
0x18ac   :  { %2668 = vst.msk [vmem:[%s8205_s7 + $0x23] sm:$0x1] %vm854_vm10, %v2649_v3 }
0x18ad   :  { %4457 = vrot.lane.b32.xlu0 %v4436_v11, %s6378_s3 }
0x18af   :  { %v2653_v34 = vpop.permute.xlu0 %2652 }
0x18b0   :  { %2670 = vst.msk [vmem:[%s8205_s7 + $0x33] sm:$0x1] %vm854_vm10, %v2653_v34 }
0x18b1   :  { %4461 = vrot.lane.b32.xlu0 %v4444_v48, %s6378_s3 }
0x18b5   :  { %5108 = vrot.lane.b32.xlu0 %v7615_v18, %s6380_s26 }
0x18f3   :  { %v4967_v51 = vpop.permute.xlu0 %4966 }
0x18f4   :  { %v4969_v57 = vmul.f32 %v7818_v9, %v4967_v51 }
0x18f6   :  { %v4971_v17 = vcombine.high %v4969_v57, %v4969_v57  ;;  %v4978_v32 = vrot.slane %v4969_v57, %v7650_v41 }
0x18f7   :  { %v3244_v28 = vpop.permute.xlu0 %3243 }
0x18f8   :  { %v4985_v54 = vrot.slane %v4971_v17, %v7650_v41  ;;  %v4986_v55 = vcombine.high %v4978_v32, %v4978_v32  ;;  %v4994_v10 = vrot.slane %v4978_v32, %v7650_v41  ;;  %3267 = vst.msk [vmem:[%s8205_s7 + $0x4] sm:$0x1] %vm854_vm10, %v3244_v28 }
0x18fa   :  { %v5008_v35 = vrot.slane %v4986_v55, %v7650_v41  ;;  %v5016_v18 = vcombine.high %v4994_v10, %v4994_v10  ;;  %v5023_v9 = vrot.slane %v4994_v10, %v7657_v29  ;;  %v4987_v45 = vcombine.high %v4985_v54, %v4985_v54 }
0x18fb   :  { %v3248_v24 = vpop.permute.xlu0 %3247  ;;  %v5001_v23 = vrot.slane %v4985_v54, %v7650_v41 }
0x18fc   :  { %3269 = vst.msk [vmem:[%s8205_s7 + $0x14] sm:$0x1] %vm854_vm10, %v3248_v24  ;;  %v5027_v36 = vrot.slane %v5008_v35, %v7657_v29  ;;  %v5018_v60 = vcombine.high %v5008_v35, %v5008_v35  ;;  %5052 = vrot.lane.b32.xlu0 %v5023_v9, %s6378_s3  ;;  %v5031_v1 = vrot.slane %v5016_v18, %v7657_v29 }
0x18fd   :  { %v5015_v31 = vrot.slane %v4987_v45, %v7650_v41  ;;  %v5039_v59 = vrot.slane %v5001_v23, %v7657_v29  ;;  %v5017_v2 = vcombine.high %v5001_v23, %v5001_v23 }
0x18fe   :  { %5054 = vrot.lane.b32.xlu1 %v5027_v36, %s6378_s3  ;;  %v5035_v16 = vrot.slane %v5018_v60, %v7657_v29 }
0x18ff   :  { %v3252_v7 = vpop.permute.xlu0 %3251  ;;  %v5043_v20 = vrot.slane %v5015_v31, %v7657_v29  ;;  %v5019_v37 = vcombine.high %v5015_v31, %v5015_v31  ;;  %v5047_v25 = vrot.slane %v5017_v2, %v7657_v29 }
0x1900   :  { %3271 = vst.msk [vmem:[%s8205_s7 + $0x24] sm:$0x1] %vm854_vm10, %v3252_v7  ;;  %5056 = vrot.lane.b32.xlu0 %v5031_v1, %s6378_s3 }
0x1901   :  { %v5051_v49 = vrot.slane %v5019_v37, %v7657_v29 }
0x1902   :  { %5058 = vrot.lane.b32.xlu1 %v5035_v16, %s6378_s3 }
0x1903   :  { %v3256_v21 = vpop.permute.xlu0 %3255 }
0x1904   :  { %3273 = vst.msk [vmem:[%s8205_s7 + $0x34] sm:$0x1] %vm854_vm10, %v3256_v21  ;;  %5060 = vrot.lane.b32.xlu0 %v5039_v59, %s6378_s3 }
0x1906   :  { %5062 = vrot.lane.b32.xlu1 %v5043_v20, %s6378_s3 }
0x1907   :  { %v3847_v41 = vpop.permute.xlu0 %3846 }
0x1908   :  { %3870 = vst.msk [vmem:[%s8205_s7 + $0x5] sm:$0x1] %vm854_vm10, %v3847_v41  ;;  %5064 = vrot.lane.b32.xlu0 %v5047_v25, %s6378_s3 }
0x190a   :  { %5066 = vrot.lane.b32.xlu1 %v5051_v49, %s6378_s3 }
0x190b   :  { %v3851_v42 = vpop.permute.xlu0 %3850 }
0x190c   :  { %3872 = vst.msk [vmem:[%s8205_s7 + $0x15] sm:$0x1] %vm854_vm10, %v3851_v42  ;;  %5117 = vrot.lane.b32.xlu0 %v7987_v0, %s6380_s26 }
0x190e   :  { %5112 = vrot.lane.b32.xlu1 %v4969_v57, %s6378_s3 }
0x190f   :  { %v3855_v52 = vpop.permute.xlu0 %3854 }
0x1910   :  { %3874 = vst.msk [vmem:[%s8205_s7 + $0x25] sm:$0x1] %vm854_vm10, %v3855_v52 }
0x1913   :  { %v3859_v29 = vpop.permute.xlu0 %3858 }
0x1914   :  { %3876 = vst.msk [vmem:[%s8205_s7 + $0x35] sm:$0x1] %vm854_vm10, %v3859_v29 }
0x1917   :  { %v4450_v15 = vpop.permute.xlu0 %4449 }
0x1918   :  { %4473 = vst.msk [vmem:[%s8205_s7 + $0x6] sm:$0x1] %vm854_vm10, %v4450_v15 }
0x191b   :  { %v4454_v0 = vpop.permute.xlu0 %4453 }
0x191c   :  { %4475 = vst.msk [vmem:[%s8205_s7 + $0x16] sm:$0x1] %vm854_vm10, %v4454_v0 }
0x191f   :  { %v4458_v14 = vpop.permute.xlu0 %4457 }
0x1920   :  { %4477 = vst.msk [vmem:[%s8205_s7 + $0x26] sm:$0x1] %vm854_vm10, %v4458_v14 }
0x1923   :  { %v4462_v8 = vpop.permute.xlu0 %4461 }
0x1924   :  { %4479 = vst.msk [vmem:[%s8205_s7 + $0x36] sm:$0x1] %vm854_vm10, %v4462_v8 }
0x1927   :  { %v5109_v12 = vpop.permute.xlu0 %5108 }
0x1928   :  { %5111 = vst.msk [vmem:[#allocation4] sm:$0xff] %vm30_vm2, %v5109_v12 }
0x196e   :  { %v5053_v50 = vpop.permute.xlu0 %5052 }
0x196f   :  { %5076 = vst.msk [vmem:[%s8205_s7 + $0x7] sm:$0x1] %vm854_vm10, %v5053_v50 }
0x1970   :  { %v5055_v27 = vpop.permute.xlu1 %5054 }
0x1971   :  { %5077 = vst.msk [vmem:[%s8205_s7 + $0xf] sm:$0x1] %vm854_vm10, %v5055_v27 }
0x1972   :  { %v5057_v13 = vpop.permute.xlu0 %5056 }
0x1973   :  { %5078 = vst.msk [vmem:[%s8205_s7 + $0x17] sm:$0x1] %vm854_vm10, %v5057_v13 }
0x1974   :  { %v5059_v43 = vpop.permute.xlu1 %5058 }
0x1975   :  { %5079 = vst.msk [vmem:[%s8205_s7 + $0x1f] sm:$0x1] %vm854_vm10, %v5059_v43 }
0x1976   :  { %v5061_v56 = vpop.permute.xlu0 %5060 }
0x1977   :  { %5080 = vst.msk [vmem:[%s8205_s7 + $0x27] sm:$0x1] %vm854_vm10, %v5061_v56 }
0x1978   :  { %v5063_v40 = vpop.permute.xlu1 %5062 }
0x1979   :  { %5081 = vst.msk [vmem:[%s8205_s7 + $0x2f] sm:$0x1] %vm854_vm10, %v5063_v40 }
0x197a   :  { %v5065_v5 = vpop.permute.xlu0 %5064 }
0x197b   :  { %5082 = vst.msk [vmem:[%s8205_s7 + $0x37] sm:$0x1] %vm854_vm10, %v5065_v5 }
0x197c   :  { %v5067_v6 = vpop.permute.xlu1 %5066 }
0x197d   :  { %5083 = vst.msk [vmem:[%s8205_s7 + $0x3f] sm:$0x1] %vm854_vm10, %v5067_v6 }
0x197e   :  { %v5118_v38 = vpop.permute.xlu0 %5117 }
0x197f   :  { %5120 = vst.msk [vmem:[#allocation6] sm:$0xff] %vm30_vm2, %v5118_v38 }
0x1980   :  { %v5113_v39 = vpop.permute.xlu1 %5112 }
0x1981   :  { %5115 = vst.msk [vmem:[#allocation5] sm:$0xff] %vm30_vm2, %v5113_v39 }

</bundles_post_ra>
